<compile_context>
chip_gen: v6e
topology: v6e:2x2x1
jax: 0.10.0
libtpu: 0.0.40
codegen_flags: <defaults>
</compile_context>

<pallas_src>
import functools

import numpy as np
import jax
import jax.numpy as jnp
from jax import lax
from jax.experimental import pallas as pl
from jax.experimental.pallas import tpu as pltpu


# ---------------------------------------------------------------------------
# Fused Pallas kernel
# ---------------------------------------------------------------------------
def _bottleneck_last_kernel(xh_ref, xl_ref, mh_ref, ml_ref, pool_ref, up_ref,
                            w1h_ref, w1lo_ref, b1h_ref, b1lo_ref,
                            w2h_ref, w2lo_ref, b2_ref,
                            out_ref, col_h_ref, col_lo_ref,
                            *, w_hi, w_lo):
  """Whole BottleneckLast block for one block of folded images, (C, lanes).

  xh_ref : (1, CHp, LH)   high-freq input, padded channels, NB images on lanes
  xl_ref : (1, CLp, LL)   low-freq input, lane-padded to a multiple of 128
  mh_ref : (9, LH)        per-tap validity masks (high resolution, per image)
  ml_ref : (9, LL)        per-tap validity masks (low resolution, per image)
  pool_ref:(LH, LL) bf16  2x2 average pool as a (block-diagonal) matmul
  up_ref : (LL, LH) bf16  2x nearest upsample as a matmul
  w1h_ref: (C1Hp, 9*CHp)        layer-1 high->high weights, BN scale folded
  w1lo_ref:(C1Hp+C1Lp, 9*(CLp+CHp)) layer-1 low-res weights [l2h ; l2l|h2l]
  b1h_ref: (C1Hp, 1)            layer-1 high BN shift
  b1lo_ref:(C1Hp+C1Lp, 1)       layer-1 low-res shifts (0 for l2h rows)
  w2h_ref: (COUTp, 9*C1Hp)      layer-2 high->high weights (concat row layout)
  w2lo_ref:(COUTp, 9*(C1Lp+C1Hp)) layer-2 low-res weights (concat row layout)
  b2_ref : (COUTp, 1)           layer-2 BN shifts, added at high resolution
  out_ref: (1, COUTp, LH)
  col_h_ref / col_lo_ref: VMEM im2col scratch (K-stacked for the low branch)
  """

  def dot(a, b):
    return jnp.dot(a, b, preferred_element_type=jnp.float32)

  def im2col(x, mask_ref, row_w, col_ref, row0):
    # x: (Cpad, L) with Cpad % 8 == 0.  Each of the 9 shifted+masked taps is
    # stored as a full 8-sublane-aligned tile; returns the next free row.
    c, lanes = x.shape
    for kh in range(3):
      for kw in range(3):
        k = kh * 3 + kw
        shift = (-((kh - 1) * row_w + (kw - 1))) % lanes
        tap = pltpu.roll(x, shift, axis=1) * mask_ref[pl.ds(k, 1), :]
        r = row0 + k * c
        col_ref[r:r + c, :] = tap
    return row0 + 9 * c

  c1hp = w1h_ref.shape[0]                    # padded layer-1 high channels
  pool = pool_ref[...].astype(jnp.float32)   # cast the bf16 constants once
  up = up_ref[...].astype(jnp.float32)
  xh = xh_ref[0]                             # (CHp, LH)
  xl = xl_ref[0]                             # (CLp, LL)

  # ---- ocb1: OctaveCBR (octave 3x3 conv + folded BN + ReLU) ----------------
  xh_ds = dot(xh, pool)                                     # avgpool(x_h)
  kh1 = im2col(xh, mh_ref, w_hi, col_h_ref, 0)
  klo = im2col(xl, ml_ref, w_lo, col_lo_ref, 0)
  klo = im2col(xh_ds, ml_ref, w_lo, col_lo_ref, klo)

  # ONE dot for everything at low resolution:
  #   rows [0:c1hp)  -> conv_l2h(x_l)          (upsampled into y_h1 below)
  #   rows [c1hp: )  -> conv_l2l(x_l) + conv_h2l(avgpool(x_h))   (= y_l1)
  low1 = dot(w1lo_ref[...], col_lo_ref[0:klo, :]) + b1lo_ref[...]
  yl1 = jnp.maximum(low1[c1hp:], 0.0)                        # (C1Lp, LL)
  yh1 = jnp.maximum(dot(w1h_ref[...], col_h_ref[0:kh1, :])
                    + dot(low1[0:c1hp], up) + b1h_ref[...],
                    0.0)                                     # (C1Hp, LH)

  # ---- ocb2: OctaveCB + module tail (upsample(y_l), concat, +res, ReLU) ----
  yh1_ds = dot(yh1, pool)
  kh2 = im2col(yh1, mh_ref, w_hi, col_h_ref, 0)
  klo = im2col(yl1, ml_ref, w_lo, col_lo_ref, 0)
  klo = im2col(yh1_ds, ml_ref, w_lo, col_lo_ref, klo)

  # rows [0:c2h) -> conv_l2h(y_h side), rows [c2h:cout) -> y_l2; both go
  # through the same upsample dot (the concat is encoded in the row layout),
  # then BN shifts are added at high resolution.
  low2 = dot(w2lo_ref[...], col_lo_ref[0:klo, :])            # (COUTp, LL)
  out = (dot(w2h_ref[...], col_h_ref[0:kh2, :]) + dot(low2, up) + b2_ref[...])

  # residual add + final ReLU: one full-tile lane-dense store.
  out_ref[0] = jnp.maximum(out + xh, 0.0).astype(out_ref.dtype)


# ---------------------------------------------------------------------------
# Host-side constant / weight packing (BN folded, conv -> matmul form)
# ---------------------------------------------------------------------------
def _pad8(c):
  return ((c + 7) // 8) * 8


def _conv_to_mat(w_oihw, scale, co_p, ci_p):
  """(co, ci, 3, 3) conv weight * per-co BN scale -> (co_p, 9*ci_p) matmul
  weight whose column order matches im2col row order (tap-major)."""
  co, ci = w_oihw.shape[:2]
  wm = w_oihw * scale[:, None, None, None]
  wm = jnp.pad(wm, ((0, co_p - co), (0, ci_p - ci), (0, 0), (0, 0)))
  return jnp.transpose(wm, (0, 2, 3, 1)).reshape(co_p, 9 * ci_p).astype(jnp.float32)


def _pad_rows(v, rows):
  return jnp.pad(v, (0, rows - v.shape[0])).astype(jnp.float32)[:, None]


def _shift_masks(h, w, nb, lanes):
  """(9, lanes) per-tap validity masks, tiled per folded image, zero in the
  lane padding region (also zeroes any roll wrap-around across image seams)."""
  hw = h * w
  idx = np.arange(hw)
  r, c = idx // w, idx % w
  rows = []
  for kh in range(3):
    for kw in range(3):
      dr, dc = kh - 1, kw - 1
      ok = ((r + dr >= 0) & (r + dr < h) & (c + dc >= 0) & (c + dc < w))
      m = np.tile(ok.astype(np.float32), nb)
      rows.append(np.pad(m, (0, lanes - nb * hw)))
  return jnp.asarray(np.stack(rows))


def _pool_up_mats(h, w, nb, lanes_lo):
  """Per-image block-diagonal 2x2 avg-pool (LH, LL) and nearest 2x upsample
  (LL, LH) matrices, shipped as bf16 (0.25 / 1.0 are exact in bf16)."""
  hw_h = h * w
  hl, wl = h // 2, w // 2
  hw_l = hl * wl
  i = np.arange(hw_h)
  j = (i // w // 2) * wl + (i % w) // 2
  pool = np.zeros((nb * hw_h, lanes_lo), np.float32)
  up = np.zeros((lanes_lo, nb * hw_h), np.float32)
  for b in range(nb):
    pool[b * hw_h + i, b * hw_l + j] = 0.25
    up[b * hw_l + j, b * hw_h + i] = 1.0
  return jnp.asarray(pool, jnp.bfloat16), jnp.asarray(up, jnp.bfloat16)


def _pack_kernel_params(params, h, w, nb):
  """Fold BN into the conv weights and pack them for the fused kernel.
  `nb` = number of images folded into the lane axis per grid step."""
  hl, wl = h // 2, w // 2
  lanes_lo = ((nb * hl * wl + 127) // 128) * 128
  p1, p2 = params['ocb1'], params['ocb2']

  ch_in, cl_in = p1['w_h2h_pt'].shape[1], p1['w_l2l_pt'].shape[1]
  c1h, c1l = p1['w_h2h_pt'].shape[0], p1['w_l2l_pt'].shape[0]
  c2h, c2l = p2['w_h2h_pt'].shape[0], p2['w_l2l_pt'].shape[0]
  chp, clp = _pad8(ch_in), _pad8(cl_in)
  c1hp, c1lp = _pad8(c1h), _pad8(c1l)
  cout = c2h + c2l
  coutp = _pad8(cout)

  # ---- layer 1 (OctaveCBR) ----
  w1_h = _conv_to_mat(p1['w_h2h_pt'], p1['sc_h'], c1hp, chp)
  w1_low = jnp.concatenate([
      jnp.concatenate([_conv_to_mat(p1['w_l2h_pt'], p1['sc_h'], c1hp, clp),
                       jnp.zeros((c1hp, 9 * chp), jnp.float32)], axis=1),
      jnp.concatenate([_conv_to_mat(p1['w_l2l_pt'], p1['sc_l'], c1lp, clp),
                       _conv_to_mat(p1['w_h2l_pt'], p1['sc_l'], c1lp, chp)],
                      axis=1),
  ], axis=0)                                   # (c1hp+c1lp, 9*(clp+chp))
  b1_h = _pad_rows(p1['sh_h'], c1hp)
  b1_low = jnp.concatenate([jnp.zeros((c1hp, 1), jnp.float32),
                            _pad_rows(p1['sh_l'], c1lp)], axis=0)

  # ---- layer 2 (OctaveCB); upsample + concat folded into the row layout:
  #      output rows [0:c2h) = y_h2, rows [c2h:cout) = upsample(y_l2) ----
  w2_h = jnp.concatenate([
      _conv_to_mat(p2['w_h2h_pt'], p2['sc_h'], c2h, c1hp),
      jnp.zeros((coutp - c2h, 9 * c1hp), jnp.float32)], axis=0)
  w2_low = jnp.concatenate([
      jnp.concatenate([_conv_to_mat(p2['w_l2h_pt'], p2['sc_h'], c2h, c1lp),
                       jnp.zeros((c2h, 9 * c1hp), jnp.float32)], axis=1),
      jnp.concatenate([_conv_to_mat(p2['w_l2l_pt'], p2['sc_l'], c2l, c1lp),
                       _conv_to_mat(p2['w_h2l_pt'], p2['sc_l'], c2l, c1hp)],
                      axis=1),
      jnp.zeros((coutp - cout, 9 * (c1lp + c1hp)), jnp.float32),
  ], axis=0)                                   # (coutp, 9*(c1lp+c1hp))
  b2 = _pad_rows(jnp.concatenate([p2['sh_h'], p2['sh_l']]), coutp)

  pool, up = _pool_up_mats(h, w, nb, lanes_lo)
  return {
      'w1_h': w1_h, 'w1_low': w1_low, 'b1_h': b1_h, 'b1_low': b1_low,
      'w2_h': w2_h, 'w2_low': w2_low, 'b2': b2,
      'mask_h': _shift_masks(h, w, nb, nb * h * w),
      'mask_l': _shift_masks(hl, wl, nb, lanes_lo),
      'pool': pool, 'up': up,
  }


def _images_per_block(n):
  """How many images to fold into the lane axis per grid step.

  Single-TensorCore chips (v5e/v6e): fold the whole batch -> one grid step.
  v7x (2 TensorCores/chip): keep one image per step so the 'parallel' batch
  grid splits across the two cores."""
  try:
    kind = jax.devices()[0].device_kind.lower()
  except Exception:
    kind = ""
  if "v7" in kind or "7x" in kind:
    return 1
  return n


# ---------------------------------------------------------------------------
# Wrapper: NCHW in / NCHW out, one pallas_call
# ---------------------------------------------------------------------------
def bottleneck_last_forward(x_h_nchw, x_l_nchw, packed):
  n, ch, h, w = x_h_nchw.shape
  _, cl, hl, wl = x_l_nchw.shape
  hw_h, hw_l = h * w, hl * wl

  # All static sizes are recovered from the packed-array shapes (jit-safe).
  lh = packed['mask_h'].shape[1]
  ll = packed['mask_l'].shape[1]
  nb = lh // hw_h                      # images folded into lanes per step
  g = n // nb                          # grid steps
  chp = packed['w1_h'].shape[1] // 9
  clp = packed['w1_low'].shape[1] // 9 - chp
  coutp = packed['w2_h'].shape[0]
  rows_h = max(packed['w1_h'].shape[1], packed['w2_h'].shape[1])
  rows_lo = max(packed['w1_low'].shape[1], packed['w2_low'].shape[1])
  assert n % nb == 0 and coutp == chp  # residual add requires matching pads

  f32 = jnp.float32
  # Fold nb images into the lane axis (image-major), pad channels to 8.
  xh = x_h_nchw.astype(f32).reshape(g, nb, ch, hw_h)
  xh = jnp.pad(xh, ((0, 0), (0, 0), (0, chp - ch), (0, 0)))
  xh = jnp.transpose(xh, (0, 2, 1, 3)).reshape(g, chp, nb * hw_h)
  xl = x_l_nchw.astype(f32).reshape(g, nb, cl, hw_l)
  xl = jnp.pad(xl, ((0, 0), (0, 0), (0, clp - cl), (0, 0)))
  xl = jnp.transpose(xl, (0, 2, 1, 3)).reshape(g, clp, nb * hw_l)
  xl = jnp.pad(xl, ((0, 0), (0, 0), (0, ll - nb * hw_l)))

  def const_spec(arr):
    zeros = (0,) * arr.ndim
    return pl.BlockSpec(arr.shape, lambda b: zeros)

  consts = (packed['mask_h'], packed['mask_l'], packed['pool'], packed['up'],
            packed['w1_h'], packed['w1_low'], packed['b1_h'], packed['b1_low'],
            packed['w2_h'], packed['w2_low'], packed['b2'])

  kernel = functools.partial(_bottleneck_last_kernel, w_hi=w, w_lo=wl)
  out = pl.pallas_call(
      kernel,
      out_shape=jax.ShapeDtypeStruct((g, coutp, lh), f32),
      grid_spec=pltpu.PrefetchScalarGridSpec(
          num_scalar_prefetch=0,
          grid=(g,),
          in_specs=[
              pl.BlockSpec((1, chp, lh), lambda b: (b, 0, 0)),
              pl.BlockSpec((1, clp, ll), lambda b: (b, 0, 0)),
          ] + [const_spec(c) for c in consts],
          out_specs=pl.BlockSpec((1, coutp, lh), lambda b: (b, 0, 0)),
          scratch_shapes=[
              pltpu.VMEM((rows_h, lh), f32),    # high-res im2col scratch
              pltpu.VMEM((rows_lo, ll), f32),   # K-stacked low-res im2col
          ]),
      compiler_params=pltpu.CompilerParams(
          dimension_semantics=("parallel",),
          vmem_limit_bytes=32 * 1024 * 1024),
  )(xh, xl, *consts)

  out = out.reshape(g, coutp, nb, hw_h)
  out = jnp.transpose(out, (0, 2, 1, 3)).reshape(n, coutp, h, w)
  return out[:, :ch]


# ---------------------------------------------------------------------------
# Deterministic parameters + pure-JAX reference (validation only)
# ---------------------------------------------------------------------------
def _make_oct_params(key, cin, cout, alpha):
  cl_in = int(alpha * cin); ch_in = cin - cl_in
  cl_out = int(alpha * cout); ch_out = cout - cl_out
  keys = jax.random.split(key, 12)

  def wconv(k, o, i):
    return 0.1 * jax.random.normal(k, (o, i, 3, 3), jnp.float32)

  def bn(k0, k1, k2, k3, c):
    gamma = 1.0 + 0.1 * jax.random.normal(k0, (c,), jnp.float32)
    beta = 0.1 * jax.random.normal(k1, (c,), jnp.float32)
    mean = 0.1 * jax.random.normal(k2, (c,), jnp.float32)
    var = 1.0 + 0.1 * jnp.abs(jax.random.normal(k3, (c,), jnp.float32))
    scale = gamma / jnp.sqrt(var + 1e-5)
    shift = beta - mean * scale
    return scale, shift

  w_h2h = wconv(keys[0], ch_out, ch_in)
  w_l2h = wconv(keys[1], ch_out, cl_in)
  w_h2l = wconv(keys[2], cl_out, ch_in)
  w_l2l = wconv(keys[3], cl_out, cl_in)
  sc_h, sh_h = bn(keys[4], keys[5], keys[6], keys[7], ch_out)
  sc_l, sh_l = bn(keys[8], keys[9], keys[10], keys[11], cl_out)
  return {'w_h2h_pt': w_h2h, 'w_l2h_pt': w_l2h, 'w_h2l_pt': w_h2l,
          'w_l2l_pt': w_l2l, 'sc_h': sc_h, 'sh_h': sh_h,
          'sc_l': sc_l, 'sh_l': sh_l}


def _avgpool2(x):  # NHWC
  n, h, w, c = x.shape
  return x.reshape(n, h // 2, 2, w // 2, 2, c).mean(axis=(2, 4))


def _upsample2(x):  # NHWC, nearest, scale 2
  return jnp.repeat(jnp.repeat(x, 2, axis=1), 2, axis=2)


def _ref_forward(x_h_nchw, x_l_nchw, params):
  def conv3(x, w_oihw):
    return lax.conv_general_dilated(
        x, jnp.transpose(w_oihw, (2, 3, 1, 0)), (1, 1), 'SAME',
        dimension_numbers=('NHWC', 'HWIO', 'NHWC'),
        precision=lax.Precision.HIGHEST)

  def oct(xh, xl, p, relu):
    xh_ds = _avgpool2(xh)
    yh = conv3(xh, p['w_h2h_pt']) + _upsample2(conv3(xl, p['w_l2h_pt']))
    yl = conv3(xl, p['w_l2l_pt']) + conv3(xh_ds, p['w_h2l_pt'])
    yh = yh * p['sc_h'] + p['sh_h']
    yl = yl * p['sc_l'] + p['sh_l']
    if relu:
      yh, yl = jnp.maximum(yh, 0.0), jnp.maximum(yl, 0.0)
    return yh, yl

  xh = jnp.transpose(x_h_nchw, (0, 2, 3, 1)).astype(jnp.float32)
  xl = jnp.transpose(x_l_nchw, (0, 2, 3, 1)).astype(jnp.float32)
  yh, yl = oct(xh, xl, params['ocb1'], True)
  yh, yl = oct(yh, yl, params['ocb2'], False)
  out = jnp.maximum(jnp.concatenate([yh, _upsample2(yl)], -1) + xh, 0.0)
  return jnp.transpose(out, (0, 3, 1, 2))


# ---------------------------------------------------------------------------
if __name__ == "__main__":
  # BottleneckLast(inplanes=8, planes=4, alpha=0.5, stride=1, downsample=None)
  inplanes, planes, alpha = 8, 4, 0.5
  N, H, W = 2, 16, 16
  cl_in = int(alpha * inplanes)
  ch_in = inplanes - cl_in
  width = int(planes * (64 / 64.0)) * 1   # groups=1, base_width=64

  key = jax.random.PRNGKey(0)
  k_xh, k_xl, k_p1, k_p2 = jax.random.split(key, 4)
  x_h = jax.random.normal(k_xh, (N, ch_in, H, W), jnp.float32)            # NCHW
  x_l = jax.random.normal(k_xl, (N, cl_in, H // 2, W // 2), jnp.float32)  # NCHW

  params = {
      'ocb1': _make_oct_params(k_p1, inplanes, width, alpha),      # OctaveCBR
      'ocb2': _make_oct_params(k_p2, width, planes * 1, alpha),    # OctaveCB
  }
  nb = _images_per_block(N)                 # batch fold (v5e/v6e) vs grid (v7x)
  packed = _pack_kernel_params(params, H, W, nb)

  out = jax.jit(bottleneck_last_forward)(x_h, x_l, packed)
  out = jax.block_until_ready(out)

  ref = _ref_forward(x_h, x_l, params)
  assert out.shape == (N, ch_in, H, W), out.shape
  # Kernel matmuls run at default MXU precision; reference runs at HIGHEST,
  # so allow a modest absolute tolerance (observed error ~1e-3..1e-2).
  err = float(jnp.max(jnp.abs(out - ref)))
  assert err < 5e-2, f"max abs error {err}"
  print("KERNEL_OK")
</pallas_src>

<mosaic_0001>
module attributes {stable_mosaic.version = 11 : i64} {
  func.func @_bottleneck_last_kernel(%arg0: i32, %arg1: memref<1x8x512xf32, #tpu.memory_space<vmem>>, %arg2: memref<1x8x128xf32, #tpu.memory_space<vmem>>, %arg3: memref<9x512xf32, #tpu.memory_space<vmem>>, %arg4: memref<9x128xf32, #tpu.memory_space<vmem>>, %arg5: memref<512x128xbf16, #tpu.memory_space<vmem>>, %arg6: memref<128x512xbf16, #tpu.memory_space<vmem>>, %arg7: memref<8x72xf32, #tpu.memory_space<vmem>>, %arg8: memref<16x144xf32, #tpu.memory_space<vmem>>, %arg9: memref<8x1xf32, #tpu.memory_space<vmem>>, %arg10: memref<16x1xf32, #tpu.memory_space<vmem>>, %arg11: memref<8x72xf32, #tpu.memory_space<vmem>>, %arg12: memref<8x144xf32, #tpu.memory_space<vmem>>, %arg13: memref<8x1xf32, #tpu.memory_space<vmem>>, %arg14: memref<1x8x512xf32, #tpu.memory_space<vmem>>, %arg15: memref<72x512xf32, #tpu.memory_space<vmem>>, %arg16: memref<144x128xf32, #tpu.memory_space<vmem>>) attributes {dimension_semantics = [#tpu.dimension_semantics<parallel>], iteration_bounds = array<i64: 1>, scalar_prefetch = 0 : i64, scratch_operands = 2 : i64, tpu.core_type = #tpu.core_type<tc>, window_params = [{transform_indices = @transform_0, window_bounds = array<i64: 1, 8, 512>}, {transform_indices = @transform_1, window_bounds = array<i64: 1, 8, 128>}, {pipeline_mode = #tpu.pipeline_mode<synchronous>, transform_indices = @transform_2, window_bounds = array<i64: 9, 512>}, {pipeline_mode = #tpu.pipeline_mode<synchronous>, transform_indices = @transform_3, window_bounds = array<i64: 9, 128>}, {pipeline_mode = #tpu.pipeline_mode<synchronous>, transform_indices = @transform_4, window_bounds = array<i64: 512, 128>}, {pipeline_mode = #tpu.pipeline_mode<synchronous>, transform_indices = @transform_5, window_bounds = array<i64: 128, 512>}, {pipeline_mode = #tpu.pipeline_mode<synchronous>, transform_indices = @transform_6, window_bounds = array<i64: 8, 72>}, {pipeline_mode = #tpu.pipeline_mode<synchronous>, transform_indices = @transform_7, window_bounds = array<i64: 16, 144>}, {pipeline_mode = #tpu.pipeline_mode<synchronous>, transform_indices = @transform_8, window_bounds = array<i64: 8, 1>}, {pipeline_mode = #tpu.pipeline_mode<synchronous>, transform_indices = @transform_9, window_bounds = array<i64: 16, 1>}, {pipeline_mode = #tpu.pipeline_mode<synchronous>, transform_indices = @transform_10, window_bounds = array<i64: 8, 72>}, {pipeline_mode = #tpu.pipeline_mode<synchronous>, transform_indices = @transform_11, window_bounds = array<i64: 8, 144>}, {pipeline_mode = #tpu.pipeline_mode<synchronous>, transform_indices = @transform_12, window_bounds = array<i64: 8, 1>}, {transform_indices = @transform_13, window_bounds = array<i64: 1, 8, 512>}]} {
    %c0 = arith.constant 0 : index
    %c0_0 = arith.constant 0 : index
    %0 = vector.load %arg5[%c0, %c0_0] : memref<512x128xbf16, #tpu.memory_space<vmem>>, vector<512x128xbf16>
    %1 = arith.extf %0 : vector<512x128xbf16> to vector<512x128xf32>
    %c0_1 = arith.constant 0 : index
    %c0_2 = arith.constant 0 : index
    %2 = vector.load %arg6[%c0_1, %c0_2] : memref<128x512xbf16, #tpu.memory_space<vmem>>, vector<128x512xbf16>
    %3 = arith.extf %2 : vector<128x512xbf16> to vector<128x512xf32>
    %c0_3 = arith.constant 0 : index
    %c0_4 = arith.constant 0 : index
    %c0_5 = arith.constant 0 : index
    %4 = vector.load %arg1[%c0_3, %c0_4, %c0_5] : memref<1x8x512xf32, #tpu.memory_space<vmem>>, vector<1x8x512xf32>
    %5 = vector.shape_cast %4 : vector<1x8x512xf32> to vector<8x512xf32>
    %c0_6 = arith.constant 0 : index
    %c0_7 = arith.constant 0 : index
    %c0_8 = arith.constant 0 : index
    %6 = vector.load %arg2[%c0_6, %c0_7, %c0_8] : memref<1x8x128xf32, #tpu.memory_space<vmem>>, vector<1x8x128xf32>
    %7 = vector.shape_cast %6 : vector<1x8x128xf32> to vector<8x128xf32>
    %cst = arith.constant dense<0.000000e+00> : vector<8x128xf32>
    %8 = tpu.matmul %5, %1, %cst {dimension_numbers = #tpu.dot_dimension_numbers<[1], [0], [0], [1], [0, 0, 1, 1], [], []>} : vector<8x512xf32>, vector<512x128xf32>, vector<8x128xf32> -> vector<8x128xf32>
    %c17_i32 = arith.constant 17 : i32
    %9 = tpu.dynamic_rotate %5 by %c17_i32 dim 1 : vector<8x512xf32>, i32 -> vector<8x512xf32>
    %c0_9 = arith.constant 0 : index
    %c0_10 = arith.constant 0 : index
    %10 = vector.load %arg3[%c0_9, %c0_10] : memref<9x512xf32, #tpu.memory_space<vmem>>, vector<1x512xf32>
    %11 = vector.broadcast %10 : vector<1x512xf32> to vector<8x512xf32>
    %12 = arith.mulf %9, %11 : vector<8x512xf32>
    %c0_11 = arith.constant 0 : index
    %c0_12 = arith.constant 0 : index
    %13 = vector.load %arg15[%c0_11, %c0_12] : memref<72x512xf32, #tpu.memory_space<vmem>>, vector<8x512xf32>
    tpu.vector_store %arg15[%c0_11, %c0_12], %12 {strides = array<i32>} : memref<72x512xf32, #tpu.memory_space<vmem>>, vector<8x512xf32>,
    %c16_i32 = arith.constant 16 : i32
    %14 = tpu.dynamic_rotate %5 by %c16_i32 dim 1 : vector<8x512xf32>, i32 -> vector<8x512xf32>
    %c1 = arith.constant 1 : index
    %c0_13 = arith.constant 0 : index
    %15 = vector.load %arg3[%c1, %c0_13] : memref<9x512xf32, #tpu.memory_space<vmem>>, vector<1x512xf32>
    %16 = vector.broadcast %15 : vector<1x512xf32> to vector<8x512xf32>
    %17 = arith.mulf %14, %16 : vector<8x512xf32>
    %c8 = arith.constant 8 : index
    %c0_14 = arith.constant 0 : index
    %18 = vector.load %arg15[%c8, %c0_14] : memref<72x512xf32, #tpu.memory_space<vmem>>, vector<8x512xf32>
    tpu.vector_store %arg15[%c8, %c0_14], %17 {strides = array<i32>} : memref<72x512xf32, #tpu.memory_space<vmem>>, vector<8x512xf32>,
    %c15_i32 = arith.constant 15 : i32
    %19 = tpu.dynamic_rotate %5 by %c15_i32 dim 1 : vector<8x512xf32>, i32 -> vector<8x512xf32>
    %c2 = arith.constant 2 : index
    %c0_15 = arith.constant 0 : index
    %20 = vector.load %arg3[%c2, %c0_15] : memref<9x512xf32, #tpu.memory_space<vmem>>, vector<1x512xf32>
    %21 = vector.broadcast %20 : vector<1x512xf32> to vector<8x512xf32>
    %22 = arith.mulf %19, %21 : vector<8x512xf32>
    %c16 = arith.constant 16 : index
    %c0_16 = arith.constant 0 : index
    %23 = vector.load %arg15[%c16, %c0_16] : memref<72x512xf32, #tpu.memory_space<vmem>>, vector<8x512xf32>
    tpu.vector_store %arg15[%c16, %c0_16], %22 {strides = array<i32>} : memref<72x512xf32, #tpu.memory_space<vmem>>, vector<8x512xf32>,
    %c1_i32 = arith.constant 1 : i32
    %24 = tpu.dynamic_rotate %5 by %c1_i32 dim 1 : vector<8x512xf32>, i32 -> vector<8x512xf32>
    %c3 = arith.constant 3 : index
    %c0_17 = arith.constant 0 : index
    %25 = vector.load %arg3[%c3, %c0_17] : memref<9x512xf32, #tpu.memory_space<vmem>>, vector<1x512xf32>
    %26 = vector.broadcast %25 : vector<1x512xf32> to vector<8x512xf32>
    %27 = arith.mulf %24, %26 : vector<8x512xf32>
    %c24 = arith.constant 24 : index
    %c0_18 = arith.constant 0 : index
    %28 = vector.load %arg15[%c24, %c0_18] : memref<72x512xf32, #tpu.memory_space<vmem>>, vector<8x512xf32>
    tpu.vector_store %arg15[%c24, %c0_18], %27 {strides = array<i32>} : memref<72x512xf32, #tpu.memory_space<vmem>>, vector<8x512xf32>,
    %c0_i32 = arith.constant 0 : i32
    %29 = tpu.dynamic_rotate %5 by %c0_i32 dim 1 : vector<8x512xf32>, i32 -> vector<8x512xf32>
    %c4 = arith.constant 4 : index
    %c0_19 = arith.constant 0 : index
    %30 = vector.load %arg3[%c4, %c0_19] : memref<9x512xf32, #tpu.memory_space<vmem>>, vector<1x512xf32>
    %31 = vector.broadcast %30 : vector<1x512xf32> to vector<8x512xf32>
    %32 = arith.mulf %29, %31 : vector<8x512xf32>
    %c32 = arith.constant 32 : index
    %c0_20 = arith.constant 0 : index
    %33 = vector.load %arg15[%c32, %c0_20] : memref<72x512xf32, #tpu.memory_space<vmem>>, vector<8x512xf32>
    tpu.vector_store %arg15[%c32, %c0_20], %32 {strides = array<i32>} : memref<72x512xf32, #tpu.memory_space<vmem>>, vector<8x512xf32>,
    %c511_i32 = arith.constant 511 : i32
    %34 = tpu.dynamic_rotate %5 by %c511_i32 dim 1 : vector<8x512xf32>, i32 -> vector<8x512xf32>
    %c5 = arith.constant 5 : index
    %c0_21 = arith.constant 0 : index
    %35 = vector.load %arg3[%c5, %c0_21] : memref<9x512xf32, #tpu.memory_space<vmem>>, vector<1x512xf32>
    %36 = vector.broadcast %35 : vector<1x512xf32> to vector<8x512xf32>
    %37 = arith.mulf %34, %36 : vector<8x512xf32>
    %c40 = arith.constant 40 : index
    %c0_22 = arith.constant 0 : index
    %38 = vector.load %arg15[%c40, %c0_22] : memref<72x512xf32, #tpu.memory_space<vmem>>, vector<8x512xf32>
    tpu.vector_store %arg15[%c40, %c0_22], %37 {strides = array<i32>} : memref<72x512xf32, #tpu.memory_space<vmem>>, vector<8x512xf32>,
    %c497_i32 = arith.constant 497 : i32
    %39 = tpu.dynamic_rotate %5 by %c497_i32 dim 1 : vector<8x512xf32>, i32 -> vector<8x512xf32>
    %c6 = arith.constant 6 : index
    %c0_23 = arith.constant 0 : index
    %40 = vector.load %arg3[%c6, %c0_23] : memref<9x512xf32, #tpu.memory_space<vmem>>, vector<1x512xf32>
    %41 = vector.broadcast %40 : vector<1x512xf32> to vector<8x512xf32>
    %42 = arith.mulf %39, %41 : vector<8x512xf32>
    %c48 = arith.constant 48 : index
    %c0_24 = arith.constant 0 : index
    %43 = vector.load %arg15[%c48, %c0_24] : memref<72x512xf32, #tpu.memory_space<vmem>>, vector<8x512xf32>
    tpu.vector_store %arg15[%c48, %c0_24], %42 {strides = array<i32>} : memref<72x512xf32, #tpu.memory_space<vmem>>, vector<8x512xf32>,
    %c496_i32 = arith.constant 496 : i32
    %44 = tpu.dynamic_rotate %5 by %c496_i32 dim 1 : vector<8x512xf32>, i32 -> vector<8x512xf32>
    %c7 = arith.constant 7 : index
    %c0_25 = arith.constant 0 : index
    %45 = vector.load %arg3[%c7, %c0_25] : memref<9x512xf32, #tpu.memory_space<vmem>>, vector<1x512xf32>
    %46 = vector.broadcast %45 : vector<1x512xf32> to vector<8x512xf32>
    %47 = arith.mulf %44, %46 : vector<8x512xf32>
    %c56 = arith.constant 56 : index
    %c0_26 = arith.constant 0 : index
    %48 = vector.load %arg15[%c56, %c0_26] : memref<72x512xf32, #tpu.memory_space<vmem>>, vector<8x512xf32>
    tpu.vector_store %arg15[%c56, %c0_26], %47 {strides = array<i32>} : memref<72x512xf32, #tpu.memory_space<vmem>>, vector<8x512xf32>,
    %c495_i32 = arith.constant 495 : i32
    %49 = tpu.dynamic_rotate %5 by %c495_i32 dim 1 : vector<8x512xf32>, i32 -> vector<8x512xf32>
    %c8_27 = arith.constant 8 : index
    %c0_28 = arith.constant 0 : index
    %50 = vector.load %arg3[%c8_27, %c0_28] : memref<9x512xf32, #tpu.memory_space<vmem>>, vector<1x512xf32>
    %51 = vector.broadcast %50 : vector<1x512xf32> to vector<8x512xf32>
    %52 = arith.mulf %49, %51 : vector<8x512xf32>
    %c64 = arith.constant 64 : index
    %c0_29 = arith.constant 0 : index
    %53 = vector.load %arg15[%c64, %c0_29] : memref<72x512xf32, #tpu.memory_space<vmem>>, vector<8x512xf32>
    tpu.vector_store %arg15[%c64, %c0_29], %52 {strides = array<i32>} : memref<72x512xf32, #tpu.memory_space<vmem>>, vector<8x512xf32>,
    %c9_i32 = arith.constant 9 : i32
    %54 = tpu.dynamic_rotate %7 by %c9_i32 dim 1 : vector<8x128xf32>, i32 -> vector<8x128xf32>
    %c0_30 = arith.constant 0 : index
    %c0_31 = arith.constant 0 : index
    %55 = vector.load %arg4[%c0_30, %c0_31] : memref<9x128xf32, #tpu.memory_space<vmem>>, vector<1x128xf32>
    %56 = vector.broadcast %55 : vector<1x128xf32> to vector<8x128xf32>
    %57 = arith.mulf %54, %56 : vector<8x128xf32>
    %c0_32 = arith.constant 0 : index
    %c0_33 = arith.constant 0 : index
    %58 = vector.load %arg16[%c0_32, %c0_33] : memref<144x128xf32, #tpu.memory_space<vmem>>, vector<8x128xf32>
    tpu.vector_store %arg16[%c0_32, %c0_33], %57 {strides = array<i32>} : memref<144x128xf32, #tpu.memory_space<vmem>>, vector<8x128xf32>,
    %c8_i32 = arith.constant 8 : i32
    %59 = tpu.dynamic_rotate %7 by %c8_i32 dim 1 : vector<8x128xf32>, i32 -> vector<8x128xf32>
    %c1_34 = arith.constant 1 : index
    %c0_35 = arith.constant 0 : index
    %60 = vector.load %arg4[%c1_34, %c0_35] : memref<9x128xf32, #tpu.memory_space<vmem>>, vector<1x128xf32>
    %61 = vector.broadcast %60 : vector<1x128xf32> to vector<8x128xf32>
    %62 = arith.mulf %59, %61 : vector<8x128xf32>
    %c8_36 = arith.constant 8 : index
    %c0_37 = arith.constant 0 : index
    %63 = vector.load %arg16[%c8_36, %c0_37] : memref<144x128xf32, #tpu.memory_space<vmem>>, vector<8x128xf32>
    tpu.vector_store %arg16[%c8_36, %c0_37], %62 {strides = array<i32>} : memref<144x128xf32, #tpu.memory_space<vmem>>, vector<8x128xf32>,
    %c7_i32 = arith.constant 7 : i32
    %64 = tpu.dynamic_rotate %7 by %c7_i32 dim 1 : vector<8x128xf32>, i32 -> vector<8x128xf32>
    %c2_38 = arith.constant 2 : index
    %c0_39 = arith.constant 0 : index
    %65 = vector.load %arg4[%c2_38, %c0_39] : memref<9x128xf32, #tpu.memory_space<vmem>>, vector<1x128xf32>
    %66 = vector.broadcast %65 : vector<1x128xf32> to vector<8x128xf32>
    %67 = arith.mulf %64, %66 : vector<8x128xf32>
    %c16_40 = arith.constant 16 : index
    %c0_41 = arith.constant 0 : index
    %68 = vector.load %arg16[%c16_40, %c0_41] : memref<144x128xf32, #tpu.memory_space<vmem>>, vector<8x128xf32>
    tpu.vector_store %arg16[%c16_40, %c0_41], %67 {strides = array<i32>} : memref<144x128xf32, #tpu.memory_space<vmem>>, vector<8x128xf32>,
    %c1_i32_42 = arith.constant 1 : i32
    %69 = tpu.dynamic_rotate %7 by %c1_i32_42 dim 1 : vector<8x128xf32>, i32 -> vector<8x128xf32>
    %c3_43 = arith.constant 3 : index
    %c0_44 = arith.constant 0 : index
    %70 = vector.load %arg4[%c3_43, %c0_44] : memref<9x128xf32, #tpu.memory_space<vmem>>, vector<1x128xf32>
    %71 = vector.broadcast %70 : vector<1x128xf32> to vector<8x128xf32>
    %72 = arith.mulf %69, %71 : vector<8x128xf32>
    %c24_45 = arith.constant 24 : index
    %c0_46 = arith.constant 0 : index
    %73 = vector.load %arg16[%c24_45, %c0_46] : memref<144x128xf32, #tpu.memory_space<vmem>>, vector<8x128xf32>
    tpu.vector_store %arg16[%c24_45, %c0_46], %72 {strides = array<i32>} : memref<144x128xf32, #tpu.memory_space<vmem>>, vector<8x128xf32>,
    %c0_i32_47 = arith.constant 0 : i32
    %74 = tpu.dynamic_rotate %7 by %c0_i32_47 dim 1 : vector<8x128xf32>, i32 -> vector<8x128xf32>
    %c4_48 = arith.constant 4 : index
    %c0_49 = arith.constant 0 : index
    %75 = vector.load %arg4[%c4_48, %c0_49] : memref<9x128xf32, #tpu.memory_space<vmem>>, vector<1x128xf32>
    %76 = vector.broadcast %75 : vector<1x128xf32> to vector<8x128xf32>
    %77 = arith.mulf %74, %76 : vector<8x128xf32>
    %c32_50 = arith.constant 32 : index
    %c0_51 = arith.constant 0 : index
    %78 = vector.load %arg16[%c32_50, %c0_51] : memref<144x128xf32, #tpu.memory_space<vmem>>, vector<8x128xf32>
    tpu.vector_store %arg16[%c32_50, %c0_51], %77 {strides = array<i32>} : memref<144x128xf32, #tpu.memory_space<vmem>>, vector<8x128xf32>,
    %c127_i32 = arith.constant 127 : i32
    %79 = tpu.dynamic_rotate %7 by %c127_i32 dim 1 : vector<8x128xf32>, i32 -> vector<8x128xf32>
    %c5_52 = arith.constant 5 : index
    %c0_53 = arith.constant 0 : index
    %80 = vector.load %arg4[%c5_52, %c0_53] : memref<9x128xf32, #tpu.memory_space<vmem>>, vector<1x128xf32>
    %81 = vector.broadcast %80 : vector<1x128xf32> to vector<8x128xf32>
    %82 = arith.mulf %79, %81 : vector<8x128xf32>
    %c40_54 = arith.constant 40 : index
    %c0_55 = arith.constant 0 : index
    %83 = vector.load %arg16[%c40_54, %c0_55] : memref<144x128xf32, #tpu.memory_space<vmem>>, vector<8x128xf32>
    tpu.vector_store %arg16[%c40_54, %c0_55], %82 {strides = array<i32>} : memref<144x128xf32, #tpu.memory_space<vmem>>, vector<8x128xf32>,
    %c121_i32 = arith.constant 121 : i32
    %84 = tpu.dynamic_rotate %7 by %c121_i32 dim 1 : vector<8x128xf32>, i32 -> vector<8x128xf32>
    %c6_56 = arith.constant 6 : index
    %c0_57 = arith.constant 0 : index
    %85 = vector.load %arg4[%c6_56, %c0_57] : memref<9x128xf32, #tpu.memory_space<vmem>>, vector<1x128xf32>
    %86 = vector.broadcast %85 : vector<1x128xf32> to vector<8x128xf32>
    %87 = arith.mulf %84, %86 : vector<8x128xf32>
    %c48_58 = arith.constant 48 : index
    %c0_59 = arith.constant 0 : index
    %88 = vector.load %arg16[%c48_58, %c0_59] : memref<144x128xf32, #tpu.memory_space<vmem>>, vector<8x128xf32>
    tpu.vector_store %arg16[%c48_58, %c0_59], %87 {strides = array<i32>} : memref<144x128xf32, #tpu.memory_space<vmem>>, vector<8x128xf32>,
    %c120_i32 = arith.constant 120 : i32
    %89 = tpu.dynamic_rotate %7 by %c120_i32 dim 1 : vector<8x128xf32>, i32 -> vector<8x128xf32>
    %c7_60 = arith.constant 7 : index
    %c0_61 = arith.constant 0 : index
    %90 = vector.load %arg4[%c7_60, %c0_61] : memref<9x128xf32, #tpu.memory_space<vmem>>, vector<1x128xf32>
    %91 = vector.broadcast %90 : vector<1x128xf32> to vector<8x128xf32>
    %92 = arith.mulf %89, %91 : vector<8x128xf32>
    %c56_62 = arith.constant 56 : index
    %c0_63 = arith.constant 0 : index
    %93 = vector.load %arg16[%c56_62, %c0_63] : memref<144x128xf32, #tpu.memory_space<vmem>>, vector<8x128xf32>
    tpu.vector_store %arg16[%c56_62, %c0_63], %92 {strides = array<i32>} : memref<144x128xf32, #tpu.memory_space<vmem>>, vector<8x128xf32>,
    %c119_i32 = arith.constant 119 : i32
    %94 = tpu.dynamic_rotate %7 by %c119_i32 dim 1 : vector<8x128xf32>, i32 -> vector<8x128xf32>
    %c8_64 = arith.constant 8 : index
    %c0_65 = arith.constant 0 : index
    %95 = vector.load %arg4[%c8_64, %c0_65] : memref<9x128xf32, #tpu.memory_space<vmem>>, vector<1x128xf32>
    %96 = vector.broadcast %95 : vector<1x128xf32> to vector<8x128xf32>
    %97 = arith.mulf %94, %96 : vector<8x128xf32>
    %c64_66 = arith.constant 64 : index
    %c0_67 = arith.constant 0 : index
    %98 = vector.load %arg16[%c64_66, %c0_67] : memref<144x128xf32, #tpu.memory_space<vmem>>, vector<8x128xf32>
    tpu.vector_store %arg16[%c64_66, %c0_67], %97 {strides = array<i32>} : memref<144x128xf32, #tpu.memory_space<vmem>>, vector<8x128xf32>,
    %c9_i32_68 = arith.constant 9 : i32
    %99 = tpu.dynamic_rotate %8 by %c9_i32_68 dim 1 : vector<8x128xf32>, i32 -> vector<8x128xf32>
    %c0_69 = arith.constant 0 : index
    %c0_70 = arith.constant 0 : index
    %100 = vector.load %arg4[%c0_69, %c0_70] : memref<9x128xf32, #tpu.memory_space<vmem>>, vector<1x128xf32>
    %101 = vector.broadcast %100 : vector<1x128xf32> to vector<8x128xf32>
    %102 = arith.mulf %99, %101 : vector<8x128xf32>
    %c72 = arith.constant 72 : index
    %c0_71 = arith.constant 0 : index
    %103 = vector.load %arg16[%c72, %c0_71] : memref<144x128xf32, #tpu.memory_space<vmem>>, vector<8x128xf32>
    tpu.vector_store %arg16[%c72, %c0_71], %102 {strides = array<i32>} : memref<144x128xf32, #tpu.memory_space<vmem>>, vector<8x128xf32>,
    %c8_i32_72 = arith.constant 8 : i32
    %104 = tpu.dynamic_rotate %8 by %c8_i32_72 dim 1 : vector<8x128xf32>, i32 -> vector<8x128xf32>
    %c1_73 = arith.constant 1 : index
    %c0_74 = arith.constant 0 : index
    %105 = vector.load %arg4[%c1_73, %c0_74] : memref<9x128xf32, #tpu.memory_space<vmem>>, vector<1x128xf32>
    %106 = vector.broadcast %105 : vector<1x128xf32> to vector<8x128xf32>
    %107 = arith.mulf %104, %106 : vector<8x128xf32>
    %c80 = arith.constant 80 : index
    %c0_75 = arith.constant 0 : index
    %108 = vector.load %arg16[%c80, %c0_75] : memref<144x128xf32, #tpu.memory_space<vmem>>, vector<8x128xf32>
    tpu.vector_store %arg16[%c80, %c0_75], %107 {strides = array<i32>} : memref<144x128xf32, #tpu.memory_space<vmem>>, vector<8x128xf32>,
    %c7_i32_76 = arith.constant 7 : i32
    %109 = tpu.dynamic_rotate %8 by %c7_i32_76 dim 1 : vector<8x128xf32>, i32 -> vector<8x128xf32>
    %c2_77 = arith.constant 2 : index
    %c0_78 = arith.constant 0 : index
    %110 = vector.load %arg4[%c2_77, %c0_78] : memref<9x128xf32, #tpu.memory_space<vmem>>, vector<1x128xf32>
    %111 = vector.broadcast %110 : vector<1x128xf32> to vector<8x128xf32>
    %112 = arith.mulf %109, %111 : vector<8x128xf32>
    %c88 = arith.constant 88 : index
    %c0_79 = arith.constant 0 : index
    %113 = vector.load %arg16[%c88, %c0_79] : memref<144x128xf32, #tpu.memory_space<vmem>>, vector<8x128xf32>
    tpu.vector_store %arg16[%c88, %c0_79], %112 {strides = array<i32>} : memref<144x128xf32, #tpu.memory_space<vmem>>, vector<8x128xf32>,
    %c1_i32_80 = arith.constant 1 : i32
    %114 = tpu.dynamic_rotate %8 by %c1_i32_80 dim 1 : vector<8x128xf32>, i32 -> vector<8x128xf32>
    %c3_81 = arith.constant 3 : index
    %c0_82 = arith.constant 0 : index
    %115 = vector.load %arg4[%c3_81, %c0_82] : memref<9x128xf32, #tpu.memory_space<vmem>>, vector<1x128xf32>
    %116 = vector.broadcast %115 : vector<1x128xf32> to vector<8x128xf32>
    %117 = arith.mulf %114, %116 : vector<8x128xf32>
    %c96 = arith.constant 96 : index
    %c0_83 = arith.constant 0 : index
    %118 = vector.load %arg16[%c96, %c0_83] : memref<144x128xf32, #tpu.memory_space<vmem>>, vector<8x128xf32>
    tpu.vector_store %arg16[%c96, %c0_83], %117 {strides = array<i32>} : memref<144x128xf32, #tpu.memory_space<vmem>>, vector<8x128xf32>,
    %c0_i32_84 = arith.constant 0 : i32
    %119 = tpu.dynamic_rotate %8 by %c0_i32_84 dim 1 : vector<8x128xf32>, i32 -> vector<8x128xf32>
    %c4_85 = arith.constant 4 : index
    %c0_86 = arith.constant 0 : index
    %120 = vector.load %arg4[%c4_85, %c0_86] : memref<9x128xf32, #tpu.memory_space<vmem>>, vector<1x128xf32>
    %121 = vector.broadcast %120 : vector<1x128xf32> to vector<8x128xf32>
    %122 = arith.mulf %119, %121 : vector<8x128xf32>
    %c104 = arith.constant 104 : index
    %c0_87 = arith.constant 0 : index
    %123 = vector.load %arg16[%c104, %c0_87] : memref<144x128xf32, #tpu.memory_space<vmem>>, vector<8x128xf32>
    tpu.vector_store %arg16[%c104, %c0_87], %122 {strides = array<i32>} : memref<144x128xf32, #tpu.memory_space<vmem>>, vector<8x128xf32>,
    %c127_i32_88 = arith.constant 127 : i32
    %124 = tpu.dynamic_rotate %8 by %c127_i32_88 dim 1 : vector<8x128xf32>, i32 -> vector<8x128xf32>
    %c5_89 = arith.constant 5 : index
    %c0_90 = arith.constant 0 : index
    %125 = vector.load %arg4[%c5_89, %c0_90] : memref<9x128xf32, #tpu.memory_space<vmem>>, vector<1x128xf32>
    %126 = vector.broadcast %125 : vector<1x128xf32> to vector<8x128xf32>
    %127 = arith.mulf %124, %126 : vector<8x128xf32>
    %c112 = arith.constant 112 : index
    %c0_91 = arith.constant 0 : index
    %128 = vector.load %arg16[%c112, %c0_91] : memref<144x128xf32, #tpu.memory_space<vmem>>, vector<8x128xf32>
    tpu.vector_store %arg16[%c112, %c0_91], %127 {strides = array<i32>} : memref<144x128xf32, #tpu.memory_space<vmem>>, vector<8x128xf32>,
    %c121_i32_92 = arith.constant 121 : i32
    %129 = tpu.dynamic_rotate %8 by %c121_i32_92 dim 1 : vector<8x128xf32>, i32 -> vector<8x128xf32>
    %c6_93 = arith.constant 6 : index
    %c0_94 = arith.constant 0 : index
    %130 = vector.load %arg4[%c6_93, %c0_94] : memref<9x128xf32, #tpu.memory_space<vmem>>, vector<1x128xf32>
    %131 = vector.broadcast %130 : vector<1x128xf32> to vector<8x128xf32>
    %132 = arith.mulf %129, %131 : vector<8x128xf32>
    %c120 = arith.constant 120 : index
    %c0_95 = arith.constant 0 : index
    %133 = vector.load %arg16[%c120, %c0_95] : memref<144x128xf32, #tpu.memory_space<vmem>>, vector<8x128xf32>
    tpu.vector_store %arg16[%c120, %c0_95], %132 {strides = array<i32>} : memref<144x128xf32, #tpu.memory_space<vmem>>, vector<8x128xf32>,
    %c120_i32_96 = arith.constant 120 : i32
    %134 = tpu.dynamic_rotate %8 by %c120_i32_96 dim 1 : vector<8x128xf32>, i32 -> vector<8x128xf32>
    %c7_97 = arith.constant 7 : index
    %c0_98 = arith.constant 0 : index
    %135 = vector.load %arg4[%c7_97, %c0_98] : memref<9x128xf32, #tpu.memory_space<vmem>>, vector<1x128xf32>
    %136 = vector.broadcast %135 : vector<1x128xf32> to vector<8x128xf32>
    %137 = arith.mulf %134, %136 : vector<8x128xf32>
    %c128 = arith.constant 128 : index
    %c0_99 = arith.constant 0 : index
    %138 = vector.load %arg16[%c128, %c0_99] : memref<144x128xf32, #tpu.memory_space<vmem>>, vector<8x128xf32>
    tpu.vector_store %arg16[%c128, %c0_99], %137 {strides = array<i32>} : memref<144x128xf32, #tpu.memory_space<vmem>>, vector<8x128xf32>,
    %c119_i32_100 = arith.constant 119 : i32
    %139 = tpu.dynamic_rotate %8 by %c119_i32_100 dim 1 : vector<8x128xf32>, i32 -> vector<8x128xf32>
    %c8_101 = arith.constant 8 : index
    %c0_102 = arith.constant 0 : index
    %140 = vector.load %arg4[%c8_101, %c0_102] : memref<9x128xf32, #tpu.memory_space<vmem>>, vector<1x128xf32>
    %141 = vector.broadcast %140 : vector<1x128xf32> to vector<8x128xf32>
    %142 = arith.mulf %139, %141 : vector<8x128xf32>
    %c136 = arith.constant 136 : index
    %c0_103 = arith.constant 0 : index
    %143 = vector.load %arg16[%c136, %c0_103] : memref<144x128xf32, #tpu.memory_space<vmem>>, vector<8x128xf32>
    tpu.vector_store %arg16[%c136, %c0_103], %142 {strides = array<i32>} : memref<144x128xf32, #tpu.memory_space<vmem>>, vector<8x128xf32>,
    %c0_104 = arith.constant 0 : index
    %c0_105 = arith.constant 0 : index
    %144 = vector.load %arg8[%c0_104, %c0_105] : memref<16x144xf32, #tpu.memory_space<vmem>>, vector<16x144xf32>
    %c0_106 = arith.constant 0 : index
    %c0_107 = arith.constant 0 : index
    %145 = vector.load %arg16[%c0_106, %c0_107] : memref<144x128xf32, #tpu.memory_space<vmem>>, vector<144x128xf32>
    %cst_108 = arith.constant dense<0.000000e+00> : vector<16x128xf32>
    %146 = tpu.matmul %144, %145, %cst_108 {dimension_numbers = #tpu.dot_dimension_numbers<[1], [0], [0], [1], [0, 0, 1, 1], [], []>} : vector<16x144xf32>, vector<144x128xf32>, vector<16x128xf32> -> vector<16x128xf32>
    %c0_109 = arith.constant 0 : index
    %c0_110 = arith.constant 0 : index
    %147 = vector.load %arg10[%c0_109, %c0_110] : memref<16x1xf32, #tpu.memory_space<vmem>>, vector<16x1xf32>
    %148 = vector.broadcast %147 : vector<16x1xf32> to vector<16x128xf32>
    %149 = arith.addf %146, %148 : vector<16x128xf32>
    %150 = vector.extract_strided_slice %149 {offsets = [8, 0], sizes = [8, 128], strides = [1, 1]} : vector<16x128xf32> to vector<8x128xf32>
    %cst_111 = arith.constant 0.000000e+00 : f32
    %151 = vector.broadcast %cst_111 : f32 to vector<8x128xf32>
    %152 = arith.maximumf %150, %151 : vector<8x128xf32>
    %c0_112 = arith.constant 0 : index
    %c0_113 = arith.constant 0 : index
    %153 = vector.load %arg7[%c0_112, %c0_113] : memref<8x72xf32, #tpu.memory_space<vmem>>, vector<8x72xf32>
    %c0_114 = arith.constant 0 : index
    %c0_115 = arith.constant 0 : index
    %154 = vector.load %arg15[%c0_114, %c0_115] : memref<72x512xf32, #tpu.memory_space<vmem>>, vector<72x512xf32>
    %cst_116 = arith.constant dense<0.000000e+00> : vector<8x512xf32>
    %155 = tpu.matmul %153, %154, %cst_116 {dimension_numbers = #tpu.dot_dimension_numbers<[1], [0], [0], [1], [0, 0, 1, 1], [], []>} : vector<8x72xf32>, vector<72x512xf32>, vector<8x512xf32> -> vector<8x512xf32>
    %156 = vector.extract_strided_slice %149 {offsets = [0, 0], sizes = [8, 128], strides = [1, 1]} : vector<16x128xf32> to vector<8x128xf32>
    %cst_117 = arith.constant dense<0.000000e+00> : vector<8x512xf32>
    %157 = tpu.matmul %156, %3, %cst_117 {dimension_numbers = #tpu.dot_dimension_numbers<[1], [0], [0], [1], [0, 0, 1, 1], [], []>} : vector<8x128xf32>, vector<128x512xf32>, vector<8x512xf32> -> vector<8x512xf32>
    %158 = arith.addf %155, %157 : vector<8x512xf32>
    %c0_118 = arith.constant 0 : index
    %c0_119 = arith.constant 0 : index
    %159 = vector.load %arg9[%c0_118, %c0_119] : memref<8x1xf32, #tpu.memory_space<vmem>>, vector<8x1xf32>
    %160 = vector.broadcast %159 : vector<8x1xf32> to vector<8x512xf32>
    %161 = arith.addf %158, %160 : vector<8x512xf32>
    %cst_120 = arith.constant 0.000000e+00 : f32
    %162 = vector.broadcast %cst_120 : f32 to vector<8x512xf32>
    %163 = arith.maximumf %161, %162 : vector<8x512xf32>
    %cst_121 = arith.constant dense<0.000000e+00> : vector<8x128xf32>
    %164 = tpu.matmul %163, %1, %cst_121 {dimension_numbers = #tpu.dot_dimension_numbers<[1], [0], [0], [1], [0, 0, 1, 1], [], []>} : vector<8x512xf32>, vector<512x128xf32>, vector<8x128xf32> -> vector<8x128xf32>
    %c17_i32_122 = arith.constant 17 : i32
    %165 = tpu.dynamic_rotate %163 by %c17_i32_122 dim 1 : vector<8x512xf32>, i32 -> vector<8x512xf32>
    %c0_123 = arith.constant 0 : index
    %c0_124 = arith.constant 0 : index
    %166 = vector.load %arg3[%c0_123, %c0_124] : memref<9x512xf32, #tpu.memory_space<vmem>>, vector<1x512xf32>
    %167 = vector.broadcast %166 : vector<1x512xf32> to vector<8x512xf32>
    %168 = arith.mulf %165, %167 : vector<8x512xf32>
    %c0_125 = arith.constant 0 : index
    %c0_126 = arith.constant 0 : index
    %169 = vector.load %arg15[%c0_125, %c0_126] : memref<72x512xf32, #tpu.memory_space<vmem>>, vector<8x512xf32>
    tpu.vector_store %arg15[%c0_125, %c0_126], %168 {strides = array<i32>} : memref<72x512xf32, #tpu.memory_space<vmem>>, vector<8x512xf32>,
    %c16_i32_127 = arith.constant 16 : i32
    %170 = tpu.dynamic_rotate %163 by %c16_i32_127 dim 1 : vector<8x512xf32>, i32 -> vector<8x512xf32>
    %c1_128 = arith.constant 1 : index
    %c0_129 = arith.constant 0 : index
    %171 = vector.load %arg3[%c1_128, %c0_129] : memref<9x512xf32, #tpu.memory_space<vmem>>, vector<1x512xf32>
    %172 = vector.broadcast %171 : vector<1x512xf32> to vector<8x512xf32>
    %173 = arith.mulf %170, %172 : vector<8x512xf32>
    %c8_130 = arith.constant 8 : index
    %c0_131 = arith.constant 0 : index
    %174 = vector.load %arg15[%c8_130, %c0_131] : memref<72x512xf32, #tpu.memory_space<vmem>>, vector<8x512xf32>
    tpu.vector_store %arg15[%c8_130, %c0_131], %173 {strides = array<i32>} : memref<72x512xf32, #tpu.memory_space<vmem>>, vector<8x512xf32>,
    %c15_i32_132 = arith.constant 15 : i32
    %175 = tpu.dynamic_rotate %163 by %c15_i32_132 dim 1 : vector<8x512xf32>, i32 -> vector<8x512xf32>
    %c2_133 = arith.constant 2 : index
    %c0_134 = arith.constant 0 : index
    %176 = vector.load %arg3[%c2_133, %c0_134] : memref<9x512xf32, #tpu.memory_space<vmem>>, vector<1x512xf32>
    %177 = vector.broadcast %176 : vector<1x512xf32> to vector<8x512xf32>
    %178 = arith.mulf %175, %177 : vector<8x512xf32>
    %c16_135 = arith.constant 16 : index
    %c0_136 = arith.constant 0 : index
    %179 = vector.load %arg15[%c16_135, %c0_136] : memref<72x512xf32, #tpu.memory_space<vmem>>, vector<8x512xf32>
    tpu.vector_store %arg15[%c16_135, %c0_136], %178 {strides = array<i32>} : memref<72x512xf32, #tpu.memory_space<vmem>>, vector<8x512xf32>,
    %c1_i32_137 = arith.constant 1 : i32
    %180 = tpu.dynamic_rotate %163 by %c1_i32_137 dim 1 : vector<8x512xf32>, i32 -> vector<8x512xf32>
    %c3_138 = arith.constant 3 : index
    %c0_139 = arith.constant 0 : index
    %181 = vector.load %arg3[%c3_138, %c0_139] : memref<9x512xf32, #tpu.memory_space<vmem>>, vector<1x512xf32>
    %182 = vector.broadcast %181 : vector<1x512xf32> to vector<8x512xf32>
    %183 = arith.mulf %180, %182 : vector<8x512xf32>
    %c24_140 = arith.constant 24 : index
    %c0_141 = arith.constant 0 : index
    %184 = vector.load %arg15[%c24_140, %c0_141] : memref<72x512xf32, #tpu.memory_space<vmem>>, vector<8x512xf32>
    tpu.vector_store %arg15[%c24_140, %c0_141], %183 {strides = array<i32>} : memref<72x512xf32, #tpu.memory_space<vmem>>, vector<8x512xf32>,
    %c0_i32_142 = arith.constant 0 : i32
    %185 = tpu.dynamic_rotate %163 by %c0_i32_142 dim 1 : vector<8x512xf32>, i32 -> vector<8x512xf32>
    %c4_143 = arith.constant 4 : index
    %c0_144 = arith.constant 0 : index
    %186 = vector.load %arg3[%c4_143, %c0_144] : memref<9x512xf32, #tpu.memory_space<vmem>>, vector<1x512xf32>
    %187 = vector.broadcast %186 : vector<1x512xf32> to vector<8x512xf32>
    %188 = arith.mulf %185, %187 : vector<8x512xf32>
    %c32_145 = arith.constant 32 : index
    %c0_146 = arith.constant 0 : index
    %189 = vector.load %arg15[%c32_145, %c0_146] : memref<72x512xf32, #tpu.memory_space<vmem>>, vector<8x512xf32>
    tpu.vector_store %arg15[%c32_145, %c0_146], %188 {strides = array<i32>} : memref<72x512xf32, #tpu.memory_space<vmem>>, vector<8x512xf32>,
    %c511_i32_147 = arith.constant 511 : i32
    %190 = tpu.dynamic_rotate %163 by %c511_i32_147 dim 1 : vector<8x512xf32>, i32 -> vector<8x512xf32>
    %c5_148 = arith.constant 5 : index
    %c0_149 = arith.constant 0 : index
    %191 = vector.load %arg3[%c5_148, %c0_149] : memref<9x512xf32, #tpu.memory_space<vmem>>, vector<1x512xf32>
    %192 = vector.broadcast %191 : vector<1x512xf32> to vector<8x512xf32>
    %193 = arith.mulf %190, %192 : vector<8x512xf32>
    %c40_150 = arith.constant 40 : index
    %c0_151 = arith.constant 0 : index
    %194 = vector.load %arg15[%c40_150, %c0_151] : memref<72x512xf32, #tpu.memory_space<vmem>>, vector<8x512xf32>
    tpu.vector_store %arg15[%c40_150, %c0_151], %193 {strides = array<i32>} : memref<72x512xf32, #tpu.memory_space<vmem>>, vector<8x512xf32>,
    %c497_i32_152 = arith.constant 497 : i32
    %195 = tpu.dynamic_rotate %163 by %c497_i32_152 dim 1 : vector<8x512xf32>, i32 -> vector<8x512xf32>
    %c6_153 = arith.constant 6 : index
    %c0_154 = arith.constant 0 : index
    %196 = vector.load %arg3[%c6_153, %c0_154] : memref<9x512xf32, #tpu.memory_space<vmem>>, vector<1x512xf32>
    %197 = vector.broadcast %196 : vector<1x512xf32> to vector<8x512xf32>
    %198 = arith.mulf %195, %197 : vector<8x512xf32>
    %c48_155 = arith.constant 48 : index
    %c0_156 = arith.constant 0 : index
    %199 = vector.load %arg15[%c48_155, %c0_156] : memref<72x512xf32, #tpu.memory_space<vmem>>, vector<8x512xf32>
    tpu.vector_store %arg15[%c48_155, %c0_156], %198 {strides = array<i32>} : memref<72x512xf32, #tpu.memory_space<vmem>>, vector<8x512xf32>,
    %c496_i32_157 = arith.constant 496 : i32
    %200 = tpu.dynamic_rotate %163 by %c496_i32_157 dim 1 : vector<8x512xf32>, i32 -> vector<8x512xf32>
    %c7_158 = arith.constant 7 : index
    %c0_159 = arith.constant 0 : index
    %201 = vector.load %arg3[%c7_158, %c0_159] : memref<9x512xf32, #tpu.memory_space<vmem>>, vector<1x512xf32>
    %202 = vector.broadcast %201 : vector<1x512xf32> to vector<8x512xf32>
    %203 = arith.mulf %200, %202 : vector<8x512xf32>
    %c56_160 = arith.constant 56 : index
    %c0_161 = arith.constant 0 : index
    %204 = vector.load %arg15[%c56_160, %c0_161] : memref<72x512xf32, #tpu.memory_space<vmem>>, vector<8x512xf32>
    tpu.vector_store %arg15[%c56_160, %c0_161], %203 {strides = array<i32>} : memref<72x512xf32, #tpu.memory_space<vmem>>, vector<8x512xf32>,
    %c495_i32_162 = arith.constant 495 : i32
    %205 = tpu.dynamic_rotate %163 by %c495_i32_162 dim 1 : vector<8x512xf32>, i32 -> vector<8x512xf32>
    %c8_163 = arith.constant 8 : index
    %c0_164 = arith.constant 0 : index
    %206 = vector.load %arg3[%c8_163, %c0_164] : memref<9x512xf32, #tpu.memory_space<vmem>>, vector<1x512xf32>
    %207 = vector.broadcast %206 : vector<1x512xf32> to vector<8x512xf32>
    %208 = arith.mulf %205, %207 : vector<8x512xf32>
    %c64_165 = arith.constant 64 : index
    %c0_166 = arith.constant 0 : index
    %209 = vector.load %arg15[%c64_165, %c0_166] : memref<72x512xf32, #tpu.memory_space<vmem>>, vector<8x512xf32>
    tpu.vector_store %arg15[%c64_165, %c0_166], %208 {strides = array<i32>} : memref<72x512xf32, #tpu.memory_space<vmem>>, vector<8x512xf32>,
    %c9_i32_167 = arith.constant 9 : i32
    %210 = tpu.dynamic_rotate %152 by %c9_i32_167 dim 1 : vector<8x128xf32>, i32 -> vector<8x128xf32>
    %c0_168 = arith.constant 0 : index
    %c0_169 = arith.constant 0 : index
    %211 = vector.load %arg4[%c0_168, %c0_169] : memref<9x128xf32, #tpu.memory_space<vmem>>, vector<1x128xf32>
    %212 = vector.broadcast %211 : vector<1x128xf32> to vector<8x128xf32>
    %213 = arith.mulf %210, %212 : vector<8x128xf32>
    %c0_170 = arith.constant 0 : index
    %c0_171 = arith.constant 0 : index
    %214 = vector.load %arg16[%c0_170, %c0_171] : memref<144x128xf32, #tpu.memory_space<vmem>>, vector<8x128xf32>
    tpu.vector_store %arg16[%c0_170, %c0_171], %213 {strides = array<i32>} : memref<144x128xf32, #tpu.memory_space<vmem>>, vector<8x128xf32>,
    %c8_i32_172 = arith.constant 8 : i32
    %215 = tpu.dynamic_rotate %152 by %c8_i32_172 dim 1 : vector<8x128xf32>, i32 -> vector<8x128xf32>
    %c1_173 = arith.constant 1 : index
    %c0_174 = arith.constant 0 : index
    %216 = vector.load %arg4[%c1_173, %c0_174] : memref<9x128xf32, #tpu.memory_space<vmem>>, vector<1x128xf32>
    %217 = vector.broadcast %216 : vector<1x128xf32> to vector<8x128xf32>
    %218 = arith.mulf %215, %217 : vector<8x128xf32>
    %c8_175 = arith.constant 8 : index
    %c0_176 = arith.constant 0 : index
    %219 = vector.load %arg16[%c8_175, %c0_176] : memref<144x128xf32, #tpu.memory_space<vmem>>, vector<8x128xf32>
    tpu.vector_store %arg16[%c8_175, %c0_176], %218 {strides = array<i32>} : memref<144x128xf32, #tpu.memory_space<vmem>>, vector<8x128xf32>,
    %c7_i32_177 = arith.constant 7 : i32
    %220 = tpu.dynamic_rotate %152 by %c7_i32_177 dim 1 : vector<8x128xf32>, i32 -> vector<8x128xf32>
    %c2_178 = arith.constant 2 : index
    %c0_179 = arith.constant 0 : index
    %221 = vector.load %arg4[%c2_178, %c0_179] : memref<9x128xf32, #tpu.memory_space<vmem>>, vector<1x128xf32>
    %222 = vector.broadcast %221 : vector<1x128xf32> to vector<8x128xf32>
    %223 = arith.mulf %220, %222 : vector<8x128xf32>
    %c16_180 = arith.constant 16 : index
    %c0_181 = arith.constant 0 : index
    %224 = vector.load %arg16[%c16_180, %c0_181] : memref<144x128xf32, #tpu.memory_space<vmem>>, vector<8x128xf32>
    tpu.vector_store %arg16[%c16_180, %c0_181], %223 {strides = array<i32>} : memref<144x128xf32, #tpu.memory_space<vmem>>, vector<8x128xf32>,
    %c1_i32_182 = arith.constant 1 : i32
    %225 = tpu.dynamic_rotate %152 by %c1_i32_182 dim 1 : vector<8x128xf32>, i32 -> vector<8x128xf32>
    %c3_183 = arith.constant 3 : index
    %c0_184 = arith.constant 0 : index
    %226 = vector.load %arg4[%c3_183, %c0_184] : memref<9x128xf32, #tpu.memory_space<vmem>>, vector<1x128xf32>
    %227 = vector.broadcast %226 : vector<1x128xf32> to vector<8x128xf32>
    %228 = arith.mulf %225, %227 : vector<8x128xf32>
    %c24_185 = arith.constant 24 : index
    %c0_186 = arith.constant 0 : index
    %229 = vector.load %arg16[%c24_185, %c0_186] : memref<144x128xf32, #tpu.memory_space<vmem>>, vector<8x128xf32>
    tpu.vector_store %arg16[%c24_185, %c0_186], %228 {strides = array<i32>} : memref<144x128xf32, #tpu.memory_space<vmem>>, vector<8x128xf32>,
    %c0_i32_187 = arith.constant 0 : i32
    %230 = tpu.dynamic_rotate %152 by %c0_i32_187 dim 1 : vector<8x128xf32>, i32 -> vector<8x128xf32>
    %c4_188 = arith.constant 4 : index
    %c0_189 = arith.constant 0 : index
    %231 = vector.load %arg4[%c4_188, %c0_189] : memref<9x128xf32, #tpu.memory_space<vmem>>, vector<1x128xf32>
    %232 = vector.broadcast %231 : vector<1x128xf32> to vector<8x128xf32>
    %233 = arith.mulf %230, %232 : vector<8x128xf32>
    %c32_190 = arith.constant 32 : index
    %c0_191 = arith.constant 0 : index
    %234 = vector.load %arg16[%c32_190, %c0_191] : memref<144x128xf32, #tpu.memory_space<vmem>>, vector<8x128xf32>
    tpu.vector_store %arg16[%c32_190, %c0_191], %233 {strides = array<i32>} : memref<144x128xf32, #tpu.memory_space<vmem>>, vector<8x128xf32>,
    %c127_i32_192 = arith.constant 127 : i32
    %235 = tpu.dynamic_rotate %152 by %c127_i32_192 dim 1 : vector<8x128xf32>, i32 -> vector<8x128xf32>
    %c5_193 = arith.constant 5 : index
    %c0_194 = arith.constant 0 : index
    %236 = vector.load %arg4[%c5_193, %c0_194] : memref<9x128xf32, #tpu.memory_space<vmem>>, vector<1x128xf32>
    %237 = vector.broadcast %236 : vector<1x128xf32> to vector<8x128xf32>
    %238 = arith.mulf %235, %237 : vector<8x128xf32>
    %c40_195 = arith.constant 40 : index
    %c0_196 = arith.constant 0 : index
    %239 = vector.load %arg16[%c40_195, %c0_196] : memref<144x128xf32, #tpu.memory_space<vmem>>, vector<8x128xf32>
    tpu.vector_store %arg16[%c40_195, %c0_196], %238 {strides = array<i32>} : memref<144x128xf32, #tpu.memory_space<vmem>>, vector<8x128xf32>,
    %c121_i32_197 = arith.constant 121 : i32
    %240 = tpu.dynamic_rotate %152 by %c121_i32_197 dim 1 : vector<8x128xf32>, i32 -> vector<8x128xf32>
    %c6_198 = arith.constant 6 : index
    %c0_199 = arith.constant 0 : index
    %241 = vector.load %arg4[%c6_198, %c0_199] : memref<9x128xf32, #tpu.memory_space<vmem>>, vector<1x128xf32>
    %242 = vector.broadcast %241 : vector<1x128xf32> to vector<8x128xf32>
    %243 = arith.mulf %240, %242 : vector<8x128xf32>
    %c48_200 = arith.constant 48 : index
    %c0_201 = arith.constant 0 : index
    %244 = vector.load %arg16[%c48_200, %c0_201] : memref<144x128xf32, #tpu.memory_space<vmem>>, vector<8x128xf32>
    tpu.vector_store %arg16[%c48_200, %c0_201], %243 {strides = array<i32>} : memref<144x128xf32, #tpu.memory_space<vmem>>, vector<8x128xf32>,
    %c120_i32_202 = arith.constant 120 : i32
    %245 = tpu.dynamic_rotate %152 by %c120_i32_202 dim 1 : vector<8x128xf32>, i32 -> vector<8x128xf32>
    %c7_203 = arith.constant 7 : index
    %c0_204 = arith.constant 0 : index
    %246 = vector.load %arg4[%c7_203, %c0_204] : memref<9x128xf32, #tpu.memory_space<vmem>>, vector<1x128xf32>
    %247 = vector.broadcast %246 : vector<1x128xf32> to vector<8x128xf32>
    %248 = arith.mulf %245, %247 : vector<8x128xf32>
    %c56_205 = arith.constant 56 : index
    %c0_206 = arith.constant 0 : index
    %249 = vector.load %arg16[%c56_205, %c0_206] : memref<144x128xf32, #tpu.memory_space<vmem>>, vector<8x128xf32>
    tpu.vector_store %arg16[%c56_205, %c0_206], %248 {strides = array<i32>} : memref<144x128xf32, #tpu.memory_space<vmem>>, vector<8x128xf32>,
    %c119_i32_207 = arith.constant 119 : i32
    %250 = tpu.dynamic_rotate %152 by %c119_i32_207 dim 1 : vector<8x128xf32>, i32 -> vector<8x128xf32>
    %c8_208 = arith.constant 8 : index
    %c0_209 = arith.constant 0 : index
    %251 = vector.load %arg4[%c8_208, %c0_209] : memref<9x128xf32, #tpu.memory_space<vmem>>, vector<1x128xf32>
    %252 = vector.broadcast %251 : vector<1x128xf32> to vector<8x128xf32>
    %253 = arith.mulf %250, %252 : vector<8x128xf32>
    %c64_210 = arith.constant 64 : index
    %c0_211 = arith.constant 0 : index
    %254 = vector.load %arg16[%c64_210, %c0_211] : memref<144x128xf32, #tpu.memory_space<vmem>>, vector<8x128xf32>
    tpu.vector_store %arg16[%c64_210, %c0_211], %253 {strides = array<i32>} : memref<144x128xf32, #tpu.memory_space<vmem>>, vector<8x128xf32>,
    %c9_i32_212 = arith.constant 9 : i32
    %255 = tpu.dynamic_rotate %164 by %c9_i32_212 dim 1 : vector<8x128xf32>, i32 -> vector<8x128xf32>
    %c0_213 = arith.constant 0 : index
    %c0_214 = arith.constant 0 : index
    %256 = vector.load %arg4[%c0_213, %c0_214] : memref<9x128xf32, #tpu.memory_space<vmem>>, vector<1x128xf32>
    %257 = vector.broadcast %256 : vector<1x128xf32> to vector<8x128xf32>
    %258 = arith.mulf %255, %257 : vector<8x128xf32>
    %c72_215 = arith.constant 72 : index
    %c0_216 = arith.constant 0 : index
    %259 = vector.load %arg16[%c72_215, %c0_216] : memref<144x128xf32, #tpu.memory_space<vmem>>, vector<8x128xf32>
    tpu.vector_store %arg16[%c72_215, %c0_216], %258 {strides = array<i32>} : memref<144x128xf32, #tpu.memory_space<vmem>>, vector<8x128xf32>,
    %c8_i32_217 = arith.constant 8 : i32
    %260 = tpu.dynamic_rotate %164 by %c8_i32_217 dim 1 : vector<8x128xf32>, i32 -> vector<8x128xf32>
    %c1_218 = arith.constant 1 : index
    %c0_219 = arith.constant 0 : index
    %261 = vector.load %arg4[%c1_218, %c0_219] : memref<9x128xf32, #tpu.memory_space<vmem>>, vector<1x128xf32>
    %262 = vector.broadcast %261 : vector<1x128xf32> to vector<8x128xf32>
    %263 = arith.mulf %260, %262 : vector<8x128xf32>
    %c80_220 = arith.constant 80 : index
    %c0_221 = arith.constant 0 : index
    %264 = vector.load %arg16[%c80_220, %c0_221] : memref<144x128xf32, #tpu.memory_space<vmem>>, vector<8x128xf32>
    tpu.vector_store %arg16[%c80_220, %c0_221], %263 {strides = array<i32>} : memref<144x128xf32, #tpu.memory_space<vmem>>, vector<8x128xf32>,
    %c7_i32_222 = arith.constant 7 : i32
    %265 = tpu.dynamic_rotate %164 by %c7_i32_222 dim 1 : vector<8x128xf32>, i32 -> vector<8x128xf32>
    %c2_223 = arith.constant 2 : index
    %c0_224 = arith.constant 0 : index
    %266 = vector.load %arg4[%c2_223, %c0_224] : memref<9x128xf32, #tpu.memory_space<vmem>>, vector<1x128xf32>
    %267 = vector.broadcast %266 : vector<1x128xf32> to vector<8x128xf32>
    %268 = arith.mulf %265, %267 : vector<8x128xf32>
    %c88_225 = arith.constant 88 : index
    %c0_226 = arith.constant 0 : index
    %269 = vector.load %arg16[%c88_225, %c0_226] : memref<144x128xf32, #tpu.memory_space<vmem>>, vector<8x128xf32>
    tpu.vector_store %arg16[%c88_225, %c0_226], %268 {strides = array<i32>} : memref<144x128xf32, #tpu.memory_space<vmem>>, vector<8x128xf32>,
    %c1_i32_227 = arith.constant 1 : i32
    %270 = tpu.dynamic_rotate %164 by %c1_i32_227 dim 1 : vector<8x128xf32>, i32 -> vector<8x128xf32>
    %c3_228 = arith.constant 3 : index
    %c0_229 = arith.constant 0 : index
    %271 = vector.load %arg4[%c3_228, %c0_229] : memref<9x128xf32, #tpu.memory_space<vmem>>, vector<1x128xf32>
    %272 = vector.broadcast %271 : vector<1x128xf32> to vector<8x128xf32>
    %273 = arith.mulf %270, %272 : vector<8x128xf32>
    %c96_230 = arith.constant 96 : index
    %c0_231 = arith.constant 0 : index
    %274 = vector.load %arg16[%c96_230, %c0_231] : memref<144x128xf32, #tpu.memory_space<vmem>>, vector<8x128xf32>
    tpu.vector_store %arg16[%c96_230, %c0_231], %273 {strides = array<i32>} : memref<144x128xf32, #tpu.memory_space<vmem>>, vector<8x128xf32>,
    %c0_i32_232 = arith.constant 0 : i32
    %275 = tpu.dynamic_rotate %164 by %c0_i32_232 dim 1 : vector<8x128xf32>, i32 -> vector<8x128xf32>
    %c4_233 = arith.constant 4 : index
    %c0_234 = arith.constant 0 : index
    %276 = vector.load %arg4[%c4_233, %c0_234] : memref<9x128xf32, #tpu.memory_space<vmem>>, vector<1x128xf32>
    %277 = vector.broadcast %276 : vector<1x128xf32> to vector<8x128xf32>
    %278 = arith.mulf %275, %277 : vector<8x128xf32>
    %c104_235 = arith.constant 104 : index
    %c0_236 = arith.constant 0 : index
    %279 = vector.load %arg16[%c104_235, %c0_236] : memref<144x128xf32, #tpu.memory_space<vmem>>, vector<8x128xf32>
    tpu.vector_store %arg16[%c104_235, %c0_236], %278 {strides = array<i32>} : memref<144x128xf32, #tpu.memory_space<vmem>>, vector<8x128xf32>,
    %c127_i32_237 = arith.constant 127 : i32
    %280 = tpu.dynamic_rotate %164 by %c127_i32_237 dim 1 : vector<8x128xf32>, i32 -> vector<8x128xf32>
    %c5_238 = arith.constant 5 : index
    %c0_239 = arith.constant 0 : index
    %281 = vector.load %arg4[%c5_238, %c0_239] : memref<9x128xf32, #tpu.memory_space<vmem>>, vector<1x128xf32>
    %282 = vector.broadcast %281 : vector<1x128xf32> to vector<8x128xf32>
    %283 = arith.mulf %280, %282 : vector<8x128xf32>
    %c112_240 = arith.constant 112 : index
    %c0_241 = arith.constant 0 : index
    %284 = vector.load %arg16[%c112_240, %c0_241] : memref<144x128xf32, #tpu.memory_space<vmem>>, vector<8x128xf32>
    tpu.vector_store %arg16[%c112_240, %c0_241], %283 {strides = array<i32>} : memref<144x128xf32, #tpu.memory_space<vmem>>, vector<8x128xf32>,
    %c121_i32_242 = arith.constant 121 : i32
    %285 = tpu.dynamic_rotate %164 by %c121_i32_242 dim 1 : vector<8x128xf32>, i32 -> vector<8x128xf32>
    %c6_243 = arith.constant 6 : index
    %c0_244 = arith.constant 0 : index
    %286 = vector.load %arg4[%c6_243, %c0_244] : memref<9x128xf32, #tpu.memory_space<vmem>>, vector<1x128xf32>
    %287 = vector.broadcast %286 : vector<1x128xf32> to vector<8x128xf32>
    %288 = arith.mulf %285, %287 : vector<8x128xf32>
    %c120_245 = arith.constant 120 : index
    %c0_246 = arith.constant 0 : index
    %289 = vector.load %arg16[%c120_245, %c0_246] : memref<144x128xf32, #tpu.memory_space<vmem>>, vector<8x128xf32>
    tpu.vector_store %arg16[%c120_245, %c0_246], %288 {strides = array<i32>} : memref<144x128xf32, #tpu.memory_space<vmem>>, vector<8x128xf32>,
    %c120_i32_247 = arith.constant 120 : i32
    %290 = tpu.dynamic_rotate %164 by %c120_i32_247 dim 1 : vector<8x128xf32>, i32 -> vector<8x128xf32>
    %c7_248 = arith.constant 7 : index
    %c0_249 = arith.constant 0 : index
    %291 = vector.load %arg4[%c7_248, %c0_249] : memref<9x128xf32, #tpu.memory_space<vmem>>, vector<1x128xf32>
    %292 = vector.broadcast %291 : vector<1x128xf32> to vector<8x128xf32>
    %293 = arith.mulf %290, %292 : vector<8x128xf32>
    %c128_250 = arith.constant 128 : index
    %c0_251 = arith.constant 0 : index
    %294 = vector.load %arg16[%c128_250, %c0_251] : memref<144x128xf32, #tpu.memory_space<vmem>>, vector<8x128xf32>
    tpu.vector_store %arg16[%c128_250, %c0_251], %293 {strides = array<i32>} : memref<144x128xf32, #tpu.memory_space<vmem>>, vector<8x128xf32>,
    %c119_i32_252 = arith.constant 119 : i32
    %295 = tpu.dynamic_rotate %164 by %c119_i32_252 dim 1 : vector<8x128xf32>, i32 -> vector<8x128xf32>
    %c8_253 = arith.constant 8 : index
    %c0_254 = arith.constant 0 : index
    %296 = vector.load %arg4[%c8_253, %c0_254] : memref<9x128xf32, #tpu.memory_space<vmem>>, vector<1x128xf32>
    %297 = vector.broadcast %296 : vector<1x128xf32> to vector<8x128xf32>
    %298 = arith.mulf %295, %297 : vector<8x128xf32>
    %c136_255 = arith.constant 136 : index
    %c0_256 = arith.constant 0 : index
    %299 = vector.load %arg16[%c136_255, %c0_256] : memref<144x128xf32, #tpu.memory_space<vmem>>, vector<8x128xf32>
    tpu.vector_store %arg16[%c136_255, %c0_256], %298 {strides = array<i32>} : memref<144x128xf32, #tpu.memory_space<vmem>>, vector<8x128xf32>,
    %c0_257 = arith.constant 0 : index
    %c0_258 = arith.constant 0 : index
    %300 = vector.load %arg12[%c0_257, %c0_258] : memref<8x144xf32, #tpu.memory_space<vmem>>, vector<8x144xf32>
    %c0_259 = arith.constant 0 : index
    %c0_260 = arith.constant 0 : index
    %301 = vector.load %arg16[%c0_259, %c0_260] : memref<144x128xf32, #tpu.memory_space<vmem>>, vector<144x128xf32>
    %cst_261 = arith.constant dense<0.000000e+00> : vector<8x128xf32>
    %302 = tpu.matmul %300, %301, %cst_261 {dimension_numbers = #tpu.dot_dimension_numbers<[1], [0], [0], [1], [0, 0, 1, 1], [], []>} : vector<8x144xf32>, vector<144x128xf32>, vector<8x128xf32> -> vector<8x128xf32>
    %c0_262 = arith.constant 0 : index
    %c0_263 = arith.constant 0 : index
    %303 = vector.load %arg11[%c0_262, %c0_263] : memref<8x72xf32, #tpu.memory_space<vmem>>, vector<8x72xf32>
    %c0_264 = arith.constant 0 : index
    %c0_265 = arith.constant 0 : index
    %304 = vector.load %arg15[%c0_264, %c0_265] : memref<72x512xf32, #tpu.memory_space<vmem>>, vector<72x512xf32>
    %cst_266 = arith.constant dense<0.000000e+00> : vector<8x512xf32>
    %305 = tpu.matmul %303, %304, %cst_266 {dimension_numbers = #tpu.dot_dimension_numbers<[1], [0], [0], [1], [0, 0, 1, 1], [], []>} : vector<8x72xf32>, vector<72x512xf32>, vector<8x512xf32> -> vector<8x512xf32>
    %cst_267 = arith.constant dense<0.000000e+00> : vector<8x512xf32>
    %306 = tpu.matmul %302, %3, %cst_267 {dimension_numbers = #tpu.dot_dimension_numbers<[1], [0], [0], [1], [0, 0, 1, 1], [], []>} : vector<8x128xf32>, vector<128x512xf32>, vector<8x512xf32> -> vector<8x512xf32>
    %307 = arith.addf %305, %306 : vector<8x512xf32>
    %c0_268 = arith.constant 0 : index
    %c0_269 = arith.constant 0 : index
    %308 = vector.load %arg13[%c0_268, %c0_269] : memref<8x1xf32, #tpu.memory_space<vmem>>, vector<8x1xf32>
    %309 = vector.broadcast %308 : vector<8x1xf32> to vector<8x512xf32>
    %310 = arith.addf %307, %309 : vector<8x512xf32>
    %311 = arith.addf %310, %5 : vector<8x512xf32>
    %cst_270 = arith.constant 0.000000e+00 : f32
    %312 = vector.broadcast %cst_270 : f32 to vector<8x512xf32>
    %313 = arith.maximumf %311, %312 : vector<8x512xf32>
    %c0_271 = arith.constant 0 : index
    %c0_272 = arith.constant 0 : index
    %c0_273 = arith.constant 0 : index
    %314 = vector.load %arg14[%c0_271, %c0_272, %c0_273] : memref<1x8x512xf32, #tpu.memory_space<vmem>>, vector<1x8x512xf32>
    %315 = vector.shape_cast %314 : vector<1x8x512xf32> to vector<8x512xf32>
    %316 = vector.shape_cast %313 : vector<8x512xf32> to vector<1x8x512xf32>
    tpu.vector_store %arg14[%c0_271, %c0_272, %c0_273], %316 {strides = array<i32>} : memref<1x8x512xf32, #tpu.memory_space<vmem>>, vector<1x8x512xf32>,
    return
  }
  func.func @transform_0(%arg0: i32) -> (i32, i32, i32) {
    %c0_i32 = arith.constant 0 : i32
    %c0_i32_0 = arith.constant 0 : i32
    %c0_i32_1 = arith.constant 0 : i32
    return %arg0, %c0_i32, %c0_i32_0 : i32, i32, i32
  }
  func.func @transform_1(%arg0: i32) -> (i32, i32, i32) {
    %c0_i32 = arith.constant 0 : i32
    %c0_i32_0 = arith.constant 0 : i32
    %c0_i32_1 = arith.constant 0 : i32
    return %arg0, %c0_i32, %c0_i32_0 : i32, i32, i32
  }
  func.func @transform_2(%arg0: i32) -> (i32, i32) {
    %c0_i32 = arith.constant 0 : i32
    %c0_i32_0 = arith.constant 0 : i32
    %c0_i32_1 = arith.constant 0 : i32
    return %c0_i32, %c0_i32_0 : i32, i32
  }
  func.func @transform_3(%arg0: i32) -> (i32, i32) {
    %c0_i32 = arith.constant 0 : i32
    %c0_i32_0 = arith.constant 0 : i32
    %c0_i32_1 = arith.constant 0 : i32
    return %c0_i32, %c0_i32_0 : i32, i32
  }
  func.func @transform_4(%arg0: i32) -> (i32, i32) {
    %c0_i32 = arith.constant 0 : i32
    %c0_i32_0 = arith.constant 0 : i32
    %c0_i32_1 = arith.constant 0 : i32
    return %c0_i32, %c0_i32_0 : i32, i32
  }
  func.func @transform_5(%arg0: i32) -> (i32, i32) {
    %c0_i32 = arith.constant 0 : i32
    %c0_i32_0 = arith.constant 0 : i32
    %c0_i32_1 = arith.constant 0 : i32
    return %c0_i32, %c0_i32_0 : i32, i32
  }
  func.func @transform_6(%arg0: i32) -> (i32, i32) {
    %c0_i32 = arith.constant 0 : i32
    %c0_i32_0 = arith.constant 0 : i32
    %c0_i32_1 = arith.constant 0 : i32
    return %c0_i32, %c0_i32_0 : i32, i32
  }
  func.func @transform_7(%arg0: i32) -> (i32, i32) {
    %c0_i32 = arith.constant 0 : i32
    %c0_i32_0 = arith.constant 0 : i32
    %c0_i32_1 = arith.constant 0 : i32
    return %c0_i32, %c0_i32_0 : i32, i32
  }
  func.func @transform_8(%arg0: i32) -> (i32, i32) {
    %c0_i32 = arith.constant 0 : i32
    %c0_i32_0 = arith.constant 0 : i32
    %c0_i32_1 = arith.constant 0 : i32
    return %c0_i32, %c0_i32_0 : i32, i32
  }
  func.func @transform_9(%arg0: i32) -> (i32, i32) {
    %c0_i32 = arith.constant 0 : i32
    %c0_i32_0 = arith.constant 0 : i32
    %c0_i32_1 = arith.constant 0 : i32
    return %c0_i32, %c0_i32_0 : i32, i32
  }
  func.func @transform_10(%arg0: i32) -> (i32, i32) {
    %c0_i32 = arith.constant 0 : i32
    %c0_i32_0 = arith.constant 0 : i32
    %c0_i32_1 = arith.constant 0 : i32
    return %c0_i32, %c0_i32_0 : i32, i32
  }
  func.func @transform_11(%arg0: i32) -> (i32, i32) {
    %c0_i32 = arith.constant 0 : i32
    %c0_i32_0 = arith.constant 0 : i32
    %c0_i32_1 = arith.constant 0 : i32
    return %c0_i32, %c0_i32_0 : i32, i32
  }
  func.func @transform_12(%arg0: i32) -> (i32, i32) {
    %c0_i32 = arith.constant 0 : i32
    %c0_i32_0 = arith.constant 0 : i32
    %c0_i32_1 = arith.constant 0 : i32
    return %c0_i32, %c0_i32_0 : i32, i32
  }
  func.func @transform_13(%arg0: i32) -> (i32, i32, i32) {
    %c0_i32 = arith.constant 0 : i32
    %c0_i32_0 = arith.constant 0 : i32
    %c0_i32_1 = arith.constant 0 : i32
    return %arg0, %c0_i32, %c0_i32_0 : i32, i32, i32
  }
}

</mosaic_0001>

<bundles_post_ra>
// kernel: bottleneck_last_forward.1
= control target key start
LH: loop header
LB: loop body
LE: loop exit
PB: predicated region body
PF: predicated region fallthrough
CT: control target
= control target key end

     0   :  { %18 = vsyncpa [#allocation5], 0  ;;  %s4937_s0 = inlined_call_operand.vmem [shape: f32[1,8,512], index: 0, kind: input, shape index: {}]   ;;  %s4938_s1 = inlined_call_operand.vmem [shape: f32[1,8,128], index: 1, kind: input, shape index: {}]   ;;  %s4939_s2 = inlined_call_operand.vmem [shape: f32[9,512], index: 2, kind: input, shape index: {}]   ;;  %s4940_s3 = inlined_call_operand.vmem [shape: f32[9,128], index: 3, kind: input, shape index: {}]   ;;  %s4941_s4 = inlined_call_operand.vmem [shape: bf16[512,128], index: 4, kind: input, shape index: {}]   ;;  %s4942_s5 = inlined_call_operand.hbm [shape: bf16[128,512], index: 5, kind: input, shape index: {}]   ;;  %s4943_s6 = inlined_call_operand.hbm [shape: f32[8,72], index: 6, kind: input, shape index: {}]   ;;  %s4944_s7 = inlined_call_operand.vmem [shape: f32[16,144], index: 7, kind: input, shape index: {}]   ;;  %s4945_s8 = inlined_call_operand.vmem [shape: f32[8,1], index: 8, kind: input, shape index: {}]   ;;  %s4946_s9 = inlined_call_operand.vmem [shape: f32[16,1], index: 9, kind: input, shape index: {}]   ;;  %s4947_s10 = inlined_call_operand.hbm [shape: f32[8,72], index: 10, kind: input, shape index: {}]   ;;  %s4948_s11 = inlined_call_operand.vmem [shape: f32[8,144], index: 11, kind: input, shape index: {}]   ;;  %s4949_s12 = inlined_call_operand.vmem [shape: f32[8,1], index: 12, kind: input, shape index: {}]   ;;  %s4950_s13 = inlined_call_operand.vmem [shape: f32[1,8,512], index: 13, kind: output, shape index: {}]  }
   0x1   :  { %19 = vsyncpa [#allocation7], 0  ;;  %s3005_s25 = smov [#allocation6]   ;;  %s3006_s27 = smov [#allocation4]  }
   0x2   :  { %s48_s26 = sshll.u32 %s3005_s25, 4  ;;  %s35_s28 = sshll.u32 %s3006_s27, 4  ;;  %s49_s26 = int_to_ptr.vmem [resolvable:$true] %s48_s26  ;;  %s36_s28 = int_to_ptr.vmem [resolvable:$true] %s35_s28 }
   0x3   :  { %s2949_s29 = scalar_lea.vmem %s49_s26, 128  ;;  %p2954_p1 = scmp.lt.s32.totalorder %s49_s26, %s49_s26 }
   0x4   :  { %p2950_p0 = scmp.ne.s32.totalorder %s49_s26, %s2949_s29  ;;  %p2955_p2 = scmp.lt.s32.totalorder %s2949_s29, %s2949_s29 }
   0x6   :  { %p2956_p3 = por %p2955_p2, %p2954_p1 }
   0x8   :  { %p2957_p4 = pnand %p2956_p3, %p2950_p0 }
   0xa   :  { %2960 = shalt.err (!%p2957_p4)
}
   0xb   :  { %51 = dma.hbm_to_vmem [thread:$0]  %s4943_s6, 128, %s49_s26, [#allocation7]  }
   0xc   :  { %s2969_s15 = scalar_lea.vmem %s36_s28, 4096  ;;  %p2974_p6 = scmp.lt.s32.totalorder %s36_s28, %s36_s28 }
   0xd   :  { %p2970_p5 = scmp.ne.s32.totalorder %s36_s28, %s2969_s15  ;;  %p2975_p7 = scmp.lt.s32.totalorder %s2969_s15, %s2969_s15 }
   0xf   :  { %p2976_p8 = por %p2975_p7, %p2974_p6 }
  0x11   :  { %p2977_p9 = pnand %p2976_p8, %p2970_p5 }
  0x13   :  { %2980 = shalt.err (!%p2977_p9)
}
  0x14   :  { %s3007_s16 = smov 256   ;;  %s3008_s17 = smov 16  }
  0x15   :  { %41 = dma.hbm_to_vmem [thread:$0]  %s4942_s5, 4096, %s36_s28, [#allocation5], %s3007_s16, %s3007_s16, %s3008_s17  }
  0x16   :  { %s3009_s20 = smov [#allocation8]  }
  0x17   :  { %s64_s21 = sshll.u32 %s3009_s20, 4  ;;  %s65_s21 = int_to_ptr.vmem [resolvable:$true] %s64_s21 }
  0x18   :  { %s2989_s22 = scalar_lea.vmem %s65_s21, 128  ;;  %p2994_p11 = scmp.lt.s32.totalorder %s65_s21, %s65_s21 }
  0x19   :  { %p2990_p10 = scmp.ne.s32.totalorder %s65_s21, %s2989_s22  ;;  %p2995_p12 = scmp.lt.s32.totalorder %s2989_s22, %s2989_s22 }
  0x1b   :  { %p2996_p13 = por %p2995_p12, %p2994_p11 }
  0x1d   :  { %p2997_p0 = pnand %p2996_p13, %p2990_p10 }
  0x1f   :  { %3000 = shalt.err (!%p2997_p0)
}
  0x20   :  { %67 = dma.hbm_to_vmem [thread:$0]  %s4947_s10, 128, %s65_s21, [#allocation7]  }
  0x21   :  { %3001 = dma.done.wait [#allocation5], 4096  }
  0x22   :  { %3002 = vsyncadd [#allocation5], 4294963200 }
  0x23   :  { %3003 = dma.done.wait [#allocation7], 256  }
  0x24   :  { %3004 = vsyncadd [#allocation7], 4294967040  ;;  %v3108_v0 = vld [vmem:[%s4941_s4 + $0x78] sm:$0xff]   ;;  %v3132_v8 = vld [vmem:[%s4941_s4 + $0x70] sm:$0xff]   ;;  %s3011_s20 = smov 1   ;;  %s3012_s21 = smov 121  }
  0x25   :  { %v3113_v1 = vld [vmem:[%s4941_s4 + $0xf8] sm:$0xff]   ;;  %v4970_v3 = vunpack.c.l.bf16 %v3108_v0  ;;  %v4972_v4 = vunpack.c.h.bf16 %v3108_v0  ;;  %5119 = vst [vmem:[#allocation12_spill] sm:$0xff] %v3132_v8  ;;  %v3137_v9 = vld [vmem:[%s4941_s4 + $0xf0] sm:$0xff]   ;;  %v4966_v16 = vunpack.c.h.bf16 %v3132_v8  ;;  %v3168_v20 = vld [vmem:[%s4941_s4 + $0x68] sm:$0xff]   ;;  %v4963_v22 = vunpack.c.l.bf16 %v3132_v8  ;;  %s3014_s22 = smov 7   ;;  %s3015_s6 = smov 127  }
  0x26   :  { %v3118_v2 = vld [vmem:[%s4941_s4 + $0x38] sm:$0xff]   ;;  %v5029_v5 = vunpack.c.l.bf16 %v3113_v1  ;;  %v5032_v6 = vunpack.c.h.bf16 %v3113_v1  ;;  %v3146_v14 = vld [vmem:[%s4941_s4 + $0x30] sm:$0xff]   ;;  %v5026_v17 = vunpack.c.h.bf16 %v3137_v9  ;;  %5121 = vst [vmem:[#allocation14_spill] sm:$0xff] %v3168_v20  ;;  %v3173_v21 = vld [vmem:[%s4941_s4 + $0xe8] sm:$0xff]   ;;  %v5020_v23 = vunpack.c.l.bf16 %v3137_v9  ;;  %s3016_s23 = smov 9   ;;  %s3017_s24 = smov 8  }
  0x27   :  { %5118 = vst [vmem:[#allocation11_spill] sm:$0xff] %v3118_v2  ;;  %v3127_v7 = vld [vmem:[%s4941_s4 + $0xb8] sm:$0xff]   ;;  %v4968_v10 = vunpack.c.l.bf16 %v3118_v2  ;;  %v4971_v11 = vunpack.c.h.bf16 %v3118_v2  ;;  %5120 = vst [vmem:[#allocation13_spill] sm:$0xff] %v3146_v14  ;;  %v3151_v15 = vld [vmem:[%s4941_s4 + $0xb0] sm:$0xff]   ;;  %2775 = vmatprep.subr.mxu0 %v4972_v4  ;;  %v4964_v18 = vunpack.c.h.bf16 %v3146_v14  ;;  %v4962_v26 = vunpack.c.l.bf16 %v3146_v14  ;;  %s3018_s26 = smov 120   ;;  %s3019_s27 = smov 119  }
  0x28   :  { %v5028_v12 = vunpack.c.l.bf16 %v3127_v7  ;;  %v5030_v13 = vunpack.c.h.bf16 %v3127_v7  ;;  %2810 = vmatprep.subr.mxu1 %v5032_v6  ;;  %v5023_v19 = vunpack.c.h.bf16 %v3151_v15  ;;  %v3184_v24 = vld [vmem:[%s4941_s4 + $0x28] sm:$0xff]   ;;  %v5017_v27 = vunpack.c.l.bf16 %v3151_v15  ;;  %v3212_v32 = vld [vmem:[%s4941_s4 + $0x60] sm:$0xff]   ;;  %v3256_v44 = vld [vmem:[%s4941_s4 + $0x58] sm:$0xff]   ;;  %s3020_s10 = smov 111   ;;  %s3021_s30 = smov 112  }
  0x29   :  { %2776 = vmatpush3.msra.mxu0 %v4971_v11  ;;  %5122 = vst [vmem:[#allocation15_spill] sm:$0xff] %v3184_v24  ;;  %v3189_v25 = vld [vmem:[%s4941_s4 + $0xa8] sm:$0xff]   ;;  %v4960_v28 = vunpack.c.h.bf16 %v3168_v20  ;;  %v5014_v29 = vunpack.c.h.bf16 %v3173_v21  ;;  %v4959_v30 = vunpack.c.h.bf16 %v3184_v24  ;;  %5123 = vst [vmem:[#allocation16_spill] sm:$0xff] %v3212_v32  ;;  %v3217_v33 = vld [vmem:[%s4941_s4 + $0xe0] sm:$0xff]   ;;  %v4958_v34 = vunpack.c.l.bf16 %v3168_v20  ;;  %s3022_s14 = smov 113   ;;  %s3023_s15 = smov 15  }
  0x2a   :  { %2811 = vmatpush3.msra.mxu1 %v5030_v13  ;;  %2777 = vmatprep.subr.mxu0 %v4970_v3  ;;  %v5011_v31 = vunpack.c.h.bf16 %v3189_v25  ;;  %v5008_v35 = vunpack.c.l.bf16 %v3173_v21  ;;  %v3228_v36 = vld [vmem:[%s4941_s4 + $0x20] sm:$0xff]   ;;  %v4956_v38 = vunpack.c.l.bf16 %v3184_v24  ;;  %v5005_v39 = vunpack.c.l.bf16 %v3189_v25  ;;  %5125 = vst [vmem:[#allocation18_spill] sm:$0xff] %v3256_v44  ;;  %v3261_v45 = vld [vmem:[%s4941_s4 + $0xd8] sm:$0xff]   ;;  %v3300_v56 = vld [vmem:[%s4941_s4 + $0x50] sm:$0xff]   ;;  %s3024_s16 = smov 17  }
  0x2b   :  { %2812 = vmatprep.subr.mxu1 %v5029_v5  ;;  %2778 = vmatpush3.msra.mxu0 %v4968_v10  ;;  %5124 = vst [vmem:[#allocation17_spill] sm:$0xff] %v3228_v36  ;;  %v3233_v37 = vld [vmem:[%s4941_s4 + $0xa0] sm:$0xff]   ;;  %v4954_v40 = vunpack.c.h.bf16 %v3212_v32  ;;  %v5004_v41 = vunpack.c.h.bf16 %v3217_v33  ;;  %v4952_v42 = vunpack.c.h.bf16 %v3228_v36  ;;  %v4951_v46 = vunpack.c.l.bf16 %v3212_v32  ;;  %v3272_v48 = vld [vmem:[%s4941_s4 + $0x18] sm:$0xff]   ;;  %5127 = vst [vmem:[#allocation20_spill] sm:$0xff] %v3300_v56 }
  0x2c   :  { %2813 = vmatpush3.msra.mxu1 %v5028_v12  ;;  %2779 = vmatprep.subr.mxu0 %v4966_v16  ;;  %v5001_v43 = vunpack.c.h.bf16 %v3233_v37  ;;  %v5000_v47 = vunpack.c.l.bf16 %v3217_v33  ;;  %5126 = vst [vmem:[#allocation19_spill] sm:$0xff] %v3272_v48  ;;  %v3277_v49 = vld [vmem:[%s4941_s4 + $0x98] sm:$0xff]   ;;  %v4953_v50 = vunpack.c.l.bf16 %v3228_v36  ;;  %v4999_v51 = vunpack.c.l.bf16 %v3233_v37  ;;  %v3305_v57 = vld [vmem:[%s4941_s4 + $0xd0] sm:$0xff]   ;;  %v3393_v10 = vld [vmem:[%s4941_s4 + $0xc0] sm:$0xff]  }
  0x2d   :  { %2814 = vmatprep.subr.mxu1 %v5026_v17  ;;  %2780 = vmatpush3.msra.mxu0 %v4964_v18  ;;  %v4955_v52 = vunpack.c.h.bf16 %v3256_v44  ;;  %v4998_v53 = vunpack.c.h.bf16 %v3261_v45  ;;  %v4957_v54 = vunpack.c.h.bf16 %v3272_v48  ;;  %v4997_v55 = vunpack.c.h.bf16 %v3277_v49  ;;  %v3316_v60 = vld [vmem:[%s4941_s4 + $0x10] sm:$0xff]   ;;  %v3404_v11 = vld [vmem:[%s4941_s4] sm:$0xff]  }
  0x2e   :  { %2815 = vmatpush3.msra.mxu1 %v5023_v19  ;;  %2781 = vmatprep.subr.mxu0 %v4963_v22  ;;  %v4961_v58 = vunpack.c.l.bf16 %v3256_v44  ;;  %v4996_v59 = vunpack.c.l.bf16 %v3261_v45  ;;  %5128 = vst [vmem:[#allocation21_spill] sm:$0xff] %v3316_v60  ;;  %v3321_v61 = vld [vmem:[%s4941_s4 + $0x90] sm:$0xff]   ;;  %v4965_v62 = vunpack.c.l.bf16 %v3272_v48  ;;  %v4994_v63 = vunpack.c.l.bf16 %v3277_v49  ;;  %5132 = vst [vmem:[#allocation25_spill] sm:$0xff] %v3404_v11  ;;  %v3409_v4 = vld [vmem:[%s4941_s4 + $0x80] sm:$0xff]  }
  0x2f   :  { %2816 = vmatprep.subr.mxu1 %v5020_v23  ;;  %2782 = vmatpush3.msra.mxu0 %v4962_v26  ;;  %v4978_v26 = vunpack.c.l.bf16 %v3321_v61  ;;  %vm1026_vm0 = vcmask 130048   ;;  %v3678_v19 = vld [vmem:[%s4940_s3 + $0x6] ss:$0 sm:$0xff]  ;;  %v5147_v6 = vmov 0.0   ;;  %vm1288_vm9 = vcmask 588800  }
  0x30   :  { %2817 = vmatpush3.msra.mxu1 %v5017_v27  ;;  %2783 = vmatprep.subr.mxu0 %v4960_v28  ;;  %v3365_v28 = vld [vmem:[%s4941_s4 + $0x88] sm:$0xff]   ;;  %v3691_v13 = vld [vmem:[#allocation4 + $0x20] sm:$0xff] }
  0x31   :  { %2818 = vmatprep.subr.mxu1 %v5014_v29  ;;  %2784 = vmatpush3.msra.mxu0 %v4959_v30  ;;  %v3360_v30 = vld [vmem:[%s4941_s4 + $0x8] sm:$0xff]   ;;  %v4993_v16 = vunpack.c.h.bf16 %v3365_v28  ;;  %5145 = vst [vmem:[#allocation38_spill] sm:$0xff] %v3691_v13 }
  0x32   :  { %2819 = vmatpush3.msra.mxu1 %v5011_v31  ;;  %2785 = vmatprep.subr.mxu0 %v4958_v34  ;;  %v4974_v34 = vunpack.c.l.bf16 %v3305_v57  ;;  %5130 = vst [vmem:[#allocation23_spill] sm:$0xff] %v3360_v30 }
  0x33   :  { %2820 = vmatprep.subr.mxu1 %v5008_v35  ;;  %2786 = vmatpush3.msra.mxu0 %v4956_v38  ;;  %v3349_v38 = vld [vmem:[%s4941_s4 + $0xc8] sm:$0xff]  }
  0x34   :  { %2821 = vmatpush3.msra.mxu1 %v5005_v39  ;;  %2787 = vmatprep.subr.mxu0 %v4954_v40  ;;  %v4975_v40 = vunpack.c.h.bf16 %v3321_v61  ;;  %v4980_v18 = vunpack.c.h.bf16 %v3349_v38  ;;  %v4983_v3 = vunpack.c.l.bf16 %v3349_v38 }
  0x35   :  { %2822 = vmatprep.subr.mxu1 %v5004_v41  ;;  %2788 = vmatpush3.msra.mxu0 %v4952_v42  ;;  %v4976_v42 = vunpack.c.h.bf16 %v3305_v57  ;;  %v3622_v41 = vld [vmem:[#allocation4 + $0xa0] sm:$0xff] }
  0x36   :  { %2823 = vmatpush3.msra.mxu1 %v5001_v43  ;;  %2789 = vmatprep.subr.mxu0 %v4951_v46  ;;  %v4967_v46 = vunpack.c.h.bf16 %v3300_v56  ;;  %v3614_v43 = vld [vmem:[#allocation4 + $0xb0] sm:$0xff]  ;;  %5137 = vst [vmem:[#allocation30_spill] sm:$0xff] %v3622_v41  ;;  %v5019_v35 = vunpack.c.l.bf16 %v3622_v41 }
  0x37   :  { %2824 = vmatprep.subr.mxu1 %v5000_v47  ;;  %2790 = vmatpush3.msra.mxu0 %v4953_v50  ;;  %v4969_v50 = vunpack.c.h.bf16 %v3316_v60  ;;  %5136 = vst [vmem:[#allocation29_spill] sm:$0xff] %v3614_v43  ;;  %v5016_v39 = vunpack.c.l.bf16 %v3614_v43 }
  0x38   :  { %2825 = vmatpush3.msra.mxu1 %v4999_v51  ;;  %2791 = vmatprep.subr.mxu0 %v4955_v52  ;;  %v3344_v52 = vld [vmem:[%s4941_s4 + $0x48] sm:$0xff]  }
  0x39   :  { %2826 = vmatprep.subr.mxu1 %v4998_v53  ;;  %2792 = vmatpush3.msra.mxu0 %v4957_v54  ;;  %5129 = vst [vmem:[#allocation22_spill] sm:$0xff] %v3344_v52  ;;  %v4973_v54 = vunpack.c.l.bf16 %v3300_v56  ;;  %v4979_v22 = vunpack.c.h.bf16 %v3344_v52  ;;  %v3606_v53 = vld [vmem:[#allocation4 + $0xc0] sm:$0xff] }
  0x3a   :  { %2827 = vmatpush3.msra.mxu1 %v4997_v55  ;;  %2793 = vmatprep.subr.mxu0 %v4961_v58  ;;  %v4977_v58 = vunpack.c.l.bf16 %v3316_v60  ;;  %5135 = vst [vmem:[#allocation28_spill] sm:$0xff] %v3606_v53 }
  0x3b   :  { %2828 = vmatprep.subr.mxu1 %v4996_v59  ;;  %2794 = vmatpush3.msra.mxu0 %v4965_v62  ;;  %v4981_v62 = vunpack.c.h.bf16 %v3360_v30 }
  0x3c   :  { %2829 = vmatpush3.msra.mxu1 %v4994_v63  ;;  %2795 = vmatprep.subr.mxu0 %v4967_v46  ;;  %v3388_v46 = vld [vmem:[%s4941_s4 + $0x40] sm:$0xff]  }
  0x3d   :  { %2830 = vmatprep.subr.mxu1 %v4976_v42  ;;  %2796 = vmatpush3.msra.mxu0 %v4969_v50  ;;  %5131 = vst [vmem:[#allocation24_spill] sm:$0xff] %v3388_v46  ;;  %v4982_v50 = vunpack.c.l.bf16 %v3344_v52  ;;  %v4990_v42 = vunpack.c.h.bf16 %v3393_v10 }
  0x3e   :  { %2831 = vmatpush3.msra.mxu1 %v4975_v40  ;;  %2797 = vmatprep.subr.mxu0 %v4973_v54  ;;  %v4985_v54 = vunpack.c.l.bf16 %v3360_v30  ;;  %v4984_v40 = vunpack.c.h.bf16 %v3388_v46 }
  0x3f   :  { %2832 = vmatprep.subr.mxu1 %v4974_v34  ;;  %2798 = vmatpush3.msra.mxu0 %v4977_v58  ;;  %v4992_v34 = vunpack.c.l.bf16 %v3365_v28  ;;  %v4986_v58 = vunpack.c.h.bf16 %v3404_v11 }
  0x40   :  { %2833 = vmatpush3.msra.mxu1 %v4978_v26  ;;  %2799 = vmatprep.subr.mxu0 %v4979_v22  ;;  %v4989_v26 = vunpack.c.h.bf16 %v3409_v4  ;;  %v4987_v22 = vunpack.c.l.bf16 %v3388_v46 }
  0x41   :  { %2834 = vmatprep.subr.mxu1 %v4980_v18  ;;  %2800 = vmatpush3.msra.mxu0 %v4981_v62  ;;  %v4988_v18 = vunpack.c.l.bf16 %v3393_v10  ;;  %v4991_v62 = vunpack.c.l.bf16 %v3404_v11 }
  0x42   :  { %2835 = vmatpush3.msra.mxu1 %v4993_v16  ;;  %2801 = vmatprep.subr.mxu0 %v4982_v50  ;;  %v3447_v50 = vld [vmem:[%s4937_s0 + $0x8] sm:$0xff] }
  0x43   :  { %2836 = vmatprep.subr.mxu1 %v4983_v3  ;;  %2802 = vmatpush3.msra.mxu0 %v4985_v54  ;;  %v4995_v3 = vunpack.c.l.bf16 %v3409_v4  ;;  %v3466_v54 = vld [vmem:[%s4937_s0] sm:$0xff] }
  0x44   :  { %2837 = vmatpush3.msra.mxu1 %v4992_v34  ;;  %2803 = vmatprep.subr.mxu0 %v4984_v40  ;;  %v3457_v40 = vld [vmem:[%s4937_s0 + $0x18] sm:$0xff] }
  0x45   :  { %2838 = vmatprep.subr.mxu1 %v4990_v42  ;;  %2804 = vmatpush3.msra.mxu0 %v4986_v58  ;;  %v3471_v58 = vld [vmem:[%s4937_s0 + $0x10] sm:$0xff] }
  0x46   :  { %2839 = vmatpush3.msra.mxu1 %v4989_v26  ;;  %2805 = vmatprep.subr.mxu0 %v4987_v22  ;;  %v5035_v22 = vmov 0.0  }
  0x47   :  { %2840 = vmatprep.subr.mxu1 %v4988_v18  ;;  %2806 = vmatpush3.msra.mxu0 %v4991_v62 }
  0x48   :  { %374 = vmatprep.mubr.f32.mxu0 %v3447_v50  ;;  %2841 = vmatpush3.msra.mxu1 %v4995_v3  ;;  %v3013_v3 = vmov 0  }
  0x49   :  { %444 = vmatprep.mubr.f32.mxu1 %v3457_v40  ;;  %375 = vmatmul.mubr.f32.vlgmr.msra.gmra.mxu0 %v3466_v54 }
  0x4a   :  { %445 = vmatmul.mubr.f32.vlgmr.msra.gmra.mxu1 %v3471_v58  ;;  %1033 = vmatprep.subr.mxu0 %v5035_v22 }
  0x4b   :  { %1210 = vmatprep.mubr.f32.mxu1 %v5035_v22  ;;  %2935 = vset.pattern.permute.xlu1 %v3013_v3  ;;  %v3703_v22 = vld [vmem:[#allocation4 + $0x10] sm:$0xff] }
  0x4c   :  { %2936 = vset.pattern.permute.xlu0 %v3013_v3  ;;  %v3500_v3 = vld [vmem:[%s4938_s1] sm:$0xff]  ;;  %5146 = vst [vmem:[#allocation39_spill] sm:$0xff] %v3703_v22 }
 0x109   :  { %v2807_v18 = vpop.f32.mrf.mxu0 }
 0x10a   :  { %v2842_v26 = vpop.f32.mrf.mxu1 }
 0x10b   :  { %v2808_v42 = vpop.f32.mrf.mxu0 }
 0x10c   :  { %v2843_v62 = vpop.f32.mrf.mxu1  ;;  %v2809_v34 = vadd.f32 %v2808_v42, %v2807_v18  ;;  %v1014_v18 = vld [vmem:[%s4946_s9] sm:$0xff] }
 0x10d   :  { %v2844_v16 = vadd.f32 %v2843_v62, %v2842_v26  ;;  %v3587_v26 = vld [vmem:[#allocation4 + $0xf0] sm:$0xff] }
 0x10e   :  { %v5003_v42 = vunpack.c.l.bf16 %v3587_v26  ;;  %v5002_v62 = vunpack.c.h.bf16 %v3587_v26 }
 0x10f   :  { %v3483_v63 = vadd.f32 %v2844_v16, %v2809_v34  ;;  %v993_v16 = vld [vmem:[%s4944_s7 + $0x8] sm:$0xff]  ;;  %v3589_v34 = vld [vmem:[#allocation4 + $0xe0] sm:$0xff] }
 0x110   :  { %2583 = vmatprep.mubr.msk.f32.mxu0 %vm1026_vm0, %v993_v16  ;;  %5133 = vst [vmem:[#allocation26_spill] sm:$0xff] %v3589_v34  ;;  %v3597_v16 = vld [vmem:[#allocation4 + $0xd0] sm:$0xff]  ;;  %v5006_v59 = vunpack.c.h.bf16 %v3589_v34  ;;  %1146 = vmatprep.subr.mxu1 %v5002_v62  ;;  %v5007_v55 = vunpack.c.l.bf16 %v3589_v34  ;;  %v5012_v62 = vunpack.c.h.bf16 %v3606_v53 }
 0x111   :  { %940 = vrot.lane.b32.xlu1 %v3483_v63, %s3011_s20  ;;  %965 = vrot.lane.b32.xlu0 %v3483_v63, %s3012_s21  ;;  %5134 = vst [vmem:[#allocation27_spill] sm:$0xff] %v3597_v16  ;;  %v5009_v51 = vunpack.c.h.bf16 %v3597_v16  ;;  %v5010_v47 = vunpack.c.l.bf16 %v3597_v16 }
 0x112   :  { %1147 = vmatpush1.msra.mxu1 %v5003_v42  ;;  %v5013_v42 = vunpack.c.l.bf16 %v3606_v53 }
 0x113   :  { %1148 = vmatprep.subr.mxu1 %v5006_v59  ;;  %v3630_v59 = vld [vmem:[#allocation4 + $0x90] sm:$0xff] }
 0x114   :  { %1149 = vmatpush1.msra.mxu1 %v5007_v55  ;;  %5138 = vst [vmem:[#allocation31_spill] sm:$0xff] %v3630_v59  ;;  %v5018_v55 = vunpack.c.h.bf16 %v3622_v41  ;;  %v5022_v31 = vunpack.c.l.bf16 %v3630_v59 }
 0x115   :  { %931 = vrot.lane.b32.xlu1 %v3483_v63, %s3014_s22  ;;  %956 = vrot.lane.b32.xlu0 %v3483_v63, %s3015_s6 }
 0x116   :  { %1150 = vmatprep.subr.mxu1 %v5009_v51  ;;  %v3638_v51 = vld [vmem:[#allocation4 + $0x80] sm:$0xff] }
 0x117   :  { %1151 = vmatpush1.msra.mxu1 %v5010_v47  ;;  %5139 = vst [vmem:[#allocation32_spill] sm:$0xff] %v3638_v51  ;;  %v5021_v47 = vunpack.c.h.bf16 %v3630_v59  ;;  %v5025_v29 = vunpack.c.l.bf16 %v3638_v51 }
 0x118   :  { %1152 = vmatprep.subr.mxu1 %v5012_v62  ;;  %v3646_v62 = vld [vmem:[#allocation4 + $0x70] sm:$0xff] }
 0x119   :  { %913 = vrot.lane.b32.xlu1 %v3483_v63, %s3016_s23  ;;  %922 = vrot.lane.b32.xlu0 %v3483_v63, %s3017_s24  ;;  %5140 = vst [vmem:[#allocation33_spill] sm:$0xff] %v3646_v62  ;;  %v5031_v27 = vunpack.c.l.bf16 %v3646_v62 }
 0x11a   :  { %1153 = vmatpush1.msra.mxu1 %v5013_v42  ;;  %v5024_v42 = vunpack.c.h.bf16 %v3638_v51  ;;  %v5052_v51 = vunpack.c.l.bf16 %v3703_v22 }
 0x11d   :  { %895 = vrot.lane.b32.xlu1 %v3500_v3, %s3018_s26  ;;  %904 = vrot.lane.b32.xlu0 %v3500_v3, %s3019_s27 }
 0x121   :  { %877 = vrot.lane.b32.xlu1 %v3500_v3, %s3015_s6  ;;  %886 = vrot.lane.b32.xlu0 %v3500_v3, %s3012_s21 }
 0x125   :  { %852 = vrot.lane.b32.xlu1 %v3500_v3, %s3014_s22  ;;  %861 = vrot.lane.b32.xlu0 %v3500_v3, %s3011_s20 }
 0x129   :  { %834 = vrot.lane.b32.xlu1 %v3500_v3, %s3016_s23  ;;  %843 = vrot.lane.b32.xlu0 %v3500_v3, %s3017_s24 }
 0x12d   :  { %974 = vrot.lane.b32.xlu1 %v3483_v63, %s3018_s26  ;;  %983 = vrot.lane.b32.xlu0 %v3483_v63, %s3019_s27 }
 0x131   :  { %794 = vrot.lane.b32.xlu1 %v3471_v58, %s3020_s10  ;;  %792 = vrot.lane.b32.xlu0 %v3447_v50, %s3020_s10 }
 0x135   :  { %1018 = vperm.xlu1 %2935, %v1014_v18   ;;  %790 = vrot.lane.b32.xlu0 %v3466_v54, %s3020_s10  ;;  %v1434_v18 = vld [vmem:[%s4945_s8] sm:$0xff] }
 0x139   :  { %750 = vrot.lane.b32.xlu1 %v3471_v58, %s3021_s30  ;;  %748 = vrot.lane.b32.xlu0 %v3447_v50, %s3021_s30 }
 0x13d   :  { %704 = vrot.lane.b32.xlu1 %v3447_v50, %s3022_s14  ;;  %746 = vrot.lane.b32.xlu0 %v3466_v54, %s3021_s30 }
 0x141   :  { %702 = vrot.lane.b32.xlu1 %v3466_v54, %s3022_s14  ;;  %706 = vrot.lane.b32.xlu0 %v3471_v58, %s3022_s14 }
 0x145   :  { %662 = vrot.lane.b32.xlu1 %v3471_v58, %s3015_s6  ;;  %660 = vrot.lane.b32.xlu0 %v3447_v50, %s3015_s6 }
 0x149   :  { %583 = vrot.lane.b32.xlu1 %v3466_v54, %s3011_s20  ;;  %658 = vrot.lane.b32.xlu0 %v3466_v54, %s3015_s6 }
 0x14d   :  { %589 = vrot.lane.b32.xlu1 %v3457_v40, %s3011_s20  ;;  %585 = vrot.lane.b32.xlu0 %v3447_v50, %s3011_s20 }
 0x151   :  { %541 = vrot.lane.b32.xlu1 %v3447_v50, %s3023_s15  ;;  %539 = vrot.lane.b32.xlu0 %v3466_v54, %s3023_s15 }
 0x155   :  { %495 = vrot.lane.b32.xlu1 %v3466_v54, %s3008_s17  ;;  %545 = vrot.lane.b32.xlu0 %v3457_v40, %s3023_s15 }
 0x159   :  { %501 = vrot.lane.b32.xlu1 %v3457_v40, %s3008_s17  ;;  %497 = vrot.lane.b32.xlu0 %v3447_v50, %s3008_s17 }
 0x15d   :  { %452 = vrot.lane.b32.xlu1 %v3447_v50, %s3024_s16  ;;  %450 = vrot.lane.b32.xlu0 %v3466_v54, %s3024_s16 }
 0x161   :  { %796 = vrot.lane.b32.xlu1 %v3457_v40, %s3020_s10  ;;  %456 = vrot.lane.b32.xlu0 %v3457_v40, %s3024_s16 }
 0x165   :  { %708 = vrot.lane.b32.xlu1 %v3457_v40, %s3022_s14  ;;  %752 = vrot.lane.b32.xlu0 %v3457_v40, %s3021_s30 }
 0x169   :  { %587 = vrot.lane.b32.xlu1 %v3471_v58, %s3011_s20  ;;  %664 = vrot.lane.b32.xlu0 %v3457_v40, %s3015_s6 }
 0x16d   :  { %499 = vrot.lane.b32.xlu1 %v3471_v58, %s3008_s17  ;;  %543 = vrot.lane.b32.xlu0 %v3471_v58, %s3023_s15 }
 0x171   :  { %1437 = vperm.xlu1 %2935, %v1434_v18   ;;  %454 = vrot.lane.b32.xlu0 %v3471_v58, %s3024_s16  ;;  %v5015_v18 = vunpack.c.h.bf16 %v3614_v43  ;;  %v458_v43 = vlaneseq }
 0x173   :  { %1154 = vmatprep.subr.mxu1 %v5015_v18  ;;  %v3654_v18 = vld [vmem:[#allocation4 + $0x60] sm:$0xff] }
 0x174   :  { %1155 = vmatpush1.msra.mxu1 %v5016_v39  ;;  %5141 = vst [vmem:[#allocation34_spill] sm:$0xff] %v3654_v18  ;;  %v5027_v39 = vunpack.c.h.bf16 %v3646_v62  ;;  %v5034_v23 = vunpack.c.l.bf16 %v3654_v18 }
 0x175   :  { %1156 = vmatprep.subr.mxu1 %v5018_v55  ;;  %v3662_v55 = vld [vmem:[#allocation4 + $0x50] sm:$0xff] }
 0x176   :  { %1157 = vmatpush1.msra.mxu1 %v5019_v35  ;;  %5142 = vst [vmem:[#allocation35_spill] sm:$0xff] %v3662_v55  ;;  %v5033_v35 = vunpack.c.h.bf16 %v3654_v18  ;;  %v2578_v18 = vld [vmem:[%s4940_s3 + $0x4] ss:$0 sm:$0xff] }
 0x177   :  { %1158 = vmatprep.subr.mxu1 %v5021_v47  ;;  %v3670_v47 = vld [vmem:[#allocation4 + $0x40] sm:$0xff] }
 0x178   :  { %1159 = vmatpush1.msra.mxu1 %v5022_v31  ;;  %5143 = vst [vmem:[#allocation36_spill] sm:$0xff] %v3670_v47  ;;  %v5037_v31 = vunpack.c.h.bf16 %v3662_v55  ;;  %v5043_v17 = vunpack.c.h.bf16 %v3670_v47 }
 0x179   :  { %1160 = vmatprep.subr.mxu1 %v5024_v42  ;;  %v5040_v42 = vunpack.c.l.bf16 %v3662_v55 }
 0x17a   :  { %1161 = vmatpush1.msra.mxu1 %v5025_v29  ;;  %v3683_v29 = vld [vmem:[#allocation4 + $0x30] sm:$0xff] }
 0x17b   :  { %1162 = vmatprep.subr.mxu1 %v5027_v39  ;;  %5144 = vst [vmem:[#allocation37_spill] sm:$0xff] %v3683_v29  ;;  %v5150_v62 = vunpack.c.l.bf16 %v3683_v29 }
 0x17c   :  { %1163 = vmatpush1.msra.mxu1 %v5031_v27 }
 0x17d   :  { %1164 = vmatprep.subr.mxu1 %v5033_v35  ;;  %v2579_v35 = vld [vmem:[%s4940_s3 + $0x5] ss:$0 sm:$0xff] }
 0x17e   :  { %1165 = vmatpush1.msra.mxu1 %v5034_v23  ;;  %v5151_v23 = vunpack.c.h.bf16 %v3691_v13 }
 0x17f   :  { %1166 = vmatprep.subr.mxu1 %v5037_v31 }
 0x180   :  { %1167 = vmatpush1.msra.mxu1 %v5040_v42  ;;  %v5148_v42 = vunpack.c.l.bf16 %v3670_v47  ;;  %v5152_v47 = vunpack.c.l.bf16 %v3691_v13 }
 0x181   :  { %1168 = vmatprep.subr.mxu1 %v5043_v17 }
 0x182   :  { %1169 = vmatpush1.msra.mxu1 %v5148_v42  ;;  %v954_v42 = vmul.f32 %v2578_v18, %v3483_v63 }
 0x183   :  { %v941_v39 = vpop.permute.xlu1 %940  ;;  %v966_v12 = vpop.permute.xlu0 %965 }
 0x184   :  { %v972_v27 = vmul.f32 %v3678_v19, %v966_v12  ;;  %v2577_v12 = vld [vmem:[%s4940_s3 + $0x3] ss:$0 sm:$0xff] }
 0x186   :  { %1034 = vmatpush1.msra.mxu0 %v972_v27  ;;  %v5149_v27 = vunpack.c.h.bf16 %v3683_v29 }
 0x187   :  { %v932_v31 = vpop.permute.xlu1 %931  ;;  %v957_v5 = vpop.permute.xlu0 %956  ;;  %1035 = vmatprep.subr.mxu0 %v5147_v6 }
 0x188   :  { %v963_v55 = vmul.f32 %v2579_v35, %v957_v5  ;;  %1170 = vmatprep.subr.mxu1 %v5149_v27  ;;  %v2576_v5 = vld [vmem:[%s4940_s3 + $0x2] ss:$0 sm:$0xff] }
 0x189   :  { %1171 = vmatpush1.msra.mxu1 %v5150_v62  ;;  %v947_v62 = vmul.f32 %v2577_v12, %v941_v39  ;;  %v938_v63 = vmul.f32 %v2576_v5, %v932_v31 }
 0x18a   :  { %1036 = vmatpush1.msra.mxu0 %v963_v55  ;;  %1172 = vmatprep.subr.mxu1 %v5151_v23  ;;  %v5153_v55 = vunpack.c.h.bf16 %v3703_v22  ;;  %v2575_v23 = vld [vmem:[%s4940_s3 + $0x1] ss:$0 sm:$0xff] }
 0x18b   :  { %v914_v27 = vpop.permute.xlu1 %913  ;;  %1037 = vmatprep.subr.mxu0 %v5147_v6  ;;  %v923_v17 = vpop.permute.xlu0 %922  ;;  %1173 = vmatpush1.msra.mxu1 %v5152_v47  ;;  %v2574_v47 = vld [vmem:[%s4940_s3] ss:$0 sm:$0xff] }
 0x18c   :  { %1038 = vmatpush1.msra.mxu0 %v954_v42  ;;  %1174 = vmatprep.subr.mxu1 %v5153_v55  ;;  %v2573_v42 = vld [vmem:[%s4940_s3 + $0x8] ss:$0 sm:$0xff]  ;;  %v929_v13 = vmul.f32 %v2575_v23, %v923_v17  ;;  %v920_v31 = vmul.f32 %v2574_v47, %v914_v27 }
 0x18d   :  { %1039 = vmatprep.subr.mxu0 %v5147_v6  ;;  %1175 = vmatpush1.msra.mxu1 %v5052_v51  ;;  %v2572_v51 = vld [vmem:[%s4940_s3 + $0x7] ss:$0 sm:$0xff] }
 0x18e   :  { %1040 = vmatpush1.msra.mxu0 %v947_v62 }
 0x18f   :  { %v896_v39 = vpop.permute.xlu1 %895  ;;  %v905_v55 = vpop.permute.xlu0 %904  ;;  %1041 = vmatprep.subr.mxu0 %v5147_v6 }
 0x190   :  { %1042 = vmatpush1.msra.mxu0 %v938_v63  ;;  %v911_v62 = vmul.f32 %v2573_v42, %v905_v55  ;;  %v902_v59 = vmul.f32 %v2572_v51, %v896_v39  ;;  %v3759_v55 = vshrl.u32 %v458_v43, 7 }
 0x191   :  { %1043 = vmatprep.subr.mxu0 %v5147_v6 }
 0x192   :  { %1044 = vmatpush1.msra.mxu0 %v929_v13  ;;  %v875_v13 = vmul.f32 %v2578_v18, %v3500_v3 }
 0x193   :  { %v878_v22 = vpop.permute.xlu1 %877  ;;  %v887_v29 = vpop.permute.xlu0 %886  ;;  %1045 = vmatprep.subr.mxu0 %v5147_v6 }
 0x194   :  { %1046 = vmatpush1.msra.mxu0 %v920_v31  ;;  %v893_v17 = vmul.f32 %v3678_v19, %v887_v29  ;;  %v884_v53 = vmul.f32 %v2579_v35, %v878_v22  ;;  %v3762_v29 = vand.u32 127, %v458_v43  ;;  %v3775_v43 = vsub.s32 0, %v3759_v55 }
 0x195   :  { %1047 = vmatprep.subr.mxu0 %v5147_v6 }
 0x196   :  { %1048 = vmatpush1.msra.mxu0 %v911_v62  ;;  %5155 = vst [vmem:[#allocation41_spill] sm:$0xff] %v3775_v43  ;;  %vm798_vm1 = vcmp.lt.s32.totalorder %v3762_v29, 111  ;;  %vm754_vm2 = vcmp.lt.s32.totalorder %v3762_v29, 112  ;;  %vm710_vm3 = vcmp.lt.s32.totalorder %v3762_v29, 113  ;;  %vm666_vm4 = vcmp.lt.s32.totalorder %v3762_v29, 127 }
 0x197   :  { %v853_v63 = vpop.permute.xlu1 %852  ;;  %v862_v41 = vpop.permute.xlu0 %861  ;;  %1049 = vmatprep.subr.mxu0 %v5147_v6  ;;  %vm591_vm5 = vcmp.lt.s32.totalorder %v3762_v29, 1  ;;  %vm547_vm6 = vcmp.lt.s32.totalorder %v3762_v29, 15  ;;  %vm503_vm7 = vcmp.lt.s32.totalorder %v3762_v29, 16  ;;  %vm460_vm8 = vcmp.lt.s32.totalorder %v3762_v29, 17 }
 0x198   :  { %1050 = vmatpush1.msra.mxu0 %v902_v59  ;;  %v868_v19 = vmul.f32 %v2577_v12, %v862_v41  ;;  %v859_v31 = vmul.f32 %v2576_v5, %v853_v63  ;;  %v3766_v59 = vsub.s32 1, %v3759_v55  ;;  %v3771_v41 = vld [vmem:[%s4939_s2 + $0x20] ss:$8 sm:$0xf] }
 0x199   :  { %1051 = vmatprep.subr.mxu0 %v5147_v6  ;;  %v809_v62 = vrot.slane %v3771_v41, %v3775_v43 }
 0x19a   :  { %1052 = vmatpush1.msra.mxu0 %v893_v17  ;;  %5154 = vst [vmem:[#allocation40_spill] sm:$0xff] %v3766_v59  ;;  %v813_v12 = vrot.slane %v3771_v41, %v3766_v59 }
 0x19b   :  { %v835_v27 = vpop.permute.xlu1 %834  ;;  %v844_v39 = vpop.permute.xlu0 %843  ;;  %1053 = vmatprep.subr.mxu0 %v5147_v6 }
 0x19c   :  { %1054 = vmatpush1.msra.mxu0 %v884_v53  ;;  %v850_v3 = vmul.f32 %v2575_v23, %v844_v39  ;;  %v841_v53 = vmul.f32 %v2574_v47, %v835_v27  ;;  %v992_v27 = vld [vmem:[%s4944_s7] sm:$0xff] }
 0x19d   :  { %1055 = vmatprep.subr.mxu0 %v5147_v6 }
 0x19e   :  { %1056 = vmatpush1.msra.mxu0 %v875_v13 }
 0x19f   :  { %v975_v22 = vpop.permute.xlu1 %974  ;;  %v984_v35 = vpop.permute.xlu0 %983  ;;  %1057 = vmatprep.subr.mxu0 %v5147_v6 }
 0x1a0   :  { %1058 = vmatpush1.msra.mxu0 %v868_v19  ;;  %v990_v47 = vmul.f32 %v2573_v42, %v984_v35  ;;  %v981_v13 = vmul.f32 %v2572_v51, %v975_v22  ;;  %v995_v42 = vld [vmem:[%s4944_s7 + $0x18] sm:$0xff]  ;;  %v994_v51 = vld [vmem:[%s4944_s7 + $0x10] sm:$0xff] }
 0x1a1   :  { %1059 = vmatprep.subr.mxu0 %v5147_v6  ;;  %v3809_v22 = vld [vmem:[%s4939_s2 + $0x7] ss:$8 sm:$0xf] }
 0x1a2   :  { %1060 = vmatpush1.msra.mxu0 %v859_v31 }
 0x1a3   :  { %1061 = vmatprep.subr.mxu0 %v5147_v6  ;;  %v3779_v18 = vpop.permute.xlu1 %794  ;;  %v793_v5 = vpop.permute.xlu0 %792 }
 0x1a4   :  { %1062 = vmatpush1.msra.mxu0 %v850_v3  ;;  %v800_v23 = vsel %vm798_vm1, %v793_v5, %v3779_v18 }
 0x1a5   :  { %1063 = vmatprep.subr.mxu0 %v5147_v6  ;;  %v827_v17 = vmul.f32 %v813_v12, %v800_v23  ;;  %v769_v12 = vrot.slane %v3809_v22, %v3766_v59  ;;  %v3827_v23 = vld [vmem:[%s4939_s2 + $0x6] ss:$8 sm:$0xf] }
 0x1a6   :  { %1064 = vmatpush1.msra.mxu0 %v841_v53  ;;  %v765_v53 = vrot.slane %v3809_v22, %v3775_v43  ;;  %v721_v16 = vrot.slane %v3827_v23, %v3775_v43 }
 0x1a7   :  { %1093 = vmatprep.subr.mxu0 %v5147_v6  ;;  %v3790_v63 = vpop.permute.xlu0 %790 }
 0x1a8   :  { %1094 = vmatpush2.msra.mxu0 %v990_v47  ;;  %v801_v39 = vsel %vm798_vm1, %v3790_v63, %v793_v5 }
 0x1a9   :  { %1095 = vmatprep.subr.mxu0 %v5147_v6  ;;  %v826_v19 = vmul.f32 %v809_v62, %v801_v39  ;;  %v725_v39 = vrot.slane %v3827_v23, %v3766_v59 }
 0x1aa   :  { %1096 = vmatpush2.msra.mxu0 %v981_v13 }
 0x1ab   :  { %1098 = vmatmul.mubr.f32.vlgmr.msra.gmra.mxu0 %v992_v27  ;;  %v749_v31 = vpop.permute.xlu0 %748  ;;  %1306 = vmatprep.subr.mxu0 %v827_v17 }
 0x1ac   :  { %1307 = vmatpush1.msra.mxu0 %v826_v19  ;;  %2584 = vmatprep.mubr.msk.f32.mxu0 %vm1026_vm0, %v995_v42 }
 0x1af   :  { %v3812_v35 = vpop.permute.xlu0 %746  ;;  %1103 = vmatmul.mubr.f32.gmra.mxu0 %v994_v51 }
 0x1b0   :  { %v3814_v3 = vpop.permute.xlu1 %1018  ;;  %1356 = vmatprep.mubr.f32.mxu0 %v5147_v6  ;;  %v757_v5 = vsel %vm754_vm2, %v3812_v35, %v749_v31 }
 0x1b1   :  { %v782_v13 = vmul.f32 %v765_v53, %v757_v5 }
 0x1b3   :  { %v3829_v62 = vpop.permute.xlu0 %706 }
 0x1b4   :  { %v3831_v47 = vpop.permute.xlu1 %750 }
 0x1b5   :  { %v756_v17 = vsel %vm754_vm2, %v749_v31, %v3831_v47  ;;  %v3847_v31 = vld [vmem:[%s4939_s2 + $0x5] ss:$8 sm:$0xf] }
 0x1b6   :  { %v783_v27 = vmul.f32 %v769_v12, %v756_v17  ;;  %v3855_v12 = vld [vmem:[%s4939_s2 + $0x4] ss:$8 sm:$0xf] }
 0x1b7   :  { %v661_v19 = vpop.permute.xlu0 %660  ;;  %v637_v11 = vrot.slane %v3855_v12, %v3766_v59 }
 0x1b8   :  { %v705_v42 = vpop.permute.xlu1 %704  ;;  %1308 = vmatprep.subr.mxu0 %v783_v27 }
 0x1b9   :  { %v712_v51 = vsel %vm710_vm3, %v705_v42, %v3829_v62  ;;  %1309 = vmatpush1.msra.mxu0 %v782_v13  ;;  %v677_v13 = vrot.slane %v3847_v31, %v3775_v43  ;;  %v651_v56 = vmul.f32 %v637_v11, %v3447_v50 }
 0x1ba   :  { %v739_v34 = vmul.f32 %v725_v39, %v712_v51  ;;  %v681_v39 = vrot.slane %v3847_v31, %v3766_v59 }
 0x1bb   :  { %v3850_v53 = vpop.permute.xlu0 %658 }
 0x1bc   :  { %v3857_v5 = vpop.permute.xlu1 %702  ;;  %1310 = vmatprep.subr.mxu0 %v739_v34  ;;  %v669_v51 = vsel %vm666_vm4, %v3850_v53, %v661_v19  ;;  %v3874_v34 = vld [vmem:[%s4939_s2 + $0x3] ss:$8 sm:$0xf] }
 0x1bd   :  { %v713_v17 = vsel %vm710_vm3, %v3857_v5, %v705_v42  ;;  %v694_v30 = vmul.f32 %v677_v13, %v669_v51  ;;  %v606_v60 = vrot.slane %v3874_v34, %v3766_v59  ;;  %v3898_v13 = vld [vmem:[%s4939_s2 + $0x2] ss:$8 sm:$0xf] }
 0x1be   :  { %v738_v27 = vmul.f32 %v721_v16, %v713_v17  ;;  %v633_v16 = vrot.slane %v3855_v12, %v3775_v43 }
 0x1bf   :  { %v3876_v42 = vpop.permute.xlu0 %585 }
 0x1c0   :  { %v3880_v17 = vpop.permute.xlu1 %662  ;;  %1311 = vmatpush1.msra.mxu0 %v738_v27  ;;  %v650_v44 = vmul.f32 %v633_v16, %v3466_v54 }
 0x1c1   :  { %v668_v46 = vsel %vm666_vm4, %v661_v19, %v3880_v17 }
 0x1c2   :  { %v695_v52 = vmul.f32 %v681_v39, %v668_v46  ;;  %v602_v46 = vrot.slane %v3874_v34, %v3775_v43 }
 0x1c3   :  { %v540_v48 = vpop.permute.xlu0 %539 }
 0x1c4   :  { %v584_v36 = vpop.permute.xlu1 %583  ;;  %1312 = vmatprep.subr.mxu0 %v695_v52  ;;  %v558_v52 = vrot.slane %v3898_v13, %v3775_v43 }
 0x1c5   :  { %v594_v27 = vsel %vm591_vm5, %v584_v36, %v3876_v42  ;;  %1313 = vmatpush1.msra.mxu0 %v694_v30 }
 0x1c6   :  { %v620_v19 = vmul.f32 %v606_v60, %v594_v27  ;;  %1314 = vmatprep.subr.mxu0 %v651_v56  ;;  %v562_v60 = vrot.slane %v3898_v13, %v3766_v59 }
 0x1c7   :  { %v3901_v11 = vpop.permute.xlu0 %545  ;;  %1315 = vmatpush1.msra.mxu0 %v650_v44  ;;  %v3918_v44 = vld [vmem:[%s4939_s2 + $0x1] ss:$8 sm:$0xf] }
 0x1c8   :  { %v3903_v50 = vpop.permute.xlu1 %589  ;;  %1316 = vmatprep.subr.mxu0 %v620_v19  ;;  %v551_v56 = vsel %vm547_vm6, %v3901_v11, %v540_v48 }
 0x1c9   :  { %v595_v30 = vsel %vm591_vm5, %v3903_v50, %v584_v36  ;;  %v575_v16 = vmul.f32 %v558_v52, %v551_v56  ;;  %v3946_v56 = vsub.s32 2, %v3759_v55 }
 0x1ca   :  { %v619_v54 = vmul.f32 %v602_v46, %v595_v30  ;;  %v518_v46 = vrot.slane %v3918_v44, %v3766_v59 }
 0x1cb   :  { %v3920_v39 = vpop.permute.xlu0 %497 }
 0x1cc   :  { %v3922_v51 = vpop.permute.xlu1 %541  ;;  %1317 = vmatpush1.msra.mxu0 %v619_v54  ;;  %v514_v54 = vrot.slane %v3918_v44, %v3775_v43 }
 0x1cd   :  { %v550_v36 = vsel %vm547_vm6, %v540_v48, %v3922_v51  ;;  %v3938_v48 = vld [vmem:[%s4939_s2] ss:$8 sm:$0xf] }
 0x1ce   :  { %v576_v27 = vmul.f32 %v562_v60, %v550_v36 }
 0x1cf   :  { %v451_v19 = vpop.permute.xlu0 %450 }
 0x1d0   :  { %v496_v30 = vpop.permute.xlu1 %495  ;;  %1318 = vmatprep.subr.mxu0 %v576_v27 }
 0x1d1   :  { %v506_v32 = vsel %vm503_vm7, %v496_v30, %v3920_v39  ;;  %1319 = vmatpush1.msra.mxu0 %v575_v16  ;;  %v3954_v16 = vsub.s32 3, %v3759_v55  ;;  %v817_v55 = vrot.slane %v3771_v41, %v3946_v56 }
 0x1d2   :  { %v532_v24 = vmul.f32 %v518_v46, %v506_v32  ;;  %v470_v32 = vrot.slane %v3938_v48, %v3775_v43  ;;  %v474_v46 = vrot.slane %v3938_v48, %v3766_v59  ;;  %v3972_v59 = vld [vmem:[#allocation6] sm:$0xff] }
 0x1d3   :  { %v3941_v52 = vpop.permute.xlu0 %456 }
 0x1d4   :  { %v3943_v60 = vpop.permute.xlu1 %501  ;;  %1320 = vmatprep.subr.mxu0 %v532_v24  ;;  %v464_v24 = vsel %vm460_vm8, %v3941_v52, %v451_v19 }
 0x1d5   :  { %v507_v36 = vsel %vm503_vm7, %v3943_v60, %v496_v30  ;;  %v487_v43 = vmul.f32 %v470_v32, %v464_v24 }
 0x1d6   :  { %v531_v27 = vmul.f32 %v514_v54, %v507_v36  ;;  %v821_v54 = vrot.slane %v3771_v41, %v3954_v16  ;;  %v777_v36 = vrot.slane %v3809_v22, %v3954_v16 }
 0x1d7   :  { %v753_v14 = vpop.permute.xlu0 %752 }
 0x1d8   :  { %v3961_v20 = vpop.permute.xlu1 %452  ;;  %1321 = vmatpush1.msra.mxu0 %v531_v27  ;;  %v773_v27 = vrot.slane %v3809_v22, %v3946_v56  ;;  %v729_v22 = vrot.slane %v3827_v23, %v3946_v56 }
 0x1d9   :  { %v463_v30 = vsel %vm460_vm8, %v451_v19, %v3961_v20  ;;  %v758_v19 = vsel %vm754_vm2, %v753_v14, %v3812_v35  ;;  %v733_v35 = vrot.slane %v3827_v23, %v3954_v16 }
 0x1da   :  { %v488_v8 = vmul.f32 %v474_v46, %v463_v30  ;;  %v755_v46 = vsel %vm754_vm2, %v3831_v47, %v753_v14  ;;  %v785_v14 = vmul.f32 %v777_v36, %v758_v19 }
 0x1db   :  { %v665_v41 = vpop.permute.xlu0 %664  ;;  %v784_v47 = vmul.f32 %v773_v27, %v755_v46  ;;  %v610_v46 = vrot.slane %v3874_v34, %v3946_v56 }
 0x1dc   :  { %v797_v32 = vpop.permute.xlu1 %796  ;;  %1322 = vmatprep.subr.mxu0 %v488_v8  ;;  %v667_v23 = vsel %vm666_vm4, %v3880_v17, %v665_v41  ;;  %v614_v17 = vrot.slane %v3874_v34, %v3954_v16 }
 0x1dd   :  { %v799_v24 = vsel %vm798_vm1, %v3779_v18, %v797_v32  ;;  %v802_v30 = vsel %vm798_vm1, %v797_v32, %v3790_v63  ;;  %1323 = vmatpush1.msra.mxu0 %v487_v43  ;;  %v689_v18 = vrot.slane %v3847_v31, %v3954_v16  ;;  %v685_v63 = vrot.slane %v3847_v31, %v3946_v56 }
 0x1de   :  { %v828_v8 = vmul.f32 %v817_v55, %v799_v24  ;;  %v829_v2 = vmul.f32 %v821_v54, %v802_v30  ;;  %2585 = vmatmul.mubr.msk.f32.vlgmr.msra.gmra.mxu0 %vm1288_vm9, %v3972_v59  ;;  %v670_v32 = vsel %vm666_vm4, %v665_v41, %v3850_v53  ;;  %v645_v55 = vrot.slane %v3855_v12, %v3954_v16 }
 0x1df   :  { %1427 = vmatprep.mubr.f32.mxu0 %v5147_v6  ;;  %v641_v53 = vrot.slane %v3855_v12, %v3946_v56  ;;  %v697_v27 = vmul.f32 %v689_v18, %v670_v32  ;;  %v544_v19 = vpop.permute.xlu0 %543  ;;  %v566_v12 = vrot.slane %v3898_v13, %v3946_v56  ;;  %v570_v24 = vrot.slane %v3898_v13, %v3954_v16  ;;  %v4041_v18 = vld [vmem:[#allocation4] sm:$0xff] }
 0x1e0   :  { %v709_v43 = vpop.permute.xlu1 %708  ;;  %1377 = vmatprep.subr.mxu0 %v829_v2  ;;  %v549_v13 = vsel %vm547_vm6, %v3922_v51, %v544_v19 }
 0x1e1   :  { %v711_v54 = vsel %vm710_vm3, %v3829_v62, %v709_v43  ;;  %v714_v31 = vsel %vm710_vm3, %v709_v43, %v3857_v5  ;;  %1378 = vmatpush1.msra.mxu0 %v828_v8  ;;  %v696_v62 = vmul.f32 %v685_v63, %v667_v23  ;;  %v653_v5 = vmul.f32 %v645_v55, %v3457_v40  ;;  %v4051_v43 = vld [vmem:[#allocation4 + $0xf8] sm:$0xff] }
 0x1e2   :  { %v740_v2 = vmul.f32 %v729_v22, %v711_v54  ;;  %v741_v36 = vmul.f32 %v733_v35, %v714_v31  ;;  %1379 = vmatprep.subr.mxu0 %v785_v14  ;;  %v652_v22 = vmul.f32 %v641_v53, %v3471_v58  ;;  %v548_v40 = vsel %vm547_vm6, %v544_v19, %v3901_v11 }
 0x1e3   :  { %1380 = vmatpush1.msra.mxu0 %v784_v47  ;;  %v526_v8 = vrot.slane %v3918_v44, %v3954_v16  ;;  %v578_v58 = vmul.f32 %v570_v24, %v548_v40  ;;  %v577_v51 = vmul.f32 %v566_v12, %v549_v13  ;;  %v242_v63 = vunpack.c.h.bf16 %v4041_v18  ;;  %v455_v54 = vpop.permute.xlu0 %454 }
 0x1e4   :  { %v588_v41 = vpop.permute.xlu1 %587  ;;  %1381 = vmatprep.subr.mxu0 %v741_v36  ;;  %v482_v55 = vrot.slane %v3938_v48, %v3954_v16  ;;  %v461_v31 = vsel %vm460_vm8, %v455_v54, %v3941_v52  ;;  %v462_v53 = vsel %vm460_vm8, %v3961_v20, %v455_v54  ;;  %v5159_v52 = vunpack.c.l.bf16 %v3127_v7 }
 0x1e5   :  { %v592_v30 = vsel %vm591_vm5, %v588_v41, %v3903_v50  ;;  %v593_v34 = vsel %vm591_vm5, %v3876_v42, %v588_v41  ;;  %1382 = vmatpush1.msra.mxu0 %v740_v2  ;;  %v522_v42 = vrot.slane %v3918_v44, %v3946_v56  ;;  %v241_v44 = vunpack.c.l.bf16 %v4041_v18  ;;  %1176 = vmatprep.subr.mxu1 %v242_v63 }
 0x1e6   :  { %v622_v35 = vmul.f32 %v614_v17, %v592_v30  ;;  %1383 = vmatprep.subr.mxu0 %v697_v27  ;;  %v621_v50 = vmul.f32 %v610_v46, %v593_v34  ;;  %v490_v36 = vmul.f32 %v482_v55, %v461_v31  ;;  %v5156_v17 = vunpack.c.h.bf16 %v3113_v1  ;;  %v4169_v31 = vld [vmem:[#allocation4 + $0xa8] sm:$0xff] }
 0x1e7   :  { %1384 = vmatpush1.msra.mxu0 %v696_v62  ;;  %1177 = vmatpush1.msra.mxu1 %v241_v44  ;;  %v5158_v27 = vunpack.c.l.bf16 %v3113_v1  ;;  %v5160_v20 = vunpack.c.h.bf16 %v3137_v9  ;;  %v5161_v19 = vunpack.c.h.bf16 %v3151_v15  ;;  %v5163_v46 = vunpack.c.l.bf16 %v3151_v15 }
 0x1e8   :  { %v500_v14 = vpop.permute.xlu1 %499  ;;  %1385 = vmatprep.subr.mxu0 %v653_v5  ;;  %v5164_v62 = vunpack.c.h.bf16 %v3173_v21  ;;  %v5165_v1 = vunpack.c.h.bf16 %v3189_v25  ;;  %v5167_v41 = vunpack.c.l.bf16 %v3189_v25  ;;  %v5168_v5 = vunpack.c.h.bf16 %v3217_v33 }
 0x1e9   :  { %v504_v11 = vsel %vm503_vm7, %v500_v14, %v3943_v60  ;;  %v505_v47 = vsel %vm503_vm7, %v3920_v39, %v500_v14  ;;  %1386 = vmatpush1.msra.mxu0 %v652_v22  ;;  %v304_v60 = vunpack.c.h.bf16 %v4051_v43  ;;  %v478_v39 = vrot.slane %v3938_v48, %v3946_v56 }
 0x1ea   :  { %v534_v32 = vmul.f32 %v526_v8, %v504_v11  ;;  %1387 = vmatprep.subr.mxu0 %v622_v35  ;;  %v533_v23 = vmul.f32 %v522_v42, %v505_v47  ;;  %v5157_v48 = vunpack.c.h.bf16 %v3127_v7  ;;  %v5166_v7 = vunpack.c.l.bf16 %v3173_v21 }
 0x1eb   :  { %1388 = vmatpush1.msra.mxu0 %v621_v50  ;;  %1217 = vmatprep.subr.mxu1 %v304_v60  ;;  %v489_v2 = vmul.f32 %v478_v39, %v462_v53  ;;  %v5170_v15 = vunpack.c.l.bf16 %v3217_v33  ;;  %v5171_v12 = vunpack.c.l.bf16 %v3233_v37  ;;  %v5172_v24 = vunpack.c.h.bf16 %v3261_v45  ;;  %v4158_v39 = vld [vmem:[#allocation4 + $0xb8] sm:$0xff] }
 0x1ec   :  { %1389 = vmatprep.subr.mxu0 %v578_v58  ;;  %v5173_v21 = vunpack.c.h.bf16 %v3277_v49  ;;  %v5174_v25 = vunpack.c.l.bf16 %v3261_v45  ;;  %v5175_v30 = vunpack.c.l.bf16 %v3277_v49  ;;  %v5176_v34 = vunpack.c.h.bf16 %v3305_v57  ;;  %v4144_v58 = vld [vmem:[#allocation4 + $0xd8] sm:$0xff] }
 0x1ed   :  { %1390 = vmatpush1.msra.mxu0 %v577_v51  ;;  %v5177_v33 = vunpack.c.h.bf16 %v3321_v61  ;;  %v5178_v22 = vunpack.c.l.bf16 %v3305_v57  ;;  %v5179_v45 = vunpack.c.l.bf16 %v3321_v61  ;;  %v5180_v49 = vunpack.c.h.bf16 %v3349_v38 }
 0x1ee   :  { %1391 = vmatprep.subr.mxu0 %v534_v32  ;;  %v5181_v40 = vunpack.c.h.bf16 %v3365_v28  ;;  %v5182_v35 = vunpack.c.l.bf16 %v3349_v38  ;;  %v5183_v8 = vunpack.c.l.bf16 %v3365_v28  ;;  %v5184_v13 = vunpack.c.h.bf16 %v3393_v10  ;;  %v4141_v38 = vld [vmem:[#allocation4 + $0xe8] sm:$0xff] }
 0x1ef   :  { %1392 = vmatpush1.msra.mxu0 %v533_v23  ;;  %v5185_v57 = vunpack.c.h.bf16 %v3409_v4  ;;  %v5186_v61 = vunpack.c.l.bf16 %v3393_v10  ;;  %v5187_v50 = vunpack.c.l.bf16 %v3409_v4  ;;  %v5188_v42 = vunpack.c.h.bf16 %v3587_v26  ;;  %v4151_v4 = vld [vmem:[#allocation4 + $0xc8] sm:$0xff] }
 0x1f0   :  { %1393 = vmatprep.subr.mxu0 %v490_v36  ;;  %v303_v28 = vunpack.c.l.bf16 %v4051_v43  ;;  %v300_v47 = vunpack.c.h.bf16 %v4141_v38  ;;  %v299_v51 = vunpack.c.l.bf16 %v4141_v38  ;;  %v296_v32 = vunpack.c.h.bf16 %v4144_v58 }
 0x1f1   :  { %1394 = vmatpush1.msra.mxu0 %v489_v2  ;;  %v295_v23 = vunpack.c.l.bf16 %v4144_v58  ;;  %v292_v55 = vunpack.c.h.bf16 %v4151_v4  ;;  %v291_v54 = vunpack.c.l.bf16 %v4151_v4  ;;  %v288_v2 = vunpack.c.h.bf16 %v4158_v39 }
 0x1f2   :  { %2586 = vmatmul.mubr.msk.f32.vlgmr.msra.gmra.mxu0 %vm1288_vm9, %v3972_v59  ;;  %2880 = vmatprep.subr.mxu0 %v5156_v17  ;;  %v5162_v59 = vunpack.c.l.bf16 %v3137_v9  ;;  %v5169_v9 = vunpack.c.h.bf16 %v3233_v37  ;;  %v1015_v37 = vld [vmem:[%s4946_s9 + $0x8] sm:$0xff]  ;;  %v287_v36 = vunpack.c.l.bf16 %v4158_v39  ;;  %v4177_v17 = vld [vmem:[#allocation4 + $0x98] sm:$0xff] }
 0x1f3   :  { %2881 = vmatpush3.msra.mxu0 %v5157_v48  ;;  %1023 = vperm.xlu0 %2936, %v1015_v37   ;;  %v284_v48 = vunpack.c.h.bf16 %v4169_v31 }
 0x1f4   :  { %2882 = vmatprep.subr.mxu0 %v5158_v27  ;;  %v283_v27 = vunpack.c.l.bf16 %v4169_v31 }
 0x1f5   :  { %2883 = vmatpush3.msra.mxu0 %v5159_v52  ;;  %v4185_v52 = vld [vmem:[#allocation4 + $0x88] sm:$0xff] }
 0x1f6   :  { %2884 = vmatprep.subr.mxu0 %v5160_v20  ;;  %v280_v20 = vunpack.c.h.bf16 %v4177_v17 }
 0x1f7   :  { %2885 = vmatpush3.msra.mxu0 %v5161_v19  ;;  %v279_v19 = vunpack.c.l.bf16 %v4177_v17 }
 0x1f8   :  { %2886 = vmatprep.subr.mxu0 %v5162_v59  ;;  %v4193_v59 = vld [vmem:[#allocation4 + $0x78] sm:$0xff] }
 0x1f9   :  { %2887 = vmatpush3.msra.mxu0 %v5163_v46  ;;  %v276_v46 = vunpack.c.h.bf16 %v4185_v52 }
 0x1fa   :  { %2888 = vmatprep.subr.mxu0 %v5164_v62  ;;  %v275_v62 = vunpack.c.l.bf16 %v4185_v52 }
 0x1fb   :  { %2889 = vmatpush3.msra.mxu0 %v5165_v1  ;;  %v4201_v1 = vld [vmem:[#allocation4 + $0x68] sm:$0xff] }
 0x1fc   :  { %2890 = vmatprep.subr.mxu0 %v5166_v7  ;;  %v272_v7 = vunpack.c.h.bf16 %v4193_v59  ;;  %v5282_v58 = vunpack.c.h.bf16 %v4201_v1 }
 0x1fd   :  { %2891 = vmatpush3.msra.mxu0 %v5167_v41  ;;  %v5117_v41 = vunpack.c.l.bf16 %v4193_v59 }
 0x1fe   :  { %2892 = vmatprep.subr.mxu0 %v5168_v5  ;;  %v4209_v5 = vld [vmem:[#allocation4 + $0x58] sm:$0xff] }
 0x1ff   :  { %2893 = vmatpush3.msra.mxu0 %v5169_v9  ;;  %v5116_v9 = vunpack.c.h.bf16 %v4201_v1  ;;  %v5284_v4 = vunpack.c.h.bf16 %v4209_v5 }
 0x200   :  { %2894 = vmatprep.subr.mxu0 %v5170_v15  ;;  %v5115_v15 = vunpack.c.l.bf16 %v4201_v1 }
 0x201   :  { %2895 = vmatpush3.msra.mxu0 %v5171_v12  ;;  %v4217_v12 = vld [vmem:[#allocation4 + $0x48] sm:$0xff] }
 0x202   :  { %2896 = vmatprep.subr.mxu0 %v5172_v24  ;;  %v5114_v24 = vunpack.c.h.bf16 %v4209_v5 }
 0x203   :  { %2897 = vmatpush3.msra.mxu0 %v5173_v21  ;;  %v5113_v21 = vunpack.c.l.bf16 %v4209_v5 }
 0x204   :  { %2898 = vmatprep.subr.mxu0 %v5174_v25  ;;  %v4225_v25 = vld [vmem:[#allocation4 + $0x38] sm:$0xff] }
 0x205   :  { %2899 = vmatpush3.msra.mxu0 %v5175_v30  ;;  %v5112_v30 = vunpack.c.h.bf16 %v4217_v12  ;;  %v5110_v37 = vunpack.c.h.bf16 %v4225_v25  ;;  %v5289_v31 = vunpack.c.l.bf16 %v4225_v25 }
 0x206   :  { %2900 = vmatprep.subr.mxu0 %v5176_v34  ;;  %v5111_v34 = vunpack.c.l.bf16 %v4217_v12 }
 0x207   :  { %2901 = vmatpush3.msra.mxu0 %v5177_v33  ;;  %v4233_v33 = vld [vmem:[#allocation4 + $0x28] sm:$0xff] }
 0x208   :  { %2902 = vmatprep.subr.mxu0 %v5178_v22  ;;  %v5109_v22 = vunpack.c.l.bf16 %v4225_v25  ;;  %v5291_v17 = vunpack.c.l.bf16 %v4233_v33 }
 0x209   :  { %2903 = vmatpush3.msra.mxu0 %v5179_v45  ;;  %v4241_v45 = vld [vmem:[#allocation4 + $0x18] sm:$0xff] }
 0x20a   :  { %2904 = vmatprep.subr.mxu0 %v5180_v49  ;;  %v5108_v49 = vunpack.c.h.bf16 %v4233_v33 }
 0x20b   :  { %2905 = vmatpush3.msra.mxu0 %v5181_v40  ;;  %v5106_v40 = vunpack.c.l.bf16 %v4233_v33 }
 0x20c   :  { %2906 = vmatprep.subr.mxu0 %v5182_v35  ;;  %v4249_v35 = vld [vmem:[#allocation4 + $0x8] sm:$0xff] }
 0x20d   :  { %2907 = vmatpush3.msra.mxu0 %v5183_v8  ;;  %v5104_v8 = vunpack.c.h.bf16 %v4241_v45  ;;  %v5294_v52 = vunpack.c.h.bf16 %v4249_v35 }
 0x20e   :  { %2908 = vmatprep.subr.mxu0 %v5184_v13  ;;  %v5103_v13 = vunpack.c.l.bf16 %v4241_v45 }
 0x20f   :  { %2909 = vmatpush3.msra.mxu0 %v5185_v57  ;;  %v5105_v57 = vunpack.c.h.bf16 %v4249_v35 }
 0x210   :  { %2910 = vmatprep.subr.mxu0 %v5186_v61  ;;  %v5107_v61 = vunpack.c.l.bf16 %v4249_v35 }
 0x211   :  { %2911 = vmatpush3.msra.mxu0 %v5187_v50  ;;  %v5189_v50 = vunpack.c.h.bf16 %v3108_v0 }
 0x212   :  { %2242 = vmatprep.subr.mxu0 %v5188_v42  ;;  %v5190_v42 = vld [vmem:[#allocation11_spill] sm:$0xff] }
 0x26b   :  { %v1099_v14 = vpop.f32.mrf.mxu0 }
 0x26c   :  { %v4147_v11 = vadd.f32 %v1099_v14, %v3814_v3  ;;  %v5191_v14 = vunpack.c.h.bf16 %v5190_v42 }
 0x26d   :  { %v1101_v10 = vpop.f32.mrf.mxu0 }
 0x26e   :  { %1211 = vmatmul.mubr.f32.vlgmr.msra.gmra.mxu1 %v4147_v11  ;;  %v5192_v10 = vunpack.c.l.bf16 %v3108_v0  ;;  %v5202_v0 = vld [vmem:[#allocation15_spill] sm:$0xff] }
 0x26f   :  { %1218 = vmatpush1.msra.mxu1 %v303_v28  ;;  %1281 = vmatprep.mubr.f32.mxu1 %v5147_v6  ;;  %v4161_v3 = vpop.f32.mrf.mxu0 }
 0x270   :  { %1219 = vmatprep.subr.mxu1 %v300_v47 }
 0x271   :  { %1220 = vmatpush1.msra.mxu1 %v299_v51  ;;  %v1106_v53 = vpop.f32.mrf.mxu0 }
 0x272   :  { %1221 = vmatprep.subr.mxu1 %v296_v32  ;;  %v5193_v53 = vunpack.c.l.bf16 %v5190_v42 }
 0x273   :  { %1222 = vmatpush1.msra.mxu1 %v295_v23 }
 0x274   :  { %1223 = vmatprep.subr.mxu1 %v292_v55 }
 0x275   :  { %1224 = vmatpush1.msra.mxu1 %v291_v54 }
 0x276   :  { %1225 = vmatprep.subr.mxu1 %v288_v2 }
 0x277   :  { %1226 = vmatpush1.msra.mxu1 %v287_v36 }
 0x278   :  { %1227 = vmatprep.subr.mxu1 %v284_v48 }
 0x279   :  { %1228 = vmatpush1.msra.mxu1 %v283_v27 }
 0x27a   :  { %1229 = vmatprep.subr.mxu1 %v280_v20 }
 0x27b   :  { %1230 = vmatpush1.msra.mxu1 %v279_v19 }
 0x27c   :  { %1231 = vmatprep.subr.mxu1 %v276_v46 }
 0x27d   :  { %1232 = vmatpush1.msra.mxu1 %v275_v62 }
 0x27e   :  { %1233 = vmatprep.subr.mxu1 %v272_v7 }
 0x27f   :  { %1234 = vmatpush1.msra.mxu1 %v5117_v41 }
 0x280   :  { %1235 = vmatprep.subr.mxu1 %v5116_v9 }
 0x281   :  { %1236 = vmatpush1.msra.mxu1 %v5115_v15 }
 0x282   :  { %1237 = vmatprep.subr.mxu1 %v5114_v24 }
 0x283   :  { %1238 = vmatpush1.msra.mxu1 %v5113_v21 }
 0x284   :  { %1239 = vmatprep.subr.mxu1 %v5112_v30 }
 0x285   :  { %1240 = vmatpush1.msra.mxu1 %v5111_v34 }
 0x286   :  { %1241 = vmatprep.subr.mxu1 %v5110_v37 }
 0x287   :  { %1242 = vmatpush1.msra.mxu1 %v5109_v22 }
 0x288   :  { %1243 = vmatprep.subr.mxu1 %v5108_v49 }
 0x289   :  { %1244 = vmatpush1.msra.mxu1 %v5106_v40 }
 0x28a   :  { %1245 = vmatprep.subr.mxu1 %v5104_v8 }
 0x28b   :  { %1246 = vmatpush1.msra.mxu1 %v5103_v13  ;;  %v5194_v13 = vld [vmem:[#allocation12_spill] sm:$0xff] }
 0x28c   :  { %1247 = vmatprep.subr.mxu1 %v5105_v57  ;;  %v5195_v8 = vunpack.c.h.bf16 %v5194_v13  ;;  %v5196_v57 = vld [vmem:[#allocation13_spill] sm:$0xff] }
 0x28d   :  { %1248 = vmatpush1.msra.mxu1 %v5107_v61  ;;  %v5197_v40 = vunpack.c.h.bf16 %v5196_v57  ;;  %v5200_v61 = vld [vmem:[#allocation14_spill] sm:$0xff] }
 0x28e   :  { %1282 = vmatmul.mubr.f32.vlgmr.msra.gmra.mxu1 %v4147_v11  ;;  %2845 = vmatprep.subr.mxu1 %v5189_v50  ;;  %v5198_v11 = vunpack.c.l.bf16 %v5194_v13  ;;  %v5199_v50 = vunpack.c.l.bf16 %v5196_v57  ;;  %v5204_v42 = vunpack.c.l.bf16 %v5200_v61  ;;  %v5208_v13 = vld [vmem:[#allocation17_spill] sm:$0xff] }
 0x28f   :  { %2846 = vmatpush3.msra.mxu1 %v5191_v14  ;;  %v5201_v14 = vunpack.c.h.bf16 %v5200_v61  ;;  %v5214_v61 = vld [vmem:[#allocation19_spill] sm:$0xff] }
 0x290   :  { %2847 = vmatprep.subr.mxu1 %v5192_v10  ;;  %v5203_v10 = vunpack.c.h.bf16 %v5202_v0 }
 0x291   :  { %2848 = vmatpush3.msra.mxu1 %v5193_v53  ;;  %v5206_v53 = vld [vmem:[#allocation16_spill] sm:$0xff] }
 0x292   :  { %2849 = vmatprep.subr.mxu1 %v5195_v8  ;;  %v5205_v8 = vunpack.c.l.bf16 %v5202_v0  ;;  %v5210_v57 = vunpack.c.l.bf16 %v5206_v53 }
 0x293   :  { %2850 = vmatpush3.msra.mxu1 %v5197_v40  ;;  %v5207_v40 = vunpack.c.h.bf16 %v5206_v53  ;;  %v5220_v53 = vld [vmem:[#allocation21_spill] sm:$0xff] }
 0x294   :  { %2851 = vmatprep.subr.mxu1 %v5198_v11  ;;  %v5209_v11 = vunpack.c.h.bf16 %v5208_v13 }
 0x295   :  { %2852 = vmatpush3.msra.mxu1 %v5199_v50  ;;  %v5211_v50 = vunpack.c.l.bf16 %v5208_v13 }
 0x296   :  { %2853 = vmatprep.subr.mxu1 %v5201_v14  ;;  %v5212_v14 = vld [vmem:[#allocation18_spill] sm:$0xff] }
 0x297   :  { %2854 = vmatpush3.msra.mxu1 %v5203_v10  ;;  %v5213_v10 = vunpack.c.h.bf16 %v5212_v14  ;;  %v5216_v0 = vunpack.c.l.bf16 %v5212_v14  ;;  %v5226_v14 = vld [vmem:[#allocation23_spill] sm:$0xff] }
 0x298   :  { %2855 = vmatprep.subr.mxu1 %v5204_v42  ;;  %v5215_v42 = vunpack.c.h.bf16 %v5214_v61 }
 0x299   :  { %2856 = vmatpush3.msra.mxu1 %v5205_v8  ;;  %v5217_v8 = vunpack.c.l.bf16 %v5214_v61 }
 0x29a   :  { %2857 = vmatprep.subr.mxu1 %v5207_v40  ;;  %v5218_v40 = vld [vmem:[#allocation20_spill] sm:$0xff] }
 0x29b   :  { %2858 = vmatpush3.msra.mxu1 %v5209_v11  ;;  %v5219_v11 = vunpack.c.h.bf16 %v5218_v40  ;;  %v5222_v13 = vunpack.c.l.bf16 %v5218_v40  ;;  %v5232_v40 = vld [vmem:[#allocation25_spill] sm:$0xff] }
 0x29c   :  { %2859 = vmatprep.subr.mxu1 %v5210_v57  ;;  %v5221_v57 = vunpack.c.h.bf16 %v5220_v53 }
 0x29d   :  { %2860 = vmatpush3.msra.mxu1 %v5211_v50  ;;  %v5223_v50 = vunpack.c.l.bf16 %v5220_v53 }
 0x29e   :  { %2861 = vmatprep.subr.mxu1 %v5213_v10  ;;  %v5224_v10 = vld [vmem:[#allocation22_spill] sm:$0xff] }
 0x29f   :  { %2862 = vmatpush3.msra.mxu1 %v5215_v42  ;;  %v5225_v42 = vunpack.c.h.bf16 %v5224_v10  ;;  %v5228_v61 = vunpack.c.l.bf16 %v5224_v10 }
 0x2a0   :  { %2863 = vmatprep.subr.mxu1 %v5216_v0  ;;  %v5227_v0 = vunpack.c.h.bf16 %v5226_v14 }
 0x2a1   :  { %2864 = vmatpush3.msra.mxu1 %v5217_v8  ;;  %v5229_v8 = vunpack.c.l.bf16 %v5226_v14 }
 0x2a2   :  { %2865 = vmatprep.subr.mxu1 %v5219_v11  ;;  %v5230_v11 = vld [vmem:[#allocation24_spill] sm:$0xff] }
 0x2a3   :  { %2866 = vmatpush3.msra.mxu1 %v5221_v57  ;;  %v5231_v57 = vunpack.c.h.bf16 %v5230_v11  ;;  %v5234_v53 = vunpack.c.l.bf16 %v5230_v11 }
 0x2a4   :  { %2867 = vmatprep.subr.mxu1 %v5222_v13  ;;  %v5233_v13 = vunpack.c.h.bf16 %v5232_v40 }
 0x2a5   :  { %2868 = vmatpush3.msra.mxu1 %v5223_v50  ;;  %v5235_v50 = vunpack.c.l.bf16 %v5232_v40 }
 0x2a6   :  { %2869 = vmatprep.subr.mxu1 %v5225_v42  ;;  %v1358_v42 = vpop.f32.mrf.mxu0 }
 0x2a7   :  { %2870 = vmatpush3.msra.mxu1 %v5227_v0 }
 0x2a8   :  { %2871 = vmatprep.subr.mxu1 %v5228_v61  ;;  %v1360_v0 = vpop.f32.mrf.mxu0 }
 0x2a9   :  { %2872 = vmatpush3.msra.mxu1 %v5229_v8  ;;  %v1438_v8 = vpop.permute.xlu1 %1437 }
 0x2aa   :  { %2873 = vmatprep.subr.mxu1 %v5231_v57 }
 0x2ab   :  { %2874 = vmatpush3.msra.mxu1 %v5233_v13 }
 0x2ac   :  { %2875 = vmatprep.subr.mxu1 %v5234_v53 }
 0x2ad   :  { %2876 = vmatpush3.msra.mxu1 %v5235_v50 }
 0x2ae   :  { %2135 = vmatprep.subr.mxu1 %v5147_v6 }
 0x2b2   :  { %v1429_v11 = vpop.f32.mrf.mxu0 }
 0x2b4   :  { %v1431_v50 = vpop.f32.mrf.mxu0 }
 0x32e   :  { %v1212_v10 = vpop.f32.mrf.mxu1 }
 0x32f   :  { %v1359_v61 = vadd.f32 %v1358_v42, %v1212_v10 }
 0x330   :  { %v1214_v14 = vpop.f32.mrf.mxu1 }
 0x331   :  { %v1361_v49 = vadd.f32 %v1360_v0, %v1214_v14  ;;  %v1440_v22 = vadd.f32 %v1438_v8, %v1359_v61 }
 0x333   :  { %v1441_v57 = vadd.f32 %v1438_v8, %v1361_v49  ;;  %v4339_v13 = vmax.f32 %v1440_v22, 0.0  ;;  %v5236_v22 = vunpack.c.l.bf16 %v3587_v26  ;;  %v5237_v49 = vld [vmem:[#allocation26_spill] sm:$0xff] }
 0x334   :  { %v5238_v61 = vunpack.c.h.bf16 %v5237_v49 }
 0x335   :  { %v4337_v37 = vmax.f32 %v1441_v57, 0.0  ;;  %v5243_v57 = vld [vmem:[#allocation28_spill] sm:$0xff] }
 0x336   :  { %v5245_v26 = vunpack.c.l.bf16 %v5243_v57 }
 0x337   :  { %1512 = vmatprep.mubr.f32.mxu1 %v4337_v37 }
 0x338   :  { %1513 = vmatmul.mubr.f32.vlgmr.msra.gmra.mxu1 %v4339_v13 }
 0x34e   :  { %v1283_v40 = vpop.f32.mrf.mxu1 }
 0x34f   :  { %v1430_v53 = vadd.f32 %v1429_v11, %v1283_v40  ;;  %v5244_v11 = vunpack.c.h.bf16 %v5243_v57  ;;  %v5246_v40 = vld [vmem:[#allocation29_spill] sm:$0xff] }
 0x350   :  { %v1285_v34 = vpop.f32.mrf.mxu1  ;;  %v5258_v57 = vld [vmem:[#allocation33_spill] sm:$0xff] }
 0x351   :  { %v1432_v30 = vadd.f32 %v1431_v50, %v1285_v34  ;;  %v1442_v42 = vadd.f32 %v1438_v8, %v1430_v53  ;;  %v5239_v34 = vunpack.c.l.bf16 %v5237_v49  ;;  %v5247_v53 = vunpack.c.h.bf16 %v5246_v40  ;;  %v5252_v49 = vld [vmem:[#allocation31_spill] sm:$0xff] }
 0x352   :  { %v5248_v50 = vunpack.c.l.bf16 %v5246_v40  ;;  %v5261_v40 = vld [vmem:[#allocation34_spill] sm:$0xff] }
 0x353   :  { %v1443_v10 = vadd.f32 %v1438_v8, %v1432_v30  ;;  %v4345_v0 = vmax.f32 %v1442_v42, 0.0  ;;  %v5240_v30 = vld [vmem:[#allocation27_spill] sm:$0xff]  ;;  %v5249_v42 = vld [vmem:[#allocation30_spill] sm:$0xff] }
 0x354   :  { %v5241_v14 = vunpack.c.h.bf16 %v5240_v30  ;;  %v5242_v8 = vunpack.c.l.bf16 %v5240_v30  ;;  %v5255_v30 = vld [vmem:[#allocation32_spill] sm:$0xff] }
 0x355   :  { %v4343_v21 = vmax.f32 %v1443_v10, 0.0  ;;  %v5250_v10 = vunpack.c.h.bf16 %v5249_v42 }
 0x357   :  { %1582 = vmatprep.mubr.f32.mxu0 %v4343_v21 }
 0x358   :  { %1583 = vmatmul.mubr.f32.vlgmr.msra.gmra.mxu0 %v4345_v0 }
 0x359   :  { %2243 = vmatpush1.msra.mxu0 %v5236_v22  ;;  %2306 = vmatprep.mubr.f32.mxu0 %v5147_v6  ;;  %v5251_v22 = vunpack.c.l.bf16 %v5249_v42  ;;  %v5264_v42 = vld [vmem:[#allocation35_spill] sm:$0xff] }
 0x35a   :  { %2244 = vmatprep.subr.mxu0 %v5238_v61  ;;  %v5253_v61 = vunpack.c.h.bf16 %v5252_v49 }
 0x35b   :  { %2245 = vmatpush1.msra.mxu0 %v5239_v34  ;;  %v5254_v34 = vunpack.c.l.bf16 %v5252_v49  ;;  %v5267_v49 = vld [vmem:[#allocation36_spill] sm:$0xff] }
 0x35c   :  { %2246 = vmatprep.subr.mxu0 %v5241_v14  ;;  %v5256_v14 = vunpack.c.h.bf16 %v5255_v30 }
 0x35d   :  { %2247 = vmatpush1.msra.mxu0 %v5242_v8  ;;  %v5257_v8 = vunpack.c.l.bf16 %v5255_v30  ;;  %v5270_v30 = vld [vmem:[#allocation37_spill] sm:$0xff] }
 0x35e   :  { %2248 = vmatprep.subr.mxu0 %v5244_v11  ;;  %v5259_v11 = vunpack.c.h.bf16 %v5258_v57 }
 0x35f   :  { %2249 = vmatpush1.msra.mxu0 %v5245_v26  ;;  %v5260_v26 = vunpack.c.l.bf16 %v5258_v57  ;;  %v5273_v57 = vld [vmem:[#allocation38_spill] sm:$0xff] }
 0x360   :  { %2250 = vmatprep.subr.mxu0 %v5247_v53  ;;  %v5262_v53 = vunpack.c.h.bf16 %v5261_v40 }
 0x361   :  { %2251 = vmatpush1.msra.mxu0 %v5248_v50  ;;  %v5263_v50 = vunpack.c.l.bf16 %v5261_v40  ;;  %v5276_v40 = vld [vmem:[#allocation39_spill] sm:$0xff] }
 0x362   :  { %2252 = vmatprep.subr.mxu0 %v5250_v10  ;;  %v5265_v10 = vunpack.c.h.bf16 %v5264_v42 }
 0x363   :  { %2253 = vmatpush1.msra.mxu0 %v5251_v22  ;;  %v5266_v22 = vunpack.c.l.bf16 %v5264_v42 }
 0x364   :  { %2254 = vmatprep.subr.mxu0 %v5253_v61  ;;  %v5268_v61 = vunpack.c.h.bf16 %v5267_v49 }
 0x365   :  { %2255 = vmatpush1.msra.mxu0 %v5254_v34  ;;  %v5269_v34 = vunpack.c.l.bf16 %v5267_v49 }
 0x366   :  { %2256 = vmatprep.subr.mxu0 %v5256_v14  ;;  %v5271_v14 = vunpack.c.h.bf16 %v5270_v30 }
 0x367   :  { %2257 = vmatpush1.msra.mxu0 %v5257_v8  ;;  %v5272_v8 = vunpack.c.l.bf16 %v5270_v30 }
 0x368   :  { %2258 = vmatprep.subr.mxu0 %v5259_v11  ;;  %v5274_v11 = vunpack.c.h.bf16 %v5273_v57 }
 0x369   :  { %2259 = vmatpush1.msra.mxu0 %v5260_v26  ;;  %v5275_v26 = vunpack.c.l.bf16 %v5273_v57 }
 0x36a   :  { %2260 = vmatprep.subr.mxu0 %v5262_v53  ;;  %v5277_v53 = vunpack.c.h.bf16 %v5276_v40 }
 0x36b   :  { %2261 = vmatpush1.msra.mxu0 %v5263_v50  ;;  %v5278_v50 = vunpack.c.l.bf16 %v5276_v40  ;;  %v2609_v40 = vld [vmem:[%s4940_s3 + $0x5] ss:$0 sm:$0xff] }
 0x36c   :  { %2262 = vmatprep.subr.mxu0 %v5265_v10 }
 0x36d   :  { %2263 = vmatpush1.msra.mxu0 %v5266_v22 }
 0x36e   :  { %2264 = vmatprep.subr.mxu0 %v5268_v61 }
 0x36f   :  { %2265 = vmatpush1.msra.mxu0 %v5269_v34 }
 0x370   :  { %2266 = vmatprep.subr.mxu0 %v5271_v14  ;;  %v1024_v14 = vpop.permute.xlu0 %1023 }
 0x371   :  { %2267 = vmatpush1.msra.mxu0 %v5272_v8  ;;  %v2610_v8 = vld [vmem:[%s4940_s3 + $0x6] ss:$0 sm:$0xff] }
 0x372   :  { %2268 = vmatprep.subr.mxu0 %v5274_v11 }
 0x373   :  { %2269 = vmatpush1.msra.mxu0 %v5275_v26 }
 0x374   :  { %2270 = vmatprep.subr.mxu0 %v5277_v53 }
 0x375   :  { %2271 = vmatpush1.msra.mxu0 %v5278_v50 }
 0x376   :  { %2272 = vmatprep.subr.mxu0 %v242_v63  ;;  %v1105_v63 = vadd.f32 %v4161_v3, %v1024_v14  ;;  %v2529_v3 = vld [vmem:[%s4949_s12] sm:$0xff] }
 0x377   :  { %2273 = vmatpush1.msra.mxu0 %v241_v44  ;;  %v2113_v44 = vld [vmem:[%s4948_s11 + $0x8] sm:$0xff] }
 0x378   :  { %v4423_v18 = vmax.f32 %v1105_v63, 0.0  ;;  %2613 = vmatprep.mubr.msk.f32.mxu1 %vm1026_vm0, %v2113_v44  ;;  %v2605_v44 = vld [vmem:[%s4940_s3 + $0x1] ss:$0 sm:$0xff] }
 0x3f8   :  { %v2877_v42 = vpop.f32.mrf.mxu1 }
 0x3fa   :  { %v2878_v10 = vpop.f32.mrf.mxu1 }
 0x3fb   :  { %v2879_v61 = vadd.f32 %v2878_v10, %v2877_v42  ;;  %v2607_v10 = vld [vmem:[%s4940_s3 + $0x3] ss:$0 sm:$0xff] }
 0x418   :  { %v2912_v22 = vpop.f32.mrf.mxu0 }
 0x41a   :  { %v2913_v49 = vpop.f32.mrf.mxu0 }
 0x41b   :  { %v2914_v34 = vadd.f32 %v2913_v49, %v2912_v22  ;;  %v2608_v22 = vld [vmem:[%s4940_s3 + $0x4] ss:$0 sm:$0xff] }
 0x41d   :  { %v4412_v30 = vadd.f32 %v2914_v34, %v2879_v61  ;;  %v2606_v34 = vld [vmem:[%s4940_s3 + $0x2] ss:$0 sm:$0xff] }
 0x41f   :  { %2060 = vrot.lane.b32.xlu0 %v4412_v30, %s3011_s20  ;;  %2085 = vrot.lane.b32.xlu1 %v4412_v30, %s3012_s21  ;;  %v2074_v49 = vmul.f32 %v2608_v22, %v4412_v30 }
 0x423   :  { %2042 = vrot.lane.b32.xlu0 %v4412_v30, %s3017_s24  ;;  %2076 = vrot.lane.b32.xlu1 %v4412_v30, %s3015_s6 }
 0x427   :  { %2024 = vrot.lane.b32.xlu0 %v4423_v18, %s3019_s27  ;;  %2051 = vrot.lane.b32.xlu1 %v4412_v30, %s3014_s22 }
 0x42b   :  { %2006 = vrot.lane.b32.xlu0 %v4423_v18, %s3012_s21  ;;  %2033 = vrot.lane.b32.xlu1 %v4412_v30, %s3016_s23 }
 0x42f   :  { %1981 = vrot.lane.b32.xlu0 %v4423_v18, %s3011_s20  ;;  %2015 = vrot.lane.b32.xlu1 %v4423_v18, %s3018_s26 }
 0x433   :  { %1963 = vrot.lane.b32.xlu0 %v4423_v18, %s3017_s24  ;;  %1997 = vrot.lane.b32.xlu1 %v4423_v18, %s3015_s6 }
 0x437   :  { %2103 = vrot.lane.b32.xlu0 %v4412_v30, %s3019_s27  ;;  %1972 = vrot.lane.b32.xlu1 %v4423_v18, %s3014_s22 }
 0x43b   :  { %1914 = vrot.lane.b32.xlu0 %v4337_v37, %s3020_s10  ;;  %1954 = vrot.lane.b32.xlu1 %v4423_v18, %s3016_s23 }
 0x43f   :  { %1912 = vrot.lane.b32.xlu0 %v4339_v13, %s3020_s10  ;;  %2094 = vrot.lane.b32.xlu1 %v4412_v30, %s3018_s26  ;;  %v2604_v30 = vld [vmem:[%s4940_s3] ss:$0 sm:$0xff] }
 0x443   :  { %1874 = vrot.lane.b32.xlu0 %v4345_v0, %s3021_s30  ;;  %1916 = vrot.lane.b32.xlu1 %v4345_v0, %s3020_s10 }
 0x447   :  { %1830 = vrot.lane.b32.xlu0 %v4337_v37, %s3022_s14  ;;  %1872 = vrot.lane.b32.xlu1 %v4337_v37, %s3021_s30 }
 0x44b   :  { %1828 = vrot.lane.b32.xlu0 %v4339_v13, %s3022_s14  ;;  %1870 = vrot.lane.b32.xlu1 %v4339_v13, %s3021_s30 }
 0x44f   :  { %1790 = vrot.lane.b32.xlu0 %v4345_v0, %s3015_s6  ;;  %1832 = vrot.lane.b32.xlu1 %v4345_v0, %s3022_s14 }
 0x453   :  { %1714 = vrot.lane.b32.xlu0 %v4339_v13, %s3011_s20  ;;  %1788 = vrot.lane.b32.xlu1 %v4337_v37, %s3015_s6 }
 0x457   :  { %1720 = vrot.lane.b32.xlu0 %v4343_v21, %s3011_s20  ;;  %1786 = vrot.lane.b32.xlu1 %v4339_v13, %s3015_s6 }
 0x45b   :  { %1674 = vrot.lane.b32.xlu0 %v4337_v37, %s3023_s15  ;;  %1716 = vrot.lane.b32.xlu1 %v4337_v37, %s3011_s20 }
 0x45f   :  { %1630 = vrot.lane.b32.xlu0 %v4339_v13, %s3008_s17  ;;  %1672 = vrot.lane.b32.xlu1 %v4339_v13, %s3023_s15 }
 0x463   :  { %1636 = vrot.lane.b32.xlu0 %v4343_v21, %s3008_s17  ;;  %1678 = vrot.lane.b32.xlu1 %v4343_v21, %s3023_s15 }
 0x467   :  { %1590 = vrot.lane.b32.xlu0 %v4337_v37, %s3024_s16  ;;  %1632 = vrot.lane.b32.xlu1 %v4337_v37, %s3008_s17 }
 0x46b   :  { %1918 = vrot.lane.b32.xlu0 %v4343_v21, %s3020_s10  ;;  %1588 = vrot.lane.b32.xlu1 %v4339_v13, %s3024_s16 }
 0x46f   :  { %1834 = vrot.lane.b32.xlu0 %v4343_v21, %s3022_s14  ;;  %1594 = vrot.lane.b32.xlu1 %v4343_v21, %s3024_s16 }
 0x473   :  { %1718 = vrot.lane.b32.xlu0 %v4345_v0, %s3011_s20  ;;  %1876 = vrot.lane.b32.xlu1 %v4343_v21, %s3021_s30 }
 0x477   :  { %1634 = vrot.lane.b32.xlu0 %v4345_v0, %s3008_s17  ;;  %1792 = vrot.lane.b32.xlu1 %v4343_v21, %s3015_s6 }
 0x47b   :  { %2532 = vperm.xlu0 %2936, %v2529_v3   ;;  %1676 = vrot.lane.b32.xlu1 %v4345_v0, %s3023_s15 }
 0x47f   :  { %1592 = vrot.lane.b32.xlu1 %v4345_v0, %s3024_s16 }
 0x491   :  { %v2061_v57 = vpop.permute.xlu0 %2060  ;;  %v2086_v11 = vpop.permute.xlu1 %2085 }
 0x492   :  { %v2092_v26 = vmul.f32 %v2610_v8, %v2086_v11  ;;  %v2067_v63 = vmul.f32 %v2607_v10, %v2061_v57  ;;  %v2603_v57 = vld [vmem:[%s4940_s3 + $0x8] ss:$0 sm:$0xff] }
 0x494   :  { %2136 = vmatpush1.msra.mxu1 %v2092_v26 }
 0x495   :  { %v2043_v53 = vpop.permute.xlu0 %2042  ;;  %v2077_v50 = vpop.permute.xlu1 %2076  ;;  %2137 = vmatprep.subr.mxu1 %v5147_v6 }
 0x496   :  { %v2083_v42 = vmul.f32 %v2609_v40, %v2077_v50  ;;  %v2049_v50 = vmul.f32 %v2605_v44, %v2043_v53 }
 0x498   :  { %2138 = vmatpush1.msra.mxu1 %v2083_v42 }
 0x499   :  { %v2025_v61 = vpop.permute.xlu0 %2024  ;;  %2139 = vmatprep.subr.mxu1 %v5147_v6  ;;  %v2052_v14 = vpop.permute.xlu1 %2051 }
 0x49a   :  { %2140 = vmatpush1.msra.mxu1 %v2074_v49  ;;  %v2058_v3 = vmul.f32 %v2606_v34, %v2052_v14  ;;  %v2602_v14 = vld [vmem:[%s4940_s3 + $0x7] ss:$0 sm:$0xff]  ;;  %v2031_v24 = vmul.f32 %v2603_v57, %v2025_v61  ;;  %v1995_v61 = vmul.f32 %v2608_v22, %v4423_v18 }
 0x49b   :  { %2141 = vmatprep.subr.mxu1 %v5147_v6 }
 0x49c   :  { %2142 = vmatpush1.msra.mxu1 %v2067_v63 }
 0x49d   :  { %v2007_v11 = vpop.permute.xlu0 %2006  ;;  %v2034_v26 = vpop.permute.xlu1 %2033  ;;  %2143 = vmatprep.subr.mxu1 %v5147_v6 }
 0x49e   :  { %2144 = vmatpush1.msra.mxu1 %v2058_v3  ;;  %v2040_v42 = vmul.f32 %v2604_v30, %v2034_v26  ;;  %v2013_v26 = vmul.f32 %v2610_v8, %v2007_v11  ;;  %v4563_v8 = vld [vmem:[%s4939_s2 + $0x20] ss:$8 sm:$0xf] }
 0x49f   :  { %2145 = vmatprep.subr.mxu1 %v5147_v6 }
 0x4a0   :  { %2146 = vmatpush1.msra.mxu1 %v2049_v50 }
 0x4a1   :  { %v1982_v49 = vpop.permute.xlu0 %1981  ;;  %v2016_v63 = vpop.permute.xlu1 %2015  ;;  %2147 = vmatprep.subr.mxu1 %v5147_v6 }
 0x4a2   :  { %2148 = vmatpush1.msra.mxu1 %v2040_v42  ;;  %v2022_v53 = vmul.f32 %v2602_v14, %v2016_v63 }
 0x4a3   :  { %2149 = vmatprep.subr.mxu1 %v5147_v6 }
 0x4a4   :  { %2150 = vmatpush1.msra.mxu1 %v2031_v24  ;;  %v1988_v24 = vmul.f32 %v2607_v10, %v1982_v49 }
 0x4a5   :  { %v1964_v3 = vpop.permute.xlu0 %1963  ;;  %v1998_v15 = vpop.permute.xlu1 %1997  ;;  %2151 = vmatprep.subr.mxu1 %v5147_v6 }
 0x4a6   :  { %2152 = vmatpush1.msra.mxu1 %v2022_v53  ;;  %v2004_v50 = vmul.f32 %v2609_v40, %v1998_v15  ;;  %v5279_v40 = vld [vmem:[#allocation41_spill] sm:$0xff]  ;;  %v1970_v22 = vmul.f32 %v2605_v44, %v1964_v3 }
 0x4a7   :  { %2153 = vmatprep.subr.mxu1 %v5147_v6  ;;  %v1929_v18 = vrot.slane %v4563_v8, %v5279_v40 }
 0x4a8   :  { %2154 = vmatpush1.msra.mxu1 %v2013_v26 }
 0x4a9   :  { %v2104_v9 = vpop.permute.xlu0 %2103  ;;  %v1973_v41 = vpop.permute.xlu1 %1972  ;;  %2155 = vmatprep.subr.mxu1 %v5147_v6 }
 0x4aa   :  { %2156 = vmatpush1.msra.mxu1 %v2004_v50  ;;  %v1979_v15 = vmul.f32 %v2606_v34, %v1973_v41  ;;  %v5280_v34 = vld [vmem:[#allocation40_spill] sm:$0xff]  ;;  %v2110_v44 = vmul.f32 %v2603_v57, %v2104_v9 }
 0x4ab   :  { %2157 = vmatprep.subr.mxu1 %v5147_v6  ;;  %v1933_v26 = vrot.slane %v4563_v8, %v5280_v34 }
 0x4ac   :  { %2158 = vmatpush1.msra.mxu1 %v1995_v61 }
 0x4ad   :  { %v1915_v11 = vpop.permute.xlu0 %1914  ;;  %v1955_v42 = vpop.permute.xlu1 %1954  ;;  %2159 = vmatprep.subr.mxu1 %v5147_v6 }
 0x4ae   :  { %2160 = vmatpush1.msra.mxu1 %v1988_v24  ;;  %v1961_v63 = vmul.f32 %v2604_v30, %v1955_v42  ;;  %v2112_v24 = vld [vmem:[%s4948_s11] sm:$0xff] }
 0x4af   :  { %2161 = vmatprep.subr.mxu1 %v5147_v6 }
 0x4b0   :  { %2162 = vmatpush1.msra.mxu1 %v1979_v15  ;;  %v4696_v15 = vld [vmem:[%s4939_s2 + $0x7] ss:$8 sm:$0xf] }
 0x4b1   :  { %v4569_v10 = vpop.permute.xlu0 %1912  ;;  %v2095_v49 = vpop.permute.xlu1 %2094  ;;  %2163 = vmatprep.subr.mxu1 %v5147_v6 }
 0x4b2   :  { %v1922_v53 = vsel %vm798_vm1, %v4569_v10, %v1915_v11  ;;  %2164 = vmatpush1.msra.mxu1 %v1970_v22  ;;  %v2101_v30 = vmul.f32 %v2602_v14, %v2095_v49  ;;  %v4703_v22 = vld [vmem:[%s4939_s2 + $0x6] ss:$8 sm:$0xf] }
 0x4b3   :  { %v4575_v41 = vmul.f32 %v1929_v18, %v1922_v53  ;;  %2165 = vmatprep.subr.mxu1 %v5147_v6  ;;  %v1891_v18 = vrot.slane %v4696_v15, %v5280_v34  ;;  %v1887_v53 = vrot.slane %v4696_v15, %v5279_v40 }
 0x4b4   :  { %2166 = vmatpush1.msra.mxu1 %v1961_v63 }
 0x4b5   :  { %v4580_v3 = vpop.permute.xlu0 %1874  ;;  %v1917_v50 = vpop.permute.xlu1 %1916  ;;  %2195 = vmatprep.subr.mxu1 %v5147_v6 }
 0x4b6   :  { %v1921_v61 = vsel %vm798_vm1, %v1915_v11, %v1917_v50  ;;  %2196 = vmatpush2.msra.mxu1 %v2110_v44 }
 0x4b7   :  { %v1947_v42 = vmul.f32 %v1933_v26, %v1921_v61  ;;  %2197 = vmatprep.subr.mxu1 %v5147_v6  ;;  %v4715_v26 = vld [vmem:[%s4939_s2 + $0x5] ss:$8 sm:$0xf] }
 0x4b8   :  { %2198 = vmatpush2.msra.mxu1 %v2101_v30  ;;  %v1845_v30 = vrot.slane %v4703_v22, %v5279_v40 }
 0x4b9   :  { %v4589_v9 = vpop.permute.xlu0 %1830  ;;  %2401 = vmatprep.subr.mxu0 %v1947_v42  ;;  %2200 = vmatmul.mubr.f32.vlgmr.msra.gmra.mxu1 %v2112_v24 }
 0x4ba   :  { %2313 = vmatprep.subr.mxu1 %v304_v60  ;;  %2377 = vmatprep.mubr.f32.mxu1 %v5147_v6 }
 0x4bb   :  { %2314 = vmatpush1.msra.mxu1 %v303_v28  ;;  %v5281_v28 = vunpack.c.l.bf16 %v4193_v59  ;;  %v1937_v59 = vrot.slane %v4563_v8, %v3946_v56 }
 0x4bc   :  { %2315 = vmatprep.subr.mxu1 %v300_v47 }
 0x4bd   :  { %v4598_v57 = vpop.permute.xlu0 %1828  ;;  %2316 = vmatpush1.msra.mxu1 %v299_v51  ;;  %v5283_v51 = vunpack.c.l.bf16 %v4201_v1 }
 0x4be   :  { %2317 = vmatprep.subr.mxu1 %v296_v32  ;;  %v5285_v32 = vunpack.c.l.bf16 %v4209_v5 }
 0x4bf   :  { %2318 = vmatpush1.msra.mxu1 %v295_v23  ;;  %v5286_v23 = vunpack.c.h.bf16 %v4217_v12 }
 0x4c0   :  { %2319 = vmatprep.subr.mxu1 %v292_v55  ;;  %v5287_v55 = vunpack.c.l.bf16 %v4217_v12 }
 0x4c1   :  { %v4608_v60 = vpop.permute.xlu0 %1790  ;;  %2320 = vmatpush1.msra.mxu1 %v291_v54  ;;  %v5288_v54 = vunpack.c.h.bf16 %v4225_v25 }
 0x4c2   :  { %2321 = vmatprep.subr.mxu1 %v288_v2  ;;  %v5290_v2 = vunpack.c.h.bf16 %v4233_v33 }
 0x4c3   :  { %2322 = vmatpush1.msra.mxu1 %v287_v36 }
 0x4c4   :  { %2323 = vmatprep.subr.mxu1 %v284_v48  ;;  %v5292_v48 = vunpack.c.h.bf16 %v4241_v45 }
 0x4c5   :  { %v4618_v43 = vpop.permute.xlu0 %1714  ;;  %2324 = vmatpush1.msra.mxu1 %v283_v27  ;;  %v5293_v27 = vunpack.c.l.bf16 %v4241_v45 }
 0x4c6   :  { %2325 = vmatprep.subr.mxu1 %v280_v20 }
 0x4c7   :  { %2326 = vmatpush1.msra.mxu1 %v279_v19  ;;  %v5295_v19 = vunpack.c.l.bf16 %v4249_v35 }
 0x4c8   :  { %2327 = vmatprep.subr.mxu1 %v276_v46 }
 0x4c9   :  { %v4628_v38 = vpop.permute.xlu0 %1720  ;;  %2328 = vmatpush1.msra.mxu1 %v275_v62 }
 0x4ca   :  { %2329 = vmatprep.subr.mxu1 %v272_v7  ;;  %v1873_v7 = vpop.permute.xlu1 %1872 }
 0x4cb   :  { %2330 = vmatpush1.msra.mxu1 %v5281_v28  ;;  %v1879_v63 = vsel %vm754_vm2, %v1873_v7, %v4580_v3  ;;  %v1838_v28 = vsel %vm710_vm3, %v4598_v57, %v4589_v9 }
 0x4cc   :  { %2331 = vmatprep.subr.mxu1 %v5282_v58  ;;  %v1905_v42 = vmul.f32 %v1891_v18, %v1879_v63  ;;  %v1807_v58 = vrot.slane %v4715_v26, %v5280_v34  ;;  %v4782_v63 = vld [vmem:[%s4939_s2 + $0x1] ss:$8 sm:$0xf] }
 0x4cd   :  { %v4638_v47 = vpop.permute.xlu0 %1674  ;;  %2332 = vmatpush1.msra.mxu1 %v5283_v51  ;;  %v4737_v51 = vld [vmem:[%s4939_s2 + $0x4] ss:$8 sm:$0xf] }
 0x4ce   :  { %2333 = vmatprep.subr.mxu1 %v5284_v4  ;;  %v4681_v5 = vpop.permute.xlu1 %1870 }
 0x4cf   :  { %2334 = vmatpush1.msra.mxu1 %v5285_v32  ;;  %v1880_v44 = vsel %vm754_vm2, %v4681_v5, %v1873_v7 }
 0x4d0   :  { %2335 = vmatprep.subr.mxu1 %v5286_v23  ;;  %v1904_v4 = vmul.f32 %v1887_v53, %v1880_v44  ;;  %v1803_v23 = vrot.slane %v4715_v26, %v5279_v40 }
 0x4d1   :  { %v4648_v39 = vpop.permute.xlu0 %1630  ;;  %2336 = vmatpush1.msra.mxu1 %v5287_v55 }
 0x4d2   :  { %2337 = vmatprep.subr.mxu1 %v5288_v54  ;;  %v4683_v12 = vpop.permute.xlu1 %1832  ;;  %v4749_v54 = vld [vmem:[%s4939_s2 + $0x3] ss:$8 sm:$0xf] }
 0x4d3   :  { %2338 = vmatpush1.msra.mxu1 %v5289_v31  ;;  %v1837_v61 = vsel %vm710_vm3, %v4589_v9, %v4683_v12 }
 0x4d4   :  { %2339 = vmatprep.subr.mxu1 %v5290_v2 }
 0x4d5   :  { %v4658_v36 = vpop.permute.xlu0 %1636  ;;  %2340 = vmatpush1.msra.mxu1 %v5291_v17  ;;  %v1765_v17 = vrot.slane %v4737_v51, %v5280_v34 }
 0x4d6   :  { %2341 = vmatprep.subr.mxu1 %v5292_v48  ;;  %v1789_v25 = vpop.permute.xlu1 %1788  ;;  %v4761_v48 = vld [vmem:[%s4939_s2 + $0x2] ss:$8 sm:$0xf] }
 0x4d7   :  { %2342 = vmatpush1.msra.mxu1 %v5293_v27  ;;  %v1795_v32 = vsel %vm666_vm4, %v1789_v25, %v4608_v60  ;;  %v1761_v27 = vrot.slane %v4737_v51, %v5279_v40  ;;  %v1693_v18 = vrot.slane %v4761_v48, %v5280_v34  ;;  %v1779_v53 = vmul.f32 %v1765_v17, %v4337_v37 }
 0x4d8   :  { %2343 = vmatprep.subr.mxu1 %v5294_v52  ;;  %v1821_v52 = vmul.f32 %v1807_v58, %v1795_v32  ;;  %v1647_v58 = vrot.slane %v4782_v63, %v5279_v40  ;;  %v1941_v17 = vrot.slane %v4563_v8, %v3954_v16 }
 0x4d9   :  { %v4668_v20 = vpop.permute.xlu0 %1590  ;;  %2344 = vmatpush1.msra.mxu1 %v5295_v19  ;;  %v1735_v19 = vrot.slane %v4749_v54, %v5280_v34 }
 0x4da   :  { %v4685_v33 = vpop.permute.xlu1 %1786 }
 0x4db   :  { %v1796_v31 = vsel %vm666_vm4, %v4685_v33, %v1789_v25  ;;  %v1725_v25 = vsel %vm591_vm5, %v4628_v38, %v4618_v43 }
 0x4dd   :  { %v4674_v46 = vpop.permute.xlu0 %1918 }
 0x4de   :  { %v1920_v62 = vsel %vm798_vm1, %v1917_v50, %v4674_v46  ;;  %v4687_v45 = vpop.permute.xlu1 %1716  ;;  %v1849_v50 = vrot.slane %v4703_v22, %v5280_v34 }
 0x4df   :  { %v4679_v1 = vmul.f32 %v1937_v59, %v1920_v62  ;;  %v1731_v59 = vrot.slane %v4749_v54, %v5279_v40  ;;  %v1820_v62 = vmul.f32 %v1803_v23, %v1796_v31  ;;  %v1724_v7 = vsel %vm591_vm5, %v4618_v43, %v4687_v45  ;;  %v4793_v43 = vld [vmem:[%s4939_s2] ss:$8 sm:$0xf] }
 0x4e0   :  { %v1863_v55 = vmul.f32 %v1849_v50, %v1837_v61  ;;  %v1689_v50 = vrot.slane %v4761_v48, %v5279_v40  ;;  %v1749_v61 = vmul.f32 %v1735_v19, %v1724_v7  ;;  %v1609_v32 = vrot.slane %v4793_v43, %v5280_v34 }
 0x4e2   :  { %v1673_v35 = vpop.permute.xlu1 %1672 }
 0x4e3   :  { %v1682_v44 = vsel %vm547_vm6, %v1673_v35, %v4638_v47 }
 0x4e6   :  { %v4689_v14 = vpop.permute.xlu1 %1678 }
 0x4e7   :  { %v1683_v37 = vsel %vm547_vm6, %v4689_v14, %v1673_v35  ;;  %v1641_v35 = vsel %vm503_vm7, %v4658_v36, %v4648_v39 }
 0x4e8   :  { %v1706_v23 = vmul.f32 %v1689_v50, %v1683_v37 }
 0x4ea   :  { %v4691_v11 = vpop.permute.xlu1 %1632 }
 0x4ee   :  { %v4705_v49 = vpop.permute.xlu1 %1588 }
 0x4f2   :  { %v4754_v2 = vpop.permute.xlu1 %1594 }
 0x579   :  { %v2201_v24 = vpop.f32.mrf.mxu1 }
 0x57a   :  { %2307 = vmatmul.mubr.f32.vlgmr.msra.gmra.mxu0 %v2201_v24  ;;  %2378 = vmatmul.mubr.f32.vlgmr.msra.gmra.mxu1 %v2201_v24  ;;  %v1651_v24 = vrot.slane %v4782_v63, %v5280_v34  ;;  %v1599_v34 = vsel %vm460_vm8, %v4754_v2, %v4705_v49 }
 0x57b   :  { %2402 = vmatpush1.msra.mxu0 %v4575_v41  ;;  %v2203_v9 = vpop.f32.mrf.mxu1  ;;  %2451 = vmatprep.mubr.f32.mxu0 %v5147_v6  ;;  %v1862_v41 = vmul.f32 %v1845_v30, %v1838_v28  ;;  %v1778_v30 = vmul.f32 %v1761_v27, %v4339_v13  ;;  %v1748_v28 = vmul.f32 %v1731_v59, %v1725_v25 }
 0x57c   :  { %2403 = vmatprep.subr.mxu0 %v1905_v42  ;;  %v1877_v42 = vpop.permute.xlu1 %1876  ;;  %v1707_v13 = vmul.f32 %v1693_v18, %v1682_v44  ;;  %v1598_v9 = vsel %vm460_vm8, %v4705_v49, %v4668_v20  ;;  %v1923_v27 = vsel %vm798_vm1, %v4674_v46, %v4569_v10  ;;  %v1895_v59 = vrot.slane %v4696_v15, %v3946_v56 }
 0x57d   :  { %2404 = vmatpush1.msra.mxu0 %v1904_v4  ;;  %v1640_v4 = vsel %vm503_vm7, %v4648_v39, %v4691_v11  ;;  %v1664_v39 = vmul.f32 %v1647_v58, %v1641_v35  ;;  %v1881_v49 = vsel %vm754_vm2, %v1877_v42, %v4681_v5  ;;  %v1949_v7 = vmul.f32 %v1941_v17, %v1923_v27  ;;  %v2937_v27 = vld [vmem:[%s4937_s0] sm:$0xff] }
 0x57e   :  { %2405 = vmatprep.subr.mxu0 %v1863_v55  ;;  %v1605_v55 = vrot.slane %v4793_v43, %v5279_v40  ;;  %v1665_v31 = vmul.f32 %v1651_v24, %v1640_v4  ;;  %v1623_v40 = vmul.f32 %v1609_v32, %v1598_v9  ;;  %v1857_v10 = vrot.slane %v4703_v22, %v3954_v16 }
 0x57f   :  { %2406 = vmatpush1.msra.mxu0 %v1862_v41  ;;  %v1835_v41 = vpop.permute.xlu0 %1834  ;;  %v1878_v46 = vsel %vm754_vm2, %v4580_v3, %v1877_v42  ;;  %v1853_v25 = vrot.slane %v4703_v22, %v3946_v56  ;;  %v1815_v44 = vrot.slane %v4715_v26, %v3954_v16  ;;  %v1811_v22 = vrot.slane %v4715_v26, %v3946_v56 }
 0x580   :  { %2407 = vmatprep.subr.mxu0 %v1821_v52  ;;  %v1899_v52 = vrot.slane %v4696_v15, %v3954_v16  ;;  %v1793_v19 = vpop.permute.xlu1 %1792  ;;  %v1622_v8 = vmul.f32 %v1605_v55, %v1599_v34  ;;  %v1839_v15 = vsel %vm710_vm3, %v1835_v41, %v4598_v57  ;;  %v1836_v5 = vsel %vm710_vm3, %v4683_v12, %v1835_v41 }
 0x581   :  { %2408 = vmatpush1.msra.mxu0 %v1820_v62  ;;  %v4836_v62 = vld [vmem:[#allocation8] sm:$0xff]  ;;  %v1906_v3 = vmul.f32 %v1895_v59, %v1878_v46  ;;  %v1797_v57 = vsel %vm666_vm4, %v1793_v19, %v4685_v33  ;;  %v1865_v12 = vmul.f32 %v1857_v10, %v1839_v15  ;;  %v1794_v50 = vsel %vm666_vm4, %v4608_v60, %v1793_v19 }
 0x582   :  { %2409 = vmatprep.subr.mxu0 %v1779_v53  ;;  %v1907_v53 = vmul.f32 %v1899_v52, %v1881_v49  ;;  %v1864_v37 = vmul.f32 %v1853_v25, %v1836_v5  ;;  %v1769_v26 = vrot.slane %v4737_v51, %v3946_v56  ;;  %v1823_v33 = vmul.f32 %v1815_v44, %v1797_v57 }
 0x583   :  { %2410 = vmatpush1.msra.mxu0 %v1778_v30  ;;  %v1719_v18 = vpop.permute.xlu0 %1718  ;;  %v1822_v24 = vmul.f32 %v1811_v22, %v1794_v50  ;;  %v1617_v9 = vrot.slane %v4793_v43, %v3954_v16  ;;  %v1613_v55 = vrot.slane %v4793_v43, %v3946_v56  ;;  %v2940_v22 = vld [vmem:[%s4937_s0 + $0x18] sm:$0xff] }
 0x584   :  { %2411 = vmatprep.subr.mxu0 %v1749_v61  ;;  %v1677_v30 = vpop.permute.xlu1 %1676  ;;  %v1773_v61 = vrot.slane %v4737_v51, %v3954_v16  ;;  %v1722_v60 = vsel %vm591_vm5, %v1719_v18, %v4628_v38  ;;  %v1723_v42 = vsel %vm591_vm5, %v4687_v45, %v1719_v18  ;;  %v1701_v51 = vrot.slane %v4761_v48, %v3954_v16  ;;  %v2939_v18 = vld [vmem:[%s4937_s0 + $0x10] sm:$0xff] }
 0x585   :  { %2412 = vmatpush1.msra.mxu0 %v1748_v28  ;;  %v1680_v38 = vsel %vm547_vm6, %v1677_v30, %v4689_v14  ;;  %v1780_v4 = vmul.f32 %v1769_v26, %v4345_v0  ;;  %v1659_v45 = vrot.slane %v4782_v63, %v3954_v16  ;;  %v1681_v35 = vsel %vm547_vm6, %v4638_v47, %v1677_v30 }
 0x586   :  { %2413 = vmatprep.subr.mxu0 %v1707_v13  ;;  %v1781_v58 = vmul.f32 %v1773_v61, %v4343_v21 }
 0x587   :  { %2414 = vmatpush1.msra.mxu0 %v1706_v23  ;;  %v1635_v28 = vpop.permute.xlu0 %1634  ;;  %v1709_v23 = vmul.f32 %v1701_v51, %v1680_v38 }
 0x588   :  { %2415 = vmatprep.subr.mxu0 %v1665_v31  ;;  %v1593_v32 = vpop.permute.xlu1 %1592  ;;  %v1638_v14 = vsel %vm503_vm7, %v1635_v28, %v4658_v36  ;;  %v1639_v0 = vsel %vm503_vm7, %v4691_v11, %v1635_v28 }
 0x589   :  { %2416 = vmatpush1.msra.mxu0 %v1664_v39  ;;  %v1667_v36 = vmul.f32 %v1659_v45, %v1638_v14  ;;  %v1597_v31 = vsel %vm460_vm8, %v4668_v20, %v1593_v32 }
 0x58a   :  { %2417 = vmatprep.subr.mxu0 %v1623_v40 }
 0x58b   :  { %2418 = vmatpush1.msra.mxu0 %v1622_v8  ;;  %v2533_v34 = vpop.permute.xlu0 %2532  ;;  %v2938_v8 = vld [vmem:[%s4937_s0 + $0x8] sm:$0xff] }
 0x58c   :  { %2614 = vmatmul.mubr.msk.f32.vlgmr.msra.gmra.mxu0 %vm1288_vm9, %v4836_v62  ;;  %2472 = vmatprep.subr.mxu0 %v1949_v7 }
 0x58d   :  { %2473 = vmatpush1.msra.mxu0 %v4679_v1  ;;  %2522 = vmatprep.mubr.f32.mxu0 %v5147_v6  ;;  %v1743_v1 = vrot.slane %v4749_v54, %v3954_v16  ;;  %v1739_v6 = vrot.slane %v4749_v54, %v3946_v56  ;;  %v1697_v54 = vrot.slane %v4761_v48, %v3946_v56 }
 0x58e   :  { %2474 = vmatprep.subr.mxu0 %v1907_v53  ;;  %v1655_v48 = vrot.slane %v4782_v63, %v3946_v56  ;;  %v1596_v63 = vsel %vm460_vm8, %v1593_v32, %v4754_v2  ;;  %v1624_v16 = vmul.f32 %v1613_v55, %v1597_v31 }
 0x58f   :  { %2475 = vmatpush1.msra.mxu0 %v1906_v3  ;;  %v1751_v13 = vmul.f32 %v1743_v1, %v1722_v60  ;;  %v1750_v21 = vmul.f32 %v1739_v6, %v1723_v42  ;;  %v1708_v47 = vmul.f32 %v1697_v54, %v1681_v35  ;;  %v1625_v17 = vmul.f32 %v1617_v9, %v1596_v63 }
 0x590   :  { %2476 = vmatprep.subr.mxu0 %v1865_v12  ;;  %v1666_v11 = vmul.f32 %v1655_v48, %v1639_v0 }
 0x591   :  { %2477 = vmatpush1.msra.mxu0 %v1864_v37 }
 0x592   :  { %2478 = vmatprep.subr.mxu0 %v1823_v33 }
 0x593   :  { %2479 = vmatpush1.msra.mxu0 %v1822_v24 }
 0x594   :  { %2480 = vmatprep.subr.mxu0 %v1781_v58 }
 0x595   :  { %2481 = vmatpush1.msra.mxu0 %v1780_v4 }
 0x596   :  { %2482 = vmatprep.subr.mxu0 %v1751_v13 }
 0x597   :  { %2483 = vmatpush1.msra.mxu0 %v1750_v21 }
 0x598   :  { %2484 = vmatprep.subr.mxu0 %v1709_v23 }
 0x599   :  { %2485 = vmatpush1.msra.mxu0 %v1708_v47 }
 0x59a   :  { %2486 = vmatprep.subr.mxu0 %v1667_v36 }
 0x59b   :  { %2487 = vmatpush1.msra.mxu0 %v1666_v11 }
 0x59c   :  { %2488 = vmatprep.subr.mxu0 %v1625_v17 }
 0x59d   :  { %2489 = vmatpush1.msra.mxu0 %v1624_v16 }
 0x59e   :  { %2615 = vmatmul.mubr.msk.f32.vlgmr.msra.gmra.mxu0 %vm1288_vm9, %v4836_v62 }
 0x63a   :  { %v2308_v56 = vpop.f32.mrf.mxu0  ;;  %v2379_v62 = vpop.f32.mrf.mxu1 }
 0x63c   :  { %v2310_v2 = vpop.f32.mrf.mxu0  ;;  %v2381_v46 = vpop.f32.mrf.mxu1 }
 0x64c   :  { %v2453_v43 = vpop.f32.mrf.mxu0 }
 0x64d   :  { %v2454_v41 = vadd.f32 %v2453_v43, %v2308_v56 }
 0x64e   :  { %v2455_v39 = vpop.f32.mrf.mxu0 }
 0x64f   :  { %v2535_v29 = vadd.f32 %v2533_v34, %v2454_v41  ;;  %v2456_v20 = vadd.f32 %v2455_v39, %v2310_v2 }
 0x651   :  { %v2539_v40 = vadd.f32 %v2937_v27, %v2535_v29  ;;  %v2536_v52 = vadd.f32 %v2533_v34, %v2456_v20 }
 0x653   :  { %v2543_v19 = vmax.f32 %v2539_v40, 0.0  ;;  %v2540_v59 = vadd.f32 %v2938_v8, %v2536_v52 }
 0x655   :  { %2547 = vst [vmem:[%s4950_s13] sm:$0xff] %v2543_v19  ;;  %v2544_v49 = vmax.f32 %v2540_v59, 0.0 }
 0x657   :  { %2548 = vst [vmem:[%s4950_s13 + $0x8] sm:$0xff] %v2544_v49 }
 0x65e   :  { %v2524_v7 = vpop.f32.mrf.mxu0 }
 0x65f   :  { %v2525_v10 = vadd.f32 %v2524_v7, %v2379_v62 }
 0x660   :  { %v2526_v25 = vpop.f32.mrf.mxu0 }
 0x661   :  { %v2537_v15 = vadd.f32 %v2533_v34, %v2525_v10  ;;  %v2527_v5 = vadd.f32 %v2526_v25, %v2381_v46 }
 0x663   :  { %v2541_v53 = vadd.f32 %v2939_v18, %v2537_v15  ;;  %v2538_v44 = vadd.f32 %v2533_v34, %v2527_v5 }
 0x665   :  { %v2545_v3 = vmax.f32 %v2541_v53, 0.0  ;;  %v2542_v57 = vadd.f32 %v2940_v22, %v2538_v44 }
 0x667   :  { %2549 = vst [vmem:[%s4950_s13 + $0x10] sm:$0xff] %v2545_v3  ;;  %v2546_v12 = vmax.f32 %v2542_v57, 0.0 }
 0x669   :  { %2550 = vst [vmem:[%s4950_s13 + $0x18] sm:$0xff] %v2546_v12 }
 0x66a   :  { %2555 = vsyncpa [#allocation5], 1 }
 0x66b   :  { %2556 = vsyncpa [#allocation7], 1 }

</bundles_post_ra>
